<compile_context>
chip_gen: v5e
topology: v5e:2x2
jax: 0.10.0
libtpu: 0.0.40
codegen_flags: <defaults>
</compile_context>

<pallas_src>
import jax
import jax.numpy as jnp
from jax.experimental import pallas as pl
from jax.experimental.pallas import tpu as pltpu


# --------------------------- kernel 1: attention scores ----------------------
def _score_kernel(z2d_ref, w1_ref, b1_ref, sel_ref, part_ref):
    """Accumulate per-metapath sums of tanh(z @ W1 + b1) in hidden space.

    z2d_ref : (tile_r, C)   bf16   flattened node-major z tile
    w1_ref  : (C, KH)       bf16   all heads' W1 concatenated (resident)
    b1_ref  : (1, KH)       f32    all heads' b1 concatenated (resident)
    sel_ref : (M, tile_r)   bf16   row -> metapath one-hot (resident)
    part_ref: (1, M, KH)    f32    per-parallel-slice accumulator (resident output)
    """
    i = pl.program_id(1)  # inner ("arbitrary") reduction axis over node tiles

    @pl.when(i == 0)
    def _init():
        part_ref[...] = jnp.zeros_like(part_ref)

    # (tile_r, C) @ (C, KH) on the bf16 MXU, f32 accumulation.
    h = jnp.dot(z2d_ref[...], w1_ref[...],
                preferred_element_type=jnp.float32) + b1_ref[...]
    s = jnp.tanh(h.astype(jnp.bfloat16))                       # (tile_r, KH) bf16
    # Per-metapath partial sums over the nodes of this tile (small-output matmul):
    #   (M, tile_r) @ (tile_r, KH) -> (M, KH)
    part_ref[...] += jnp.dot(sel_ref[...], s,
                             preferred_element_type=jnp.float32)[None]


# --------------------------- kernel 2: weighted aggregation -------------------
def _aggregate_kernel(wsel_ref, z2d_ref, out_ref):
    """out[t, :] = sum_m gamma[m] * z[node_t, m, :] via one aligned MXU matmul.

    wsel_ref: (tile_n, tile_r) bf16  gamma-weighted one-hot selection (resident)
    z2d_ref : (tile_r, C)      bf16  flattened node-major z tile
    out_ref : (tile_n, C)      f32   lane-dense output tile
    """
    out_ref[...] = jnp.dot(wsel_ref[...], z2d_ref[...],
                           preferred_element_type=jnp.float32)


# ------------------------------------ wrapper ---------------------------------
def semantic_attention_forward(z, params, *, tile_n=256):
    """z: (N, M, C) float32; params: lists W1[h](C,H), b1[h](H,), w2[h](H,1)."""
    n, m, c = z.shape
    num_head = len(params["W1"])
    hidden = params["W1"][0].shape[1]
    kh = num_head * hidden

    tile_n = min(tile_n, n)
    assert n % tile_n == 0, "demo wrapper assumes N divisible by tile_n"
    num_tiles = n // tile_n
    tile_r = tile_n * m
    # Split the reduction across 2 TensorCores when possible (v7x megacore).
    n_split = 2 if (num_tiles % 2 == 0 and num_tiles >= 2) else 1
    tiles_per_split = num_tiles // n_split

    # --- fuse all heads into single wide matmuls (done once, outside kernel) ---
    w1s = jnp.concatenate(params["W1"], axis=1).astype(jnp.bfloat16)   # (C, KH)
    b1s = jnp.concatenate(params["b1"], axis=0)[None, :].astype(jnp.float32)
    w2bd = jnp.zeros((kh, num_head), jnp.float32)                      # block-diag
    for h in range(num_head):
        w2bd = w2bd.at[h * hidden:(h + 1) * hidden, h].set(params["w2"][h][:, 0])

    # bf16 z stream in HBM, flattened node-major: row r -> (node r // M, metapath r % M)
    z2d = z.reshape(n * m, c).astype(jnp.bfloat16)

    # One-hot row -> metapath selection; identical for every tile since tile_r % M == 0.
    r = jnp.arange(tile_r)
    sel = (r[None, :] % m == jnp.arange(m)[:, None]).astype(jnp.bfloat16)  # (M, tile_r)

    # ---------------- kernel 1: per-metapath hidden-space sums -----------------
    part = pl.pallas_call(
        _score_kernel,
        out_shape=jax.ShapeDtypeStruct((n_split, m, kh), jnp.float32),
        grid_spec=pltpu.PrefetchScalarGridSpec(
            num_scalar_prefetch=0,
            grid=(n_split, tiles_per_split),
            in_specs=[
                pl.BlockSpec((tile_r, c),
                             lambda j, i: (j * tiles_per_split + i, 0)),  # z (pipelined)
                pl.BlockSpec((c, kh), lambda j, i: (0, 0)),               # W1 stacked
                pl.BlockSpec((1, kh), lambda j, i: (0, 0)),               # b1 stacked
                pl.BlockSpec((m, tile_r), lambda j, i: (0, 0)),           # one-hot sel
            ],
            out_specs=pl.BlockSpec((1, m, kh), lambda j, i: (j, 0, 0)),   # per-slice acc
        ),
        compiler_params=pltpu.CompilerParams(
            dimension_semantics=("parallel", "arbitrary"),
            vmem_limit_bytes=32 << 20),
    )(z2d, w1s, b1s, sel)

    # ---------------- tiny epilogue (pure JAX): project + softmax + head mean --
    acc = part.sum(axis=0) / n                       # (M, KH) mean over all nodes
    w = acc @ w2bd                                   # (M, num_head)
    beta = jax.nn.softmax(w, axis=0)                 # softmax over metapaths
    gamma = beta.mean(axis=1)                        # (M,)  mean over heads

    # Gamma-weighted one-hot for the aggregation matmul: wsel[t, t*M + m] = gamma[m].
    t_idx = jnp.arange(tile_n)
    onehot = (r[None, :] // m == t_idx[:, None])
    wsel = (onehot * gamma[r % m][None, :]).astype(jnp.bfloat16)       # (tile_n, tile_r)

    # ---------------- kernel 2: weighted aggregation over metapaths ------------
    out = pl.pallas_call(
        _aggregate_kernel,
        out_shape=jax.ShapeDtypeStruct((n, c), jnp.float32),
        grid_spec=pltpu.PrefetchScalarGridSpec(
            num_scalar_prefetch=0,
            grid=(num_tiles,),
            in_specs=[
                pl.BlockSpec((tile_n, tile_r), lambda i: (0, 0)),  # wsel (resident)
                pl.BlockSpec((tile_r, c), lambda i: (i, 0)),       # z (pipelined)
            ],
            out_specs=pl.BlockSpec((tile_n, c), lambda i: (i, 0)),  # lane-dense out
        ),
        compiler_params=pltpu.CompilerParams(
            dimension_semantics=("parallel",),
            vmem_limit_bytes=32 << 20),
    )(wsel, z2d)

    return out


# ------------------------------ reference & demo ------------------------------
def init_params(key, in_channel, num_head, hidden_size=128):
    w1, b1, w2 = [], [], []
    for _ in range(num_head):
        key, k1, k2, k3 = jax.random.split(key, 4)
        w1.append(jax.random.normal(k1, (in_channel, hidden_size), jnp.float32)
                  / jnp.sqrt(in_channel))
        b1.append(jax.random.normal(k2, (hidden_size,), jnp.float32) * 0.01)
        w2.append(jax.random.normal(k3, (hidden_size, 1), jnp.float32)
                  / jnp.sqrt(hidden_size))
    return {"W1": w1, "b1": b1, "w2": w2}


def reference_forward(z, params):
    """Pure-JAX (f32) mirror of the PyTorch SemanticAttention.forward."""
    num_head = len(params["W1"])
    out = None
    for h in range(num_head):
        s = jnp.tanh(z @ params["W1"][h] + params["b1"][h]) @ params["w2"][h]  # (N,M,1)
        w = s.mean(axis=0)                                                     # (M,1)
        beta = jax.nn.softmax(w, axis=0)                                       # (M,1)
        o = (beta[None, :, :] * z).sum(axis=1)                                 # (N,C)
        out = o if out is None else out + o
    return out / num_head


if __name__ == "__main__":
    key = jax.random.PRNGKey(0)
    k_param, k_z = jax.random.split(key)

    # small demo shapes: N nodes, M metapaths, C channels, hidden H, 2 heads
    N, M, C, H, NUM_HEAD = 1024, 4, 128, 128, 2

    params = init_params(k_param, in_channel=C, num_head=NUM_HEAD, hidden_size=H)
    z = jax.random.normal(k_z, (N, M, C), jnp.float32)

    out = semantic_attention_forward(z, params, tile_n=256)
    out = jax.block_until_ready(out)

    ref = reference_forward(z, params)
    assert out.shape == (N, C)
    # bf16 z / W1 stream -> bf16-level tolerance on the output
    assert jnp.allclose(out, ref, atol=5e-2, rtol=5e-2), \
        float(jnp.max(jnp.abs(out - ref)))

    print("KERNEL_OK")
</pallas_src>

<mosaic_0001>
module attributes {stable_mosaic.version = 11 : i64} {
  func.func @_score_kernel(%arg0: i32, %arg1: i32, %arg2: memref<1024x128xbf16, #tpu.memory_space<vmem>>, %arg3: memref<128x256xbf16, #tpu.memory_space<vmem>>, %arg4: memref<1x256xf32, #tpu.memory_space<vmem>>, %arg5: memref<4x1024xbf16, #tpu.memory_space<vmem>>, %arg6: memref<1x4x256xf32, #tpu.memory_space<vmem>>) attributes {dimension_semantics = [#tpu.dimension_semantics<parallel>, #tpu.dimension_semantics<arbitrary>], iteration_bounds = array<i64: 2, 2>, scalar_prefetch = 0 : i64, scratch_operands = 0 : i64, tpu.core_type = #tpu.core_type<tc>, window_params = [{transform_indices = @transform_0, window_bounds = array<i64: 1024, 128>}, {pipeline_mode = #tpu.pipeline_mode<synchronous>, transform_indices = @transform_1, window_bounds = array<i64: 128, 256>}, {pipeline_mode = #tpu.pipeline_mode<synchronous>, transform_indices = @transform_2, window_bounds = array<i64: 1, 256>}, {pipeline_mode = #tpu.pipeline_mode<synchronous>, transform_indices = @transform_3, window_bounds = array<i64: 4, 1024>}, {transform_indices = @transform_4, window_bounds = array<i64: 1, 4, 256>}]} {
    %c0_i32 = arith.constant 0 : i32
    %0 = arith.cmpi eq, %arg1, %c0_i32 : i32
    %1 = arith.extui %0 : i1 to i32
    %c0_i32_0 = arith.constant 0 : i32
    %2 = arith.cmpi ne, %1, %c0_i32_0 : i32
    scf.if %2 {
      %cst_15 = arith.constant 0.000000e+00 : f32
      %17 = vector.broadcast %cst_15 : f32 to vector<1x4x256xf32>
      %c0_16 = arith.constant 0 : index
      %c0_17 = arith.constant 0 : index
      %c0_18 = arith.constant 0 : index
      %18 = vector.load %arg6[%c0_16, %c0_17, %c0_18] : memref<1x4x256xf32, #tpu.memory_space<vmem>>, vector<1x4x256xf32>
      tpu.vector_store %arg6[%c0_16, %c0_17, %c0_18], %17 {strides = array<i32>} : memref<1x4x256xf32, #tpu.memory_space<vmem>>, vector<1x4x256xf32>,
    } else {
    }
    %c0 = arith.constant 0 : index
    %c0_1 = arith.constant 0 : index
    %3 = vector.load %arg2[%c0, %c0_1] : memref<1024x128xbf16, #tpu.memory_space<vmem>>, vector<1024x128xbf16>
    %c0_2 = arith.constant 0 : index
    %c0_3 = arith.constant 0 : index
    %4 = vector.load %arg3[%c0_2, %c0_3] : memref<128x256xbf16, #tpu.memory_space<vmem>>, vector<128x256xbf16>
    %cst = arith.constant dense<0.000000e+00> : vector<1024x256xf32>
    %5 = tpu.matmul %3, %4, %cst {dimension_numbers = #tpu.dot_dimension_numbers<[1], [0], [0], [1], [0, 0, 1, 1], [], []>} : vector<1024x128xbf16>, vector<128x256xbf16>, vector<1024x256xf32> -> vector<1024x256xf32>
    %c0_4 = arith.constant 0 : index
    %c0_5 = arith.constant 0 : index
    %6 = vector.load %arg4[%c0_4, %c0_5] : memref<1x256xf32, #tpu.memory_space<vmem>>, vector<1x256xf32>
    %7 = vector.broadcast %6 : vector<1x256xf32> to vector<1024x256xf32>
    %8 = arith.addf %5, %7 : vector<1024x256xf32>
    %9 = arith.truncf %8 : vector<1024x256xf32> to vector<1024x256xbf16>
    %10 = math.tanh %9 : vector<1024x256xbf16>
    %c0_6 = arith.constant 0 : index
    %c0_7 = arith.constant 0 : index
    %c0_8 = arith.constant 0 : index
    %11 = vector.load %arg6[%c0_6, %c0_7, %c0_8] : memref<1x4x256xf32, #tpu.memory_space<vmem>>, vector<1x4x256xf32>
    %c0_9 = arith.constant 0 : index
    %c0_10 = arith.constant 0 : index
    %12 = vector.load %arg5[%c0_9, %c0_10] : memref<4x1024xbf16, #tpu.memory_space<vmem>>, vector<4x1024xbf16>
    %cst_11 = arith.constant dense<0.000000e+00> : vector<4x256xf32>
    %13 = tpu.matmul %12, %10, %cst_11 {dimension_numbers = #tpu.dot_dimension_numbers<[1], [0], [0], [1], [0, 0, 1, 1], [], []>} : vector<4x1024xbf16>, vector<1024x256xbf16>, vector<4x256xf32> -> vector<4x256xf32>
    %14 = vector.shape_cast %13 : vector<4x256xf32> to vector<1x4x256xf32>
    %15 = arith.addf %11, %14 : vector<1x4x256xf32>
    %c0_12 = arith.constant 0 : index
    %c0_13 = arith.constant 0 : index
    %c0_14 = arith.constant 0 : index
    %16 = vector.load %arg6[%c0_12, %c0_13, %c0_14] : memref<1x4x256xf32, #tpu.memory_space<vmem>>, vector<1x4x256xf32>
    tpu.vector_store %arg6[%c0_12, %c0_13, %c0_14], %15 {strides = array<i32>} : memref<1x4x256xf32, #tpu.memory_space<vmem>>, vector<1x4x256xf32>,
    return
  }
  func.func @transform_0(%arg0: i32, %arg1: i32) -> (i32, i32) {
    %c2_i32 = arith.constant 2 : i32
    %0 = arith.muli %arg0, %c2_i32 : i32
    %1 = arith.addi %0, %arg1 : i32
    %c0_i32 = arith.constant 0 : i32
    %c0_i32_0 = arith.constant 0 : i32
    return %1, %c0_i32 : i32, i32
  }
  func.func @transform_1(%arg0: i32, %arg1: i32) -> (i32, i32) {
    %c0_i32 = arith.constant 0 : i32
    %c0_i32_0 = arith.constant 0 : i32
    %c0_i32_1 = arith.constant 0 : i32
    return %c0_i32, %c0_i32_0 : i32, i32
  }
  func.func @transform_2(%arg0: i32, %arg1: i32) -> (i32, i32) {
    %c0_i32 = arith.constant 0 : i32
    %c0_i32_0 = arith.constant 0 : i32
    %c0_i32_1 = arith.constant 0 : i32
    return %c0_i32, %c0_i32_0 : i32, i32
  }
  func.func @transform_3(%arg0: i32, %arg1: i32) -> (i32, i32) {
    %c0_i32 = arith.constant 0 : i32
    %c0_i32_0 = arith.constant 0 : i32
    %c0_i32_1 = arith.constant 0 : i32
    return %c0_i32, %c0_i32_0 : i32, i32
  }
  func.func @transform_4(%arg0: i32, %arg1: i32) -> (i32, i32, i32) {
    %c0_i32 = arith.constant 0 : i32
    %c0_i32_0 = arith.constant 0 : i32
    %c0_i32_1 = arith.constant 0 : i32
    return %arg0, %c0_i32, %c0_i32_0 : i32, i32, i32
  }
}

</mosaic_0001>

<bundles_post_ra>
// kernel: tpu_custom_call.1
= control target key start
LH: loop header
LB: loop body
LE: loop exit
PB: predicated region body
PF: predicated region fallthrough
CT: control target
= control target key end

     0   :  { %s5361_s0 = inlined_call_operand.hbm [shape: bf16[4096,128], index: 0, kind: input, shape index: {}]   ;;  %s5362_s1 = inlined_call_operand.hbm [shape: bf16[128,256], index: 1, kind: input, shape index: {}]   ;;  %s5363_s2 = inlined_call_operand.hbm [shape: f32[1,256], index: 2, kind: input, shape index: {}]   ;;  %s5364_s3 = inlined_call_operand.hbm [shape: bf16[4,1024], index: 3, kind: input, shape index: {}]   ;;  %s5365_s4 = inlined_call_operand.hbm [shape: f32[2,4,256], index: 4, kind: output, shape index: {}]  }
   0x1   :  { %5408 = sst [smem:[#allocation69_spill]] %s5362_s1 }
   0x2   :  { %5409 = sst [smem:[#allocation70_spill]] %s5363_s2 }
   0x3   :  { %5410 = sst [smem:[#allocation71_spill]] %s5364_s3 }
   0x4   :  { %5411 = sst [smem:[#allocation72_spill]] %s5365_s4 }
   0x5   :  { %9 = vsyncpa [#allocation3], 0 }
   0x6   :  { %11 = vsyncpa [#allocation3 + $0x1], 0 }
   0x7   :  { %12 = vsyncpa [#allocation6], 0 }
   0x8   :  { %13 = vsyncpa [#allocation9], 0 }
   0x9   :  { %14 = vsyncpa [#allocation4], 0 }
   0xa   :  { %16 = vsyncpa [#allocation4 + $0x1], 0  ;;  %s4080_s15 = smov 0   ;;  %s4082_s16 = smov 0  }
   0xb   :  { %s4084_s17 = smov 0   ;;  %s4086_s18 = smov 0  }
   0xc   :  { %s4088_s19 = smov 0   ;;  %s4090_s20 = smov 0  }
   0xd   :  { %s4092_s21 = smov 0   ;;  %s4094_s22 = smov 0  }
   0xe   :  { %s4096_s23 = smov 0   ;;  %s4098_s24 = smov 0  }
   0xf   :  { %s4100_s25 = smov 0  }
  0x10 LB: > { %5412 = sst [smem:[#allocation15_spill]] %s4005_s15  ;;  %s2699_s26 = sadd.s32 4294967295, %s4045_s25   ;;  %s4045_s25 = sphi %s4100_s25, %s22_s25   ;;  %s4041_s24 = sphi %s4098_s24, %s5541_s24   ;;  %s4037_s23 = sphi %s4096_s23, %s5540_s23   ;;  %s4033_s22 = sphi %s4094_s22, %s5539_s22   ;;  %s4029_s21 = sphi %s4092_s21, %s5532_s21   ;;  %s4025_s20 = sphi %s4090_s20, %s5538_s20   ;;  %s4021_s19 = sphi %s4088_s19, %s5537_s19   ;;  %s4017_s18 = sphi %s4086_s18, %s5536_s18   ;;  %s4013_s17 = sphi %s4084_s17, %s5535_s17   ;;  %s4009_s16 = sphi %s4082_s16, %s5534_s16   ;;  %s4005_s15 = sphi %s4080_s15, %s5533_s15  }
  0x11   : > { %5413 = sst [smem:[#allocation16_spill]] %s4029_s21  ;;  %s2700_s27 = sadd.s32 4294967294, %s4045_s25  }
  0x12   : > { %5414 = sst [smem:[#allocation17_spill]] %s4033_s22  ;;  %p58_p0 = scmp.ne.s32.totalorder %s4021_s19, %s4017_s18 }
  0x13   : > { %5415 = sst [smem:[#allocation18_spill]] %s4037_s23  ;;  %p4136_p1 = scmp.eq.s32.totalorder %s2699_s26, 0 }
  0x14   : > { %p144_p2 = scmp.ne.s32.totalorder %s4013_s17, %s4009_s16  ;;  %p145_p3 = scmp.eq.s32.totalorder %s2699_s26, 3 }
  0x15   : > { %p4144_p4 = por %p4136_p1, %p58_p0  ;;  %p150_p5 = scmp.ne.s32.totalorder %s4009_s16, %s4005_s15 }
  0x16   : > { %p4150_p6 = por %p145_p3, %p144_p2  ;;  %p151_p7 = scmp.eq.s32.totalorder %s2700_s27, 3 }
  0x17   : > { %p2703_p8 = scmp.ge.s32.totalorder %s4045_s25, 1  ;;  %p158_p9 = scmp.lt.s32.totalorder %s4045_s25, 5 }
  0x18   : > { %s5418_s30 = scalar_select %p4150_p6, 1, 0 }
  0x19   : > { %p4156_p10 = por %p151_p7, %p150_p5  ;;  %p4160_p11 = pnand %p2703_p8, %p158_p9 }
  0x1a   : > { %5419 = sst [smem:[#allocation19_spill]] %s5418_s30  ;;  %s4047_s10 = smov [#allocation5]  }
  0x1b   : > { %s5420_s5 = scalar_select %p4156_p10, 1, 0 }
  0x1c   : > { %s5423_s1 = sld [smem:[#allocation69_spill]]  ;;  %p3158_p12 = pneg %p4160_p11 }
  0x1d   : > { %5421 = sst [smem:[#allocation20_spill]] %s5420_s5  ;;  %s171_s11 = sshll.u32 %s4047_s10, 4  ;;  %s172_s11 = int_to_ptr.vmem [resolvable:$true] %s171_s11 }
  0x1e   : > { %p4171_p13 = pnand %p3158_p12, %p4136_p1  ;;  %s5425_s2 = sld [smem:[#allocation70_spill]] }
  0x1f   : > { %s4048_s26 = smov 128   ;;  %s4049_s27 = smov 8  }
  0x20   : > { %s5426_s3 = sld [smem:[#allocation71_spill]]  ;;  %s4051_s14 = smov [#allocation8]  }
  0x21   : > { %p52_p2 = scmp.ne.s32.totalorder %s4025_s20, %s4021_s19  ;;  %p53_p3 = scmp.eq.s32.totalorder %s4045_s25, 0 }
  0x22   : > { %s169_s9 = sshll.u32 %s5423_s1, 4  ;;  %s4050_s1 = smov [#allocation7]   ;;  %s170_s9 = int_to_ptr.hbm [resolvable:$true] %s169_s9 }
  0x23   : > { %3161 = dma.hbm_to_vmem [thread:$0]  (!%p4171_p13), %s170_s9, 2048, %s172_s11, [#allocation6], %s4048_s26, %s4048_s26, %s4049_s27  }
  0x24   : > { %s184_s18 = sshll.u32 %s5425_s2, 4  ;;  %s186_s13 = sshll.u32 %s4050_s1, 4  ;;  %s185_s18 = int_to_ptr.hbm [resolvable:$true] %s184_s18  ;;  %s187_s13 = int_to_ptr.vmem [resolvable:$true] %s186_s13 }
  0x25   : > { %3164 = dma.hbm_to_vmem [thread:$0]  (!%p4171_p13), %s185_s18, 32, %s187_s13, [#allocation6]  }
  0x26   : > { %s196_s10 = sshll.u32 %s5426_s3, 4  ;;  %s198_s2 = sshll.u32 %s4051_s14, 4  ;;  %s197_s10 = int_to_ptr.hbm [resolvable:$true] %s196_s10  ;;  %s199_s2 = int_to_ptr.vmem [resolvable:$true] %s198_s2 }
  0x27   : > { %3167 = dma.hbm_to_vmem [thread:$0]  (!%p4171_p13), %s197_s10, 256, %s199_s2, [#allocation9]  }
  0x28   : > { %s31_s9 = sadd.s32 1, %s4037_s23  ;;  %s34_s11 = sadd.s32 1, %s4041_s24 }
  0x29   : > { %p32_p0 = scmp.ge.s32.totalorder %s31_s9, 2  ;;  %s2701_s1 = sshll.u32 %s4041_s24, 1 }
  0x2a   : > { %s39_s26 = sadd.s32 %s4037_s23, %s2701_s1  ;;  %s45_s27 = sadd.s32 1, %s4025_s20 }
  0x2b   : > { %s5543_s9 = smov (%p32_p0, %s31_s9), 0  ;;  %s5545_s11 = smov (!%p32_p0, %s34_s11), %s4041_s24 }
  0x2c   : > { %p36_p5 = scmp.ge.s32.totalorder %s5545_s11, 2  ;;  %s134_s18 = sadd.s32 1, %s4013_s17 }
  0x2d   : > { %p4199_p7 = por %p53_p3, %p52_p2  ;;  %p3179_p8 = scmp.lt.s32.totalorder %s4045_s25, 4 }
  0x2e   : > { %s5547_s11 = smov (%p36_p5, %s5545_s11), 0  ;;  %s209_s12 = sand.u32 1, %s4025_s20  }
  0x2f   : > { %s3044_s7 = sshll.u32 %s39_s26, 9  ;;  %s2702_s8 = sshll.u32 %s5547_s11, 1 }
  0x30   : > { %s131_s10 = ssub.s32 %s4041_s24, %s5547_s11  ;;  %s41_s13 = sadd.s32 %s2702_s8, %s5543_s9 }
  0x31   : > { %p132_p9 = scmp.eq.s32.totalorder %s131_s10, 0  ;;  %s42_s14 = ssub.s32 %s39_s26, %s41_s13 }
  0x32   : > { %p43_p12 = scmp.eq.s32.totalorder %s42_s14, 0  ;;  %s2708_s1 = sshll.u32 %s209_s12, 9 }
  0x33   : > { %s4212_s3 = scalar_select %p132_p9, %s4013_s17, %s134_s18  }
  0x34   : > { %s4215_s23 = scalar_select %p43_p12, %s4025_s20, %s45_s27  }
  0x35   : > { %s220_s30 = scalar_lea.hbm %s5361_s0, %s3044_s7  ;;  %s213_s22 = scalar_lea.vmem [#allocation2], %s2708_s1 }
  0x36   : > { %s221_s4 = sshll.u32 %s220_s30, 4  ;;  %s223_s21 = sshll.u32 %s213_s22, 4  ;;  %s222_s4 = int_to_ptr.hbm [resolvable:$true] %s221_s4  ;;  %s224_s21 = int_to_ptr.vmem [resolvable:$true] %s223_s21 }
  0x37   : > { %p3169_p13 = pnand %p3179_p8, %p4199_p7  ;;  %s210_s8 = scalar_lea.sflag [#allocation3], %s209_s12 }
  0x38   : > { %s4052_s26 = smov 64   ;;  %s4053_s10 = smov 4  }
  0x39   : > { %3171 = dma.hbm_to_vmem [thread:$0]  (!%p3169_p13), %s222_s4, 8192, %s224_s21, %s210_s8, %s4052_s26, %s4052_s26, %s4053_s10  }
  0x3a   : > { %235 = sbr.rel (%p4160_p11) target bundleno = 1235 (0x4d3), region = 36 }
  0x3f   : > { %s237_s27 = sand.u32 1, %s4021_s19  }
  0x40   : > { %s2713_s15 = sshll.u32 %s237_s27, 9  ;;  %s238_s5 = scalar_lea.sflag [#allocation3], %s237_s27 }
  0x41   : > { %s4227_s30 = scalar_lea.vmem [#allocation2], %s2713_s15 }
  0x42   : > { %3988 = dma.done.wait (%p4144_p4), %s238_s5, 8192  }
  0x43   : > { %3990 = vsyncadd (%p4144_p4), %s238_s5, 4294959104 }
  0x44   : > { %3992 = dma.done.wait (%p4136_p1), [#allocation6], 2080  }
  0x45   : > { %3994 = vsyncadd (%p4136_p1), [#allocation6], 4294965216 }
  0x46   : > { %3996 = dma.done.wait (%p4136_p1), [#allocation9], 256  }
  0x47   : > { %3998 = vsyncadd (%p4136_p1), [#allocation9], 4294967040  ;;  %s279_s4 = sand.u32 1, %s4009_s16   ;;  %s5428_s29 = sld [smem:[#allocation16_spill]] }
  0x48   : > { %s2717_s21 = sshll.u32 %s279_s4, 3 }
  0x49   : > { %s4244_s22 = scalar_lea.vmem [#allocation10], %s2717_s21 }
  0x4d   : > { %p2718_p4 = scmp.ne.s32.totalorder %s5428_s29, 0 }
  0x4f   : > { %288 = sbr.rel (%p2718_p4) target bundleno = 86 (0x56), region = 56 }
  0x54   : > { %v4054_v0 = vmov 0.0  }
  0x55   : > { %289 = vst [vmem:[%s4244_s22] sm:$0xff] %v4054_v0 }
  0x56 PF: > { %v3033_v1 = vld [vmem:[#allocation5 + $0x70] sm:$0xf]  ;;  %v3124_v2 = vld [vmem:[#allocation5 + $0x74] sm:$0xf0]  ;;  %v3025_v3 = vld [vmem:[#allocation5 + $0x60] sm:$0xf] }
  0x57   : > { %v3034_v4 = vor.u32 %v3124_v2, %v3033_v1  ;;  %v3122_v5 = vld [vmem:[#allocation5 + $0x64] sm:$0xf0]  ;;  %v3017_v7 = vld [vmem:[#allocation5 + $0x50] sm:$0xf]  ;;  %v3120_v8 = vld [vmem:[#allocation5 + $0x54] sm:$0xf0] }
  0x58   : > { %v3026_v6 = vor.u32 %v3122_v5, %v3025_v3  ;;  %v3018_v9 = vor.u32 %v3120_v8, %v3017_v7  ;;  %v3009_v10 = vld [vmem:[#allocation5 + $0x40] sm:$0xf]  ;;  %v3118_v11 = vld [vmem:[#allocation5 + $0x44] sm:$0xf0]  ;;  %v3001_v13 = vld [vmem:[#allocation5 + $0x30] sm:$0xf] }
  0x59   : > { %904 = vmatpush.bf16.msra.mxu0 %v3034_v4  ;;  %3126 = vmatpush.bf16.msra.mxu2 %v3034_v4  ;;  %v3010_v12 = vor.u32 %v3118_v11, %v3009_v10  ;;  %v3116_v14 = vld [vmem:[#allocation5 + $0x34] sm:$0xf0]  ;;  %v2993_v16 = vld [vmem:[#allocation5 + $0x20] sm:$0xf]  ;;  %v3114_v17 = vld [vmem:[#allocation5 + $0x24] sm:$0xf0] }
  0x5a   : > { %v3002_v15 = vor.u32 %v3116_v14, %v3001_v13  ;;  %v2994_v18 = vor.u32 %v3114_v17, %v2993_v16  ;;  %v2985_v19 = vld [vmem:[#allocation5 + $0x10] sm:$0xf]  ;;  %v3112_v20 = vld [vmem:[#allocation5 + $0x14] sm:$0xf0]  ;;  %v2977_v22 = vld [vmem:[#allocation5] sm:$0xf] }
  0x5b   : > { %v2986_v21 = vor.u32 %v3112_v20, %v2985_v19  ;;  %v3110_v23 = vld [vmem:[#allocation5 + $0x4] sm:$0xf0]  ;;  %v3045_v25 = vld [vmem:[%s4227_s30] sm:$0xff]  ;;  %v3047_v27 = vld [vmem:[%s4227_s30 + $0x10] sm:$0xff]  ;;  %s5527_s28 = sld [smem:[#allocation17_spill]]  ;;  %vm2565_vm0 = vcmask 1043456  }
  0x5c   : > { %v2978_v24 = vor.u32 %v3110_v23, %v2977_v22  ;;  %v3046_v26 = vld [vmem:[%s4227_s30 + $0x8] sm:$0xff]  ;;  %v3123_v28 = vld [vmem:[#allocation5 + $0x74] sm:$0xf]  ;;  %v3035_v29 = vld [vmem:[#allocation5 + $0x78] sm:$0xf0]  ;;  %s5528_s12 = sld [smem:[#allocation72_spill]] }
  0x5d   : > { %905 = vmatpush.bf16.msra.mxu0 %v3026_v6  ;;  %3127 = vmatpush.bf16.msra.mxu2 %v3026_v6  ;;  %v3038_v30 = vor.u32 %v3123_v28, %v3035_v29  ;;  %v3048_v31 = vld [vmem:[%s4227_s30 + $0x18] sm:$0xff]  ;;  %v3121_v32 = vld [vmem:[#allocation5 + $0x64] sm:$0xf]  ;;  %v3027_v33 = vld [vmem:[#allocation5 + $0x68] sm:$0xf0]  ;;  %s2584_s14 = sshll.u32 %s4244_s22, 4  ;;  %s2585_s14 = int_to_ptr.vmem [resolvable:$true] %s2584_s14 }
  0x5e   : > { %v3030_v34 = vor.u32 %v3121_v32, %v3027_v33  ;;  %v3119_v35 = vld [vmem:[#allocation5 + $0x54] sm:$0xf]  ;;  %v3019_v36 = vld [vmem:[#allocation5 + $0x58] sm:$0xf0]  ;;  %v3117_v38 = vld [vmem:[#allocation5 + $0x44] sm:$0xf] }
  0x5f   : > { %1233 = vmatpush.bf16.msra.mxu1 %v3038_v30  ;;  %3134 = vmatpush.bf16.msra.mxu3 %v3038_v30  ;;  %v3022_v37 = vor.u32 %v3119_v35, %v3019_v36  ;;  %v3011_v39 = vld [vmem:[#allocation5 + $0x48] sm:$0xf0]  ;;  %v3115_v41 = vld [vmem:[#allocation5 + $0x34] sm:$0xf]  ;;  %v3003_v42 = vld [vmem:[#allocation5 + $0x38] sm:$0xf0] }
  0x60   : > { %v3014_v40 = vor.u32 %v3117_v38, %v3011_v39  ;;  %v3006_v43 = vor.u32 %v3115_v41, %v3003_v42  ;;  %v3049_v44 = vld [vmem:[%s4227_s30 + $0x20] sm:$0xff]  ;;  %v2995_v46 = vld [vmem:[#allocation5 + $0x28] sm:$0xf0]  ;;  %v3111_v48 = vld [vmem:[#allocation5 + $0x14] sm:$0xf]  ;;  %s2571_s8 = scalar_lea.sflag [#allocation4], %s279_s4 }
  0x61   : > { %906 = vmatpush.bf16.msra.mxu0 %v3018_v9  ;;  %3128 = vmatpush.bf16.msra.mxu2 %v3018_v9  ;;  %v3113_v45 = vld [vmem:[#allocation5 + $0x24] sm:$0xf]  ;;  %v2987_v49 = vld [vmem:[#allocation5 + $0x18] sm:$0xf0]  ;;  %v2979_v52 = vld [vmem:[#allocation5 + $0x8] sm:$0xf0] }
  0x62   : > { %v2998_v47 = vor.u32 %v3113_v45, %v2995_v46  ;;  %v2990_v50 = vor.u32 %v3111_v48, %v2987_v49  ;;  %v3109_v51 = vld [vmem:[#allocation5 + $0x4] sm:$0xf]  ;;  %v3050_v54 = vld [vmem:[%s4227_s30 + $0x28] sm:$0xff]  ;;  %v3051_v55 = vld [vmem:[%s4227_s30 + $0x30] sm:$0xff]  ;;  %s3125_s6 = sshll.u32 %s5527_s28, 3  ;;  %s3935_s5 = scalar_lea.hbm %s5528_s12, 16 }
  0x63   : > { %1234 = vmatpush.bf16.msra.mxu1 %v3030_v34  ;;  %3135 = vmatpush.bf16.msra.mxu3 %v3030_v34  ;;  %v2982_v53 = vor.u32 %v3109_v51, %v2979_v52  ;;  %v3052_v56 = vld [vmem:[%s4227_s30 + $0x38] sm:$0xff]  ;;  %v3053_v57 = vld [vmem:[%s4227_s30 + $0x40] sm:$0xff]  ;;  %v3054_v1 = vld [vmem:[%s4227_s30 + $0x48] sm:$0xff]  ;;  %s2582_s7 = scalar_lea.hbm %s5528_s12, %s3125_s6 }
  0x64   : > { %v434_v59 = vld [vmem:[#allocation7] sm:$0x3]  ;;  %v3055_v8 = vld [vmem:[%s4227_s30 + $0x50] sm:$0xff]  ;;  %v3086_v10 = vld [vmem:[%s4227_s30 + $0x148] sm:$0xff]  ;;  %s2586_s1 = sshll.u32 %s2582_s7, 4  ;;  %s2587_s1 = int_to_ptr.hbm [resolvable:$true] %s2586_s1 }
  0x65   : > { %907 = vmatpush.bf16.msra.mxu0 %v3010_v12  ;;  %3129 = vmatpush.bf16.msra.mxu2 %v3010_v12  ;;  %v4257_v60 = vperm.slane %v434_v59, 0  ;;  %v3085_v3 = vld [vmem:[%s4227_s30 + $0x140] sm:$0xff]  ;;  %v3087_v17 = vld [vmem:[%s4227_s30 + $0x150] sm:$0xff]  ;;  %v4292_v29 = vperm.slane %v434_v59, 1  ;;  %v3090_v39 = vld [vmem:[%s4227_s30 + $0x168] sm:$0xff]  ;;  %s3929_s26 = sshra.s32 %s2587_s1, 4  ;;  %s3930_s26 = int_to_ptr.hbm [resolvable:$true] %s3929_s26 }
  0x66   : > { %v4285_v22 = vld [vmem:[%s4227_s30 + $0x60] sm:$0xff]  ;;  %v4310_v46 = vld [vmem:[%s4227_s30 + $0x78] sm:$0xff]  ;;  %v3091_v51 = vld [vmem:[%s4227_s30 + $0x170] sm:$0xff]  ;;  %s3931_s10 = scalar_lea.hbm %s3930_s26, 8  ;;  %p3936_p2 = scmp.lt.s32.totalorder %s3930_s26, %s5528_s12 }
  0x67   : > { %1235 = vmatpush.bf16.msra.mxu1 %v3022_v37  ;;  %3136 = vmatpush.bf16.msra.mxu3 %v3022_v37  ;;  %v3089_v30 = vld [vmem:[%s4227_s30 + $0x160] sm:$0xff]  ;;  %v4301_v37 = vld [vmem:[%s4227_s30 + $0x70] sm:$0xff]  ;;  %p3932_p1 = scmp.ne.s32.totalorder %s3930_s26, %s3931_s10  ;;  %p3937_p3 = scmp.lt.s32.totalorder %s3935_s5, %s3931_s10 }
  0x69   : > { %908 = vmatpush.bf16.msra.mxu0 %v3002_v15  ;;  %3130 = vmatpush.bf16.msra.mxu2 %v3002_v15  ;;  %v4276_v15 = vld [vmem:[%s4227_s30 + $0x58] sm:$0xff]  ;;  %p3933_p11 = pnand %p3932_p1, %p4150_p6  ;;  %p3938_p5 = por %p3937_p3, %p3936_p2 }
  0x6b   : > { %1236 = vmatpush.bf16.msra.mxu1 %v3014_v40  ;;  %3137 = vmatpush.bf16.msra.mxu3 %v3014_v40  ;;  %p3934_p0 = pneg %p3933_p11 }
  0x6d   : > { %909 = vmatpush.bf16.msra.mxu0 %v2994_v18  ;;  %3131 = vmatpush.bf16.msra.mxu2 %v2994_v18  ;;  %p3939_p7 = pnand %p3938_p5, %p3934_p0 }
  0x6f   : > { %1237 = vmatpush.bf16.msra.mxu1 %v3006_v43  ;;  %3138 = vmatpush.bf16.msra.mxu3 %v3006_v43 }
  0x71   : > { %910 = vmatpush.bf16.msra.mxu0 %v2986_v21  ;;  %3132 = vmatpush.bf16.msra.mxu2 %v2986_v21 }
  0x73   : > { %1238 = vmatpush.bf16.msra.mxu1 %v2998_v47  ;;  %3139 = vmatpush.bf16.msra.mxu3 %v2998_v47 }
  0x75   : > { %911 = vmatpush.bf16.msra.mxu0 %v2978_v24  ;;  %3133 = vmatpush.bf16.msra.mxu2 %v2978_v24  ;;  %v3088_v24 = vld [vmem:[%s4227_s30 + $0x158] sm:$0xff] }
  0x77   : > { %1239 = vmatpush.bf16.msra.mxu1 %v2990_v50  ;;  %3140 = vmatpush.bf16.msra.mxu3 %v2990_v50 }
  0x78   : > { %912 = vmatmul.bf16.vlgmr.msra.gmra.mxu0 %v3045_v25  ;;  %1112 = vmatmul.bf16.vlgmr.msra.gmra.mxu2 %v3085_v3 }
  0x7b   : > { %1240 = vmatpush.bf16.msra.mxu1 %v2982_v53  ;;  %3141 = vmatpush.bf16.msra.mxu3 %v2982_v53 }
  0x7e   : > { %1241 = vmatmul.bf16.vlgmr.msra.gmra.mxu1 %v3045_v25  ;;  %1441 = vmatmul.bf16.vlgmr.msra.gmra.mxu3 %v3085_v3 }
  0x88   : > { %917 = vmatmul.bf16.gmra.mxu0 %v3046_v26  ;;  %1117 = vmatmul.bf16.gmra.mxu2 %v3086_v10 }
  0x8e   : > { %1246 = vmatmul.bf16.gmra.mxu1 %v3046_v26  ;;  %1446 = vmatmul.bf16.gmra.mxu3 %v3086_v10 }
  0x98   : > { %922 = vmatmul.bf16.gmra.mxu0 %v3047_v27  ;;  %1122 = vmatmul.bf16.gmra.mxu2 %v3087_v17 }
  0x9e   : > { %1251 = vmatmul.bf16.gmra.mxu1 %v3047_v27  ;;  %1451 = vmatmul.bf16.gmra.mxu3 %v3087_v17  ;;  %v4290_v27 = vld [vmem:[%s4227_s30 + $0x68] sm:$0xff] }
  0xa8   : > { %927 = vmatmul.bf16.gmra.mxu0 %v3048_v31  ;;  %1127 = vmatmul.bf16.gmra.mxu2 %v3088_v24 }
  0xae   : > { %1256 = vmatmul.bf16.gmra.mxu1 %v3048_v31  ;;  %1456 = vmatmul.bf16.gmra.mxu3 %v3088_v24 }
  0xb8   : > { %932 = vmatmul.bf16.gmra.mxu0 %v3049_v44  ;;  %1132 = vmatmul.bf16.gmra.mxu2 %v3089_v30 }
  0xbe   : > { %1261 = vmatmul.bf16.gmra.mxu1 %v3049_v44  ;;  %1461 = vmatmul.bf16.gmra.mxu3 %v3089_v30 }
  0xc8   : > { %937 = vmatmul.bf16.gmra.mxu0 %v3050_v54  ;;  %1137 = vmatmul.bf16.gmra.mxu2 %v3090_v39 }
  0xce   : > { %1266 = vmatmul.bf16.gmra.mxu1 %v3050_v54  ;;  %1466 = vmatmul.bf16.gmra.mxu3 %v3090_v39 }
  0xd8   : > { %942 = vmatmul.bf16.gmra.mxu0 %v3051_v55  ;;  %1142 = vmatmul.bf16.gmra.mxu2 %v3091_v51 }
  0xde   : > { %1271 = vmatmul.bf16.gmra.mxu1 %v3051_v55  ;;  %1471 = vmatmul.bf16.gmra.mxu3 %v3091_v51 }
  0xe8   : > { %947 = vmatmul.bf16.gmra.mxu0 %v3052_v56 }
  0xee   : > { %1276 = vmatmul.bf16.gmra.mxu1 %v3052_v56 }
  0xf5   : > { %v913_v58 = vpop.f32.mrf.mxu0 }
  0xf6   : > { %v914_v62 = vadd.f32 %v913_v58, %v4257_v60 }
  0xf8   : > { %952 = vmatmul.bf16.gmra.mxu0 %v3053_v57 }
  0xfb   : > { %v1242_v26 = vpop.f32.mrf.mxu1 }
  0xfc   : > { %v1243_v31 = vadd.f32 %v1242_v26, %v4292_v29 }
  0xfd   : > { %v915_v61 = vpop.f32.mrf.mxu0 }
  0xfe   : > { %v916_v63 = vadd.f32 %v915_v61, %v4257_v60  ;;  %1281 = vmatmul.bf16.gmra.mxu1 %v3053_v57 }
 0x100   : > { %v4261_v0 = vpack.c.bf16 %v916_v63, %v914_v62 }
 0x103   : > { %v1244_v32 = vpop.f32.mrf.mxu1 }
 0x104   : > { %v1245_v33 = vadd.f32 %v1244_v32, %v4292_v29 }
 0x105   : > { %v918_v2 = vpop.f32.mrf.mxu0 }
 0x106   : > { %v919_v5 = vadd.f32 %v918_v2, %v4257_v60  ;;  %v4298_v35 = vpack.c.bf16 %v1245_v33, %v1243_v31 }
 0x108   : > { %957 = vmatmul.bf16.gmra.mxu0 %v3054_v1  ;;  %5429 = vst [vmem:[#allocation21_spill] sm:$0xff] %v4298_v35 }
 0x10b   : > { %v1247_v36 = vpop.f32.mrf.mxu1 }
 0x10c   : > { %v1248_v40 = vadd.f32 %v1247_v36, %v4292_v29 }
 0x10d   : > { %v920_v4 = vpop.f32.mrf.mxu0 }
 0x10e   : > { %v921_v6 = vadd.f32 %v920_v4, %v4257_v60  ;;  %1286 = vmatmul.bf16.gmra.mxu1 %v3054_v1 }
 0x110   : > { %v4267_v7 = vpack.c.bf16 %v921_v6, %v919_v5 }
 0x112   : > { %v1694_v51 = vunpack.c.l.bf16 %v4267_v7 }
 0x113   : > { %v1249_v41 = vpop.f32.mrf.mxu1 }
 0x114   : > { %v1250_v42 = vadd.f32 %v1249_v41, %v4292_v29 }
 0x115   : > { %v923_v9 = vpop.f32.mrf.mxu0 }
 0x116   : > { %v924_v12 = vadd.f32 %v923_v9, %v4257_v60  ;;  %v4307_v44 = vpack.c.bf16 %v1250_v42, %v1248_v40  ;;  %v4327_v9 = vld [vmem:[%s4227_s30 + $0x80] sm:$0xff] }
 0x118   : > { %962 = vmatmul.bf16.gmra.mxu0 %v3055_v8  ;;  %5430 = vst [vmem:[#allocation22_spill] sm:$0xff] %v4307_v44 }
 0x11b   : > { %v1252_v45 = vpop.f32.mrf.mxu1 }
 0x11c   : > { %v1253_v48 = vadd.f32 %v1252_v45, %v4292_v29 }
 0x11d   : > { %v925_v11 = vpop.f32.mrf.mxu0 }
 0x11e   : > { %v926_v13 = vadd.f32 %v925_v11, %v4257_v60  ;;  %1291 = vmatmul.bf16.gmra.mxu1 %v3055_v8 }
 0x120   : > { %v4273_v14 = vpack.c.bf16 %v926_v13, %v924_v12 }
 0x122   : > { %v1698_v42 = vunpack.c.l.bf16 %v4273_v14  ;;  %v1700_v45 = vunpack.c.h.bf16 %v4273_v14 }
 0x123   : > { %v1254_v50 = vpop.f32.mrf.mxu1 }
 0x124   : > { %v1255_v52 = vadd.f32 %v1254_v50, %v4292_v29 }
 0x125   : > { %v928_v16 = vpop.f32.mrf.mxu0 }
 0x126   : > { %v929_v19 = vadd.f32 %v928_v16, %v4257_v60  ;;  %v4318_v55 = vpack.c.bf16 %v1255_v52, %v1253_v48  ;;  %v1696_v52 = vunpack.c.h.bf16 %v4267_v7 }
 0x128   : > { %967 = vmatmul.bf16.gmra.mxu0 %v4276_v15  ;;  %5431 = vst [vmem:[#allocation23_spill] sm:$0xff] %v4318_v55 }
 0x12b   : > { %v1257_v5 = vpop.f32.mrf.mxu1 }
 0x12c   : > { %v1258_v16 = vadd.f32 %v1257_v5, %v4292_v29 }
 0x12d   : > { %v930_v18 = vpop.f32.mrf.mxu0 }
 0x12e   : > { %v931_v20 = vadd.f32 %v930_v18, %v4257_v60  ;;  %1296 = vmatmul.bf16.gmra.mxu1 %v4276_v15 }
 0x130   : > { %v4282_v21 = vpack.c.bf16 %v931_v20, %v929_v19  ;;  %v3092_v20 = vld [vmem:[%s4227_s30 + $0x178] sm:$0xff] }
 0x131   : > { %1147 = vmatmul.bf16.gmra.mxu2 %v3092_v20  ;;  %1476 = vmatmul.bf16.gmra.mxu3 %v3092_v20 }
 0x132   : > { %v1702_v32 = vunpack.c.l.bf16 %v4282_v21  ;;  %v1704_v36 = vunpack.c.h.bf16 %v4282_v21 }
 0x133   : > { %v1259_v19 = vpop.f32.mrf.mxu1 }
 0x134   : > { %v1260_v15 = vadd.f32 %v1259_v19, %v4292_v29 }
 0x135   : > { %v933_v23 = vpop.f32.mrf.mxu0 }
 0x136   : > { %v934_v8 = vadd.f32 %v933_v23, %v4257_v60  ;;  %v4334_v31 = vpack.c.bf16 %v1260_v15, %v1258_v16  ;;  %v4363_v16 = vld [vmem:[%s4227_s30 + $0x90] sm:$0xff] }
 0x138   : > { %972 = vmatmul.bf16.gmra.mxu0 %v4285_v22  ;;  %5432 = vst [vmem:[#allocation24_spill] sm:$0xff] %v4334_v31 }
 0x13d   : > { %v935_v25 = vpop.f32.mrf.mxu0 }
 0x13e   : > { %v936_v63 = vadd.f32 %v935_v25, %v4257_v60  ;;  %1301 = vmatmul.bf16.gmra.mxu1 %v4285_v22 }
 0x140   : > { %v1570_v11 = vpack.c.bf16 %v936_v63, %v934_v8  ;;  %v1113_v8 = vpop.f32.mrf.mxu2 }
 0x141   : > { %v1114_v19 = vadd.f32 %v1113_v8, %v4257_v60 }
 0x142   : > { %v1706_v18 = vunpack.c.l.bf16 %v1570_v11  ;;  %v1708_v24 = vunpack.c.h.bf16 %v1570_v11 }
 0x145   : > { %v938_v28 = vpop.f32.mrf.mxu0 }
 0x146   : > { %v939_v61 = vadd.f32 %v938_v28, %v4257_v60 }
 0x148   : > { %977 = vmatmul.bf16.gmra.mxu0 %v4290_v27 }
 0x14d   : > { %v940_v34 = vpop.f32.mrf.mxu0 }
 0x14e   : > { %v941_v56 = vadd.f32 %v940_v34, %v4257_v60  ;;  %1306 = vmatmul.bf16.gmra.mxu1 %v4290_v27 }
 0x150   : > { %v1572_v1 = vpack.c.bf16 %v941_v56, %v939_v61 }
 0x152   : > { %v1710_v12 = vunpack.c.l.bf16 %v1572_v1  ;;  %v1712_v13 = vunpack.c.h.bf16 %v1572_v1 }
 0x155   : > { %v943_v38 = vpop.f32.mrf.mxu0 }
 0x156   : > { %v944_v53 = vadd.f32 %v943_v38, %v4257_v60 }
 0x158   : > { %982 = vmatmul.bf16.gmra.mxu0 %v4301_v37 }
 0x15d   : > { %v945_v43 = vpop.f32.mrf.mxu0 }
 0x15e   : > { %v946_v49 = vadd.f32 %v945_v43, %v4257_v60  ;;  %v1262_v43 = vpop.f32.mrf.mxu1  ;;  %1311 = vmatmul.bf16.gmra.mxu1 %v4301_v37 }
 0x160   : > { %v1574_v57 = vpack.c.bf16 %v946_v49, %v944_v53  ;;  %v4345_v49 = vld [vmem:[%s4227_s30 + $0x88] sm:$0xff] }
 0x162   : > { %v1714_v2 = vunpack.c.l.bf16 %v1574_v57  ;;  %v1716_v6 = vunpack.c.h.bf16 %v1574_v57  ;;  %v1263_v57 = vadd.f32 %v1262_v43, %v4292_v29 }
 0x165   : > { %v948_v47 = vpop.f32.mrf.mxu0 }
 0x166   : > { %v949_v58 = vadd.f32 %v948_v47, %v4257_v60  ;;  %v1264_v22 = vpop.f32.mrf.mxu1 }
 0x167   : > { %v1265_v61 = vadd.f32 %v1264_v22, %v4292_v29  ;;  %v4399_v22 = vld [vmem:[%s4227_s30 + $0xa0] sm:$0xff] }
 0x168   : > { %987 = vmatmul.bf16.gmra.mxu0 %v4310_v46 }
 0x16d   : > { %v950_v54 = vpop.f32.mrf.mxu0 }
 0x16e   : > { %v951_v59 = vadd.f32 %v950_v54, %v4257_v60  ;;  %v3093_v54 = vld [vmem:[%s4227_s30 + $0x180] sm:$0xff]  ;;  %v1267_v11 = vpop.f32.mrf.mxu1  ;;  %1316 = vmatmul.bf16.gmra.mxu1 %v4310_v46 }
 0x16f   : > { %1152 = vmatmul.bf16.gmra.mxu2 %v3093_v54  ;;  %1481 = vmatmul.bf16.gmra.mxu3 %v3093_v54  ;;  %v1268_v15 = vadd.f32 %v1267_v11, %v4292_v29  ;;  %v4415_v11 = vld [vmem:[%s4227_s30 + $0xa8] sm:$0xff] }
 0x170   : > { %v1576_v62 = vpack.c.bf16 %v951_v59, %v949_v58  ;;  %v1690_v58 = vunpack.c.l.bf16 %v4261_v0  ;;  %v1692_v59 = vunpack.c.h.bf16 %v4261_v0 }
 0x172   : > { %v1718_v3 = vunpack.c.l.bf16 %v1576_v62  ;;  %v1720_v4 = vunpack.c.h.bf16 %v1576_v62 }
 0x174   : > { %3280 = vtanh.f32 %v1718_v3 }
 0x175   : > { %3282 = vtanh.f32 %v1720_v4  ;;  %v953_v10 = vpop.f32.mrf.mxu0 }
 0x176   : > { %3284 = vtanh.f32 %v1714_v2  ;;  %v954_v33 = vadd.f32 %v953_v10, %v4257_v60  ;;  %v4356_v2 = vpack.c.bf16 %v1265_v61, %v1263_v57 }
 0x177   : > { %3286 = vtanh.f32 %v1716_v6 }
 0x178   : > { %992 = vmatmul.bf16.gmra.mxu0 %v4327_v9  ;;  %3288 = vtanh.f32 %v1710_v12  ;;  %5433 = vst [vmem:[#allocation25_spill] sm:$0xff] %v4356_v2  ;;  %v4656_v2 = vld [vmem:[%s4227_s30 + $0xf8] sm:$0xff] }
 0x179   : > { %3290 = vtanh.f32 %v1712_v13 }
 0x17a   : > { %v3281_v17 = vpop.eup %3280  ;;  %3292 = vtanh.f32 %v1706_v18 }
 0x17b   : > { %v3283_v23 = vpop.eup %3282  ;;  %3294 = vtanh.f32 %v1708_v24  ;;  %v3094_v24 = vld [vmem:[%s4227_s30 + $0x188] sm:$0xff] }
 0x17c   : > { %v3285_v25 = vpop.eup %3284  ;;  %v2216_v26 = vpack.c.bf16 %v3283_v23, %v3281_v17  ;;  %3296 = vtanh.f32 %v1702_v32  ;;  %v1115_v23 = vpop.f32.mrf.mxu2 }
 0x17d   : > { %v3287_v28 = vpop.eup %3286  ;;  %v955_v30 = vpop.f32.mrf.mxu0  ;;  %3298 = vtanh.f32 %v1704_v36 }
 0x17e   : > { %v956_v34 = vadd.f32 %v955_v30, %v4257_v60  ;;  %2354 = vmatpush.bf16.msrb.mxu2 %v2216_v26  ;;  %v3289_v38 = vpop.eup %3288  ;;  %v2214_v40 = vpack.c.bf16 %v3287_v28, %v3285_v25  ;;  %3300 = vtanh.f32 %v1698_v42  ;;  %v1116_v25 = vadd.f32 %v1115_v23, %v4257_v60  ;;  %v1269_v26 = vpop.f32.mrf.mxu1  ;;  %1321 = vmatmul.bf16.gmra.mxu1 %v4327_v9 }
 0x17f   : > { %v3291_v41 = vpop.eup %3290  ;;  %3302 = vtanh.f32 %v1700_v45  ;;  %v1270_v27 = vadd.f32 %v1269_v26, %v4292_v29  ;;  %1157 = vmatmul.bf16.gmra.mxu2 %v3094_v24  ;;  %1486 = vmatmul.bf16.gmra.mxu3 %v3094_v24 }
 0x180   : > { %v4340_v39 = vpack.c.bf16 %v956_v34, %v954_v33  ;;  %v3293_v47 = vpop.eup %3292  ;;  %v2212_v48 = vpack.c.bf16 %v3291_v41, %v3289_v38  ;;  %3304 = vtanh.f32 %v1694_v51  ;;  %v4371_v28 = vpack.c.bf16 %v1116_v25, %v1114_v19  ;;  %v4381_v41 = vld [vmem:[%s4227_s30 + $0x98] sm:$0xff] }
 0x181   : > { %v3295_v21 = vpop.eup %3294  ;;  %3306 = vtanh.f32 %v1696_v52  ;;  %v4374_v32 = vpack.c.bf16 %v1270_v27, %v1268_v15 }
 0x182   : > { %2355 = vmatpush.bf16.msrb.mxu2 %v2214_v40  ;;  %v3297_v53 = vpop.eup %3296  ;;  %v2210_v14 = vpack.c.bf16 %v3295_v21, %v3293_v47  ;;  %3308 = vtanh.f32 %v1690_v58  ;;  %v3095_v47 = vld [vmem:[%s4227_s30 + $0x190] sm:$0xff] }
 0x183   : > { %v3299_v56 = vpop.eup %3298  ;;  %3310 = vtanh.f32 %v1692_v59  ;;  %5434 = vst [vmem:[#allocation26_spill] sm:$0xff] %v4374_v32 }
 0x184   : > { %v3301_v7 = vpop.eup %3300  ;;  %v2208_v62 = vpack.c.bf16 %v3299_v56, %v3297_v53  ;;  %v1118_v38 = vpop.f32.mrf.mxu2 }
 0x185   : > { %v958_v50 = vpop.f32.mrf.mxu0  ;;  %v3303_v63 = vpop.eup %3302  ;;  %v1119_v43 = vadd.f32 %v1118_v38, %v4257_v60 }
 0x186   : > { %2356 = vmatpush.bf16.msrb.mxu2 %v2212_v48  ;;  %v959_v3 = vadd.f32 %v958_v50, %v4257_v60  ;;  %v3305_v0 = vpop.eup %3304  ;;  %v2206_v6 = vpack.c.bf16 %v3303_v63, %v3301_v7  ;;  %v1272_v40 = vpop.f32.mrf.mxu1 }
 0x187   : > { %v3307_v10 = vpop.eup %3306  ;;  %v1273_v48 = vadd.f32 %v1272_v40, %v4292_v29  ;;  %v4438_v40 = vld [vmem:[%s4227_s30 + $0x1a8] sm:$0xff] }
 0x188   : > { %997 = vmatmul.bf16.gmra.mxu0 %v4345_v49  ;;  %v3309_v12 = vpop.eup %3308  ;;  %v2204_v13 = vpack.c.bf16 %v3307_v10, %v3305_v0 }
 0x189   : > { %v3311_v17 = vpop.eup %3310 }
 0x18a   : > { %2357 = vmatpush.bf16.msrb.mxu2 %v2210_v14  ;;  %v2202_v20 = vpack.c.bf16 %v3311_v17, %v3309_v12 }
 0x18c   : > { %v1120_v45 = vpop.f32.mrf.mxu2 }
 0x18d   : > { %v960_v1 = vpop.f32.mrf.mxu0  ;;  %v1121_v21 = vadd.f32 %v1120_v45, %v4257_v60 }
 0x18e   : > { %v961_v4 = vadd.f32 %v960_v1, %v4257_v60  ;;  %2358 = vmatpush.bf16.msrb.mxu2 %v2208_v62  ;;  %v1274_v50 = vpop.f32.mrf.mxu1  ;;  %v3096_v62 = vld [vmem:[%s4227_s30 + $0x198] sm:$0xff]  ;;  %1326 = vmatmul.bf16.gmra.mxu1 %v4345_v49 }
 0x18f   : > { %v4389_v51 = vpack.c.bf16 %v1121_v21, %v1119_v43  ;;  %v1275_v52 = vadd.f32 %v1274_v50, %v4292_v29  ;;  %1162 = vmatmul.bf16.gmra.mxu2 %v3095_v47  ;;  %1491 = vmatmul.bf16.gmra.mxu3 %v3095_v47 }
 0x190   : > { %v4360_v5 = vpack.c.bf16 %v961_v4, %v959_v3 }
 0x191   : > { %v4392_v53 = vpack.c.bf16 %v1275_v52, %v1273_v48 }
 0x192   : > { %2359 = vmatpush.bf16.msrb.mxu2 %v2206_v6 }
 0x194   : > { %v1123_v57 = vpop.f32.mrf.mxu2 }
 0x195   : > { %v963_v18 = vpop.f32.mrf.mxu0  ;;  %v1124_v61 = vadd.f32 %v1123_v57, %v4257_v60 }
 0x196   : > { %2360 = vmatpush.bf16.msrb.mxu2 %v2204_v13  ;;  %v964_v33 = vadd.f32 %v963_v18, %v4257_v60  ;;  %v1277_v58 = vpop.f32.mrf.mxu1  ;;  %v4421_v18 = vld [vmem:[%s4227_s30 + $0x1a0] sm:$0xff] }
 0x197   : > { %v1278_v63 = vadd.f32 %v1277_v58, %v4292_v29 }
 0x198   : > { %1002 = vmatmul.bf16.gmra.mxu0 %v4363_v16 }
 0x19a   : > { %2361 = vmatpush.bf16.msrb.mxu2 %v2202_v20 }
 0x19c   : > { %v1125_v7 = vpop.f32.mrf.mxu2 }
 0x19d   : > { %v965_v30 = vpop.f32.mrf.mxu0  ;;  %v1126_v1 = vadd.f32 %v1125_v7, %v4257_v60 }
 0x19e   : > { %v966_v34 = vadd.f32 %v965_v30, %v4257_v60  ;;  %v1279_v3 = vpop.f32.mrf.mxu1  ;;  %v4432_v30 = vld [vmem:[%s4227_s30 + $0xb0] sm:$0xff]  ;;  %1331 = vmatmul.bf16.gmra.mxu1 %v4363_v16 }
 0x19f   : > { %v4409_v4 = vpack.c.bf16 %v1126_v1, %v1124_v61  ;;  %v1280_v0 = vadd.f32 %v1279_v3, %v4292_v29  ;;  %1167 = vmatmul.bf16.gmra.mxu2 %v3096_v62  ;;  %1496 = vmatmul.bf16.gmra.mxu3 %v3096_v62 }
 0x1a0   : > { %v4378_v36 = vpack.c.bf16 %v966_v34, %v964_v33 }
 0x1a1   : > { %v4412_v6 = vpack.c.bf16 %v1280_v0, %v1278_v63  ;;  %v4458_v63 = vld [vmem:[%s4227_s30 + $0x1b0] sm:$0xff] }
 0x1a4   : > { %v1128_v8 = vpop.f32.mrf.mxu2 }
 0x1a5   : > { %v968_v42 = vpop.f32.mrf.mxu0  ;;  %v1129_v13 = vadd.f32 %v1128_v8, %v4257_v60 }
 0x1a6   : > { %v969_v14 = vadd.f32 %v968_v42, %v4257_v60  ;;  %v1282_v10 = vpop.f32.mrf.mxu1 }
 0x1a7   : > { %v1283_v19 = vadd.f32 %v1282_v10, %v4292_v29 }
 0x1a8   : > { %1007 = vmatmul.bf16.gmra.mxu0 %v4381_v41 }
 0x1ac   : > { %v1130_v17 = vpop.f32.mrf.mxu2 }
 0x1ad   : > { %v970_v37 = vpop.f32.mrf.mxu0  ;;  %v1131_v20 = vadd.f32 %v1130_v17, %v4257_v60 }
 0x1ae   : > { %v971_v54 = vadd.f32 %v970_v37, %v4257_v60  ;;  %v1284_v23 = vpop.f32.mrf.mxu1  ;;  %v4449_v37 = vld [vmem:[%s4227_s30 + $0xb8] sm:$0xff]  ;;  %1336 = vmatmul.bf16.gmra.mxu1 %v4381_v41 }
 0x1af   : > { %v4425_v24 = vpack.c.bf16 %v1131_v20, %v1129_v13  ;;  %v1285_v15 = vadd.f32 %v1284_v23, %v4292_v29  ;;  %1172 = vmatmul.bf16.gmra.mxu2 %v4421_v18 }
 0x1b0   : > { %v4396_v56 = vpack.c.bf16 %v971_v54, %v969_v14 }
 0x1b1   : > { %v4429_v25 = vpack.c.bf16 %v1285_v15, %v1283_v19 }
 0x1b4   : > { %v1133_v26 = vpop.f32.mrf.mxu2 }
 0x1b5   : > { %v4402_v59 = vpop.f32.mrf.mxu0  ;;  %v1134_v34 = vadd.f32 %v1133_v26, %v4257_v60 }
 0x1b6   : > { %v1287_v27 = vpop.f32.mrf.mxu1 }
 0x1b7   : > { %v1288_v42 = vadd.f32 %v1287_v27, %v4292_v29 }
 0x1b8   : > { %1012 = vmatmul.bf16.gmra.mxu0 %v4399_v22 }
 0x1bc   : > { %v1135_v38 = vpop.f32.mrf.mxu2 }
 0x1bd   : > { %v975_v46 = vpop.f32.mrf.mxu0  ;;  %v1136_v43 = vadd.f32 %v1135_v38, %v4257_v60 }
 0x1be   : > { %v1289_v45 = vpop.f32.mrf.mxu1  ;;  %v976_v26 = vadd.f32 %v975_v46, %v4257_v60  ;;  %1341 = vmatmul.bf16.gmra.mxu1 %v4399_v22 }
 0x1bf   : > { %v4442_v47 = vpack.c.bf16 %v1136_v43, %v1134_v34  ;;  %v1290_v48 = vadd.f32 %v1289_v45, %v4292_v29  ;;  %1177 = vmatmul.bf16.gmra.mxu2 %v4438_v40  ;;  %v4475_v45 = vld [vmem:[%s4227_s30 + $0xc0] sm:$0xff] }
 0x1c1   : > { %v4446_v21 = vpack.c.bf16 %v1290_v48, %v1288_v42 }
 0x1c4   : > { %v1138_v50 = vpop.f32.mrf.mxu2 }
 0x1c5   : > { %v978_v12 = vpop.f32.mrf.mxu0  ;;  %v1139_v54 = vadd.f32 %v1138_v50, %v4257_v60 }
 0x1c6   : > { %v1292_v52 = vpop.f32.mrf.mxu1  ;;  %v979_v20 = vadd.f32 %v978_v12, %v4257_v60 }
 0x1c7   : > { %v1293_v58 = vadd.f32 %v1292_v52, %v4292_v29 }
 0x1c8   : > { %1017 = vmatmul.bf16.gmra.mxu0 %v4415_v11 }
 0x1cc   : > { %v1140_v57 = vpop.f32.mrf.mxu2 }
 0x1cd   : > { %v980_v9 = vpop.f32.mrf.mxu0  ;;  %v1141_v61 = vadd.f32 %v1140_v57, %v4257_v60 }
 0x1ce   : > { %v1294_v62 = vpop.f32.mrf.mxu1  ;;  %v981_v10 = vadd.f32 %v980_v9, %v4257_v60  ;;  %v974_v9 = vadd.f32 %v4402_v59, %v4257_v60  ;;  %1346 = vmatmul.bf16.gmra.mxu1 %v4415_v11 }
 0x1cf   : > { %v4460_v1 = vpack.c.bf16 %v1141_v61, %v1139_v54  ;;  %v1295_v3 = vadd.f32 %v1294_v62, %v4292_v29  ;;  %1182 = vmatmul.bf16.gmra.mxu2 %v4458_v63 }
 0x1d0   : > { %v1588_v27 = vpack.c.bf16 %v981_v10, %v979_v20  ;;  %v1586_v48 = vpack.c.bf16 %v976_v26, %v974_v9  ;;  %v1732_v9 = vunpack.c.h.bf16 %v4378_v36 }
 0x1d1   : > { %v4465_v8 = vpack.c.bf16 %v1295_v3, %v1293_v58  ;;  %v4483_v58 = vld [vmem:[%s4227_s30 + $0x1b8] sm:$0xff] }
 0x1d2   : > { %v1744_v46 = vunpack.c.h.bf16 %v1588_v27  ;;  %v1738_v57 = vunpack.c.l.bf16 %v1586_v48 }
 0x1d4   : > { %v1143_v15 = vpop.f32.mrf.mxu2 }
 0x1d5   : > { %v983_v33 = vpop.f32.mrf.mxu0  ;;  %v1144_v50 = vadd.f32 %v1143_v15, %v4257_v60  ;;  %v1736_v15 = vunpack.c.h.bf16 %v4396_v56 }
 0x1d6   : > { %v984_v16 = vadd.f32 %v983_v33, %v4257_v60  ;;  %v1297_v42 = vpop.f32.mrf.mxu1 }
 0x1d7   : > { %v1298_v59 = vadd.f32 %v1297_v42, %v4292_v29  ;;  %v1730_v42 = vunpack.c.l.bf16 %v4378_v36 }
 0x1d8   : > { %1022 = vmatmul.bf16.gmra.mxu0 %v4432_v30 }
 0x1dc   : > { %v1145_v52 = vpop.f32.mrf.mxu2 }
 0x1dd   : > { %v985_v49 = vpop.f32.mrf.mxu0 }
 0x1de   : > { %v986_v7 = vadd.f32 %v985_v49, %v4257_v60  ;;  %v1742_v49 = vunpack.c.l.bf16 %v1588_v27  ;;  %v1299_v41 = vpop.f32.mrf.mxu1  ;;  %1351 = vmatmul.bf16.gmra.mxu1 %v4432_v30 }
 0x1df   : > { %v1300_v3 = vadd.f32 %v1299_v41, %v4292_v29  ;;  %1187 = vmatmul.bf16.gmra.mxu2 %v4483_v58  ;;  %v4508_v41 = vld [vmem:[%s4227_s30 + $0x1c0] sm:$0xff] }
 0x1e0   : > { %v1590_v13 = vpack.c.bf16 %v986_v7, %v984_v16  ;;  %v1740_v7 = vunpack.c.h.bf16 %v1586_v48 }
 0x1e2   : > { %v1746_v33 = vunpack.c.l.bf16 %v1590_v13  ;;  %v1748_v43 = vunpack.c.h.bf16 %v1590_v13 }
 0x1e5   : > { %v988_v14 = vpop.f32.mrf.mxu0 }
 0x1e6   : > { %v989_v17 = vadd.f32 %v988_v14, %v4257_v60  ;;  %v1146_v14 = vadd.f32 %v1145_v52, %v4257_v60  ;;  %v1726_v52 = vunpack.c.l.bf16 %v4360_v5 }
 0x1e8   : > { %1027 = vmatmul.bf16.gmra.mxu0 %v4449_v37  ;;  %v4485_v62 = vpack.c.bf16 %v1146_v14, %v1144_v50 }
 0x1ed   : > { %v990_v0 = vpop.f32.mrf.mxu0 }
 0x1ee   : > { %v991_v19 = vadd.f32 %v990_v0, %v4257_v60  ;;  %1356 = vmatmul.bf16.gmra.mxu1 %v4449_v37 }
 0x1ef   : > { %1192 = vmatmul.bf16.gmra.mxu2 %v4508_v41 }
 0x1f0   : > { %v1592_v23 = vpack.c.bf16 %v991_v19, %v989_v17  ;;  %v4489_v17 = vpack.c.bf16 %v1300_v3, %v1298_v59  ;;  %v1734_v19 = vunpack.c.l.bf16 %v4396_v56  ;;  %v1442_v56 = vpop.f32.mrf.mxu3  ;;  %v1728_v59 = vunpack.c.h.bf16 %v4360_v5 }
 0x1f1   : > { %v1722_v3 = vunpack.c.l.bf16 %v4340_v39 }
 0x1f2   : > { %v1750_v34 = vunpack.c.l.bf16 %v1592_v23  ;;  %v1752_v38 = vunpack.c.h.bf16 %v1592_v23 }
 0x1f4   : > { %3312 = vtanh.f32 %v1750_v34  ;;  %v1148_v34 = vpop.f32.mrf.mxu2 }
 0x1f5   : > { %3314 = vtanh.f32 %v1752_v38  ;;  %v993_v12 = vpop.f32.mrf.mxu0  ;;  %v1149_v36 = vadd.f32 %v1148_v34, %v4257_v60 }
 0x1f6   : > { %3316 = vtanh.f32 %v1746_v33  ;;  %v994_v20 = vadd.f32 %v993_v12, %v4257_v60 }
 0x1f7   : > { %3318 = vtanh.f32 %v1748_v43  ;;  %v1302_v43 = vpop.f32.mrf.mxu1 }
 0x1f8   : > { %1032 = vmatmul.bf16.gmra.mxu0 %v4475_v45  ;;  %3320 = vtanh.f32 %v1742_v49  ;;  %v4500_v49 = vld [vmem:[%s4227_s30 + $0xc8] sm:$0xff]  ;;  %v1303_v22 = vadd.f32 %v1302_v43, %v4292_v29 }
 0x1f9   : > { %3322 = vtanh.f32 %v1744_v46 }
 0x1fa   : > { %v3313_v54 = vpop.eup %3312  ;;  %3324 = vtanh.f32 %v1738_v57 }
 0x1fb   : > { %v3315_v61 = vpop.eup %3314  ;;  %3326 = vtanh.f32 %v1740_v7 }
 0x1fc   : > { %v3317_v16 = vpop.eup %3316  ;;  %v2232_v0 = vpack.c.bf16 %v3315_v61, %v3313_v54  ;;  %3328 = vtanh.f32 %v1734_v19  ;;  %v1150_v57 = vpop.f32.mrf.mxu2 }
 0x1fd   : > { %v3319_v10 = vpop.eup %3318  ;;  %v995_v13 = vpop.f32.mrf.mxu0  ;;  %3330 = vtanh.f32 %v1736_v15  ;;  %v1151_v7 = vadd.f32 %v1150_v57, %v4257_v60 }
 0x1fe   : > { %v996_v23 = vadd.f32 %v995_v13, %v4257_v60  ;;  %2367 = vmatpush.bf16.msrb.mxu3 %v2232_v0  ;;  %v3321_v26 = vpop.eup %3320  ;;  %v2230_v33 = vpack.c.bf16 %v3319_v10, %v3317_v16  ;;  %3332 = vtanh.f32 %v1730_v42  ;;  %v1724_v16 = vunpack.c.h.bf16 %v4340_v39 }
 0x1ff   : > { %v3323_v38 = vpop.eup %3322  ;;  %3334 = vtanh.f32 %v1732_v9  ;;  %v1304_v5 = vpop.f32.mrf.mxu1  ;;  %v1443_v0 = vadd.f32 %v1442_v56, %v4292_v29  ;;  %v4515_v10 = vpack.c.bf16 %v1151_v7, %v1149_v36  ;;  %1361 = vmatmul.bf16.gmra.mxu1 %v4475_v45 }
 0x200   : > { %v4495_v27 = vpack.c.bf16 %v996_v23, %v994_v20  ;;  %v3325_v12 = vpop.eup %3324  ;;  %v2228_v48 = vpack.c.bf16 %v3323_v38, %v3321_v26  ;;  %3336 = vtanh.f32 %v1726_v52  ;;  %v1305_v13 = vadd.f32 %v1304_v5, %v4292_v29  ;;  %v1444_v23 = vpop.f32.mrf.mxu3  ;;  %1501 = vmatmul.bf16.gmra.mxu3 %v4421_v18 }
 0x201   : > { %v3327_v46 = vpop.eup %3326  ;;  %3338 = vtanh.f32 %v1728_v59  ;;  %v4530_v59 = vld [vmem:[%s4227_s30 + $0xd0] sm:$0xff] }
 0x202   : > { %2368 = vmatpush.bf16.msrb.mxu3 %v2230_v33  ;;  %v3329_v14 = vpop.eup %3328  ;;  %v2226_v54 = vpack.c.bf16 %v3327_v46, %v3325_v12  ;;  %v4520_v39 = vpack.c.bf16 %v1305_v13, %v1303_v22  ;;  %v1445_v33 = vadd.f32 %v1444_v23, %v4292_v29  ;;  %3340 = vtanh.f32 %v1722_v3  ;;  %v4536_v22 = vld [vmem:[%s4227_s30 + $0x1c8] sm:$0xff] }
 0x203   : > { %v3331_v61 = vpop.eup %3330  ;;  %3342 = vtanh.f32 %v1724_v16  ;;  %1197 = vmatmul.bf16.gmra.mxu2 %v4536_v22 }
 0x204   : > { %v3333_v19 = vpop.eup %3332  ;;  %v2224_v20 = vpack.c.bf16 %v3331_v61, %v3329_v14  ;;  %v4525_v42 = vpack.c.bf16 %v1445_v33, %v1443_v0  ;;  %v1153_v12 = vpop.f32.mrf.mxu2 }
 0x205   : > { %v998_v50 = vpop.f32.mrf.mxu0  ;;  %v3335_v15 = vpop.eup %3334 }
 0x206   : > { %2369 = vmatpush.bf16.msrb.mxu3 %v2228_v48  ;;  %v999_v34 = vadd.f32 %v998_v50, %v4257_v60  ;;  %5435 = vst [vmem:[#allocation27_spill] sm:$0xff] %v4525_v42  ;;  %v3337_v43 = vpop.eup %3336  ;;  %v2222_v18 = vpack.c.bf16 %v3335_v15, %v3333_v19  ;;  %v2331_v42 = vld [vmem:[#allocation8] sm:$0xff] }
 0x207   : > { %v3339_v48 = vpop.eup %3338  ;;  %v1307_v56 = vpop.f32.mrf.mxu1  ;;  %2334 = vst [vmem:[#allocation1] ss:$4 sm:$0xff] %v2331_v42 }
 0x208   : > { %1037 = vmatmul.bf16.gmra.mxu0 %v4500_v49  ;;  %v3341_v46 = vpop.eup %3340  ;;  %v2220_v52 = vpack.c.bf16 %v3339_v48, %v3337_v43  ;;  %v1447_v50 = vpop.f32.mrf.mxu3  ;;  %v1308_v7 = vadd.f32 %v1307_v56, %v4292_v29 }
 0x209   : > { %v3343_v36 = vpop.eup %3342  ;;  %v1448_v11 = vadd.f32 %v1447_v50, %v4292_v29 }
 0x20a   : > { %2370 = vmatpush.bf16.msrb.mxu3 %v2226_v54  ;;  %v1154_v54 = vadd.f32 %v1153_v12, %v4257_v60  ;;  %v2218_v57 = vpack.c.bf16 %v3343_v36, %v3341_v46  ;;  %v4562_v46 = vld [vmem:[%s4227_s30 + $0x1d0] sm:$0xff] }
 0x20c   : > { %v1155_v61 = vpop.f32.mrf.mxu2 }
 0x20d   : > { %v1000_v26 = vpop.f32.mrf.mxu0  ;;  %v1156_v3 = vadd.f32 %v1155_v61, %v4257_v60 }
 0x20e   : > { %v1001_v38 = vadd.f32 %v1000_v26, %v4257_v60  ;;  %2371 = vmatpush.bf16.msrb.mxu3 %v2224_v20 }
 0x20f   : > { %v1309_v16 = vpop.f32.mrf.mxu1  ;;  %v4541_v5 = vpack.c.bf16 %v1156_v3, %v1154_v54  ;;  %1366 = vmatmul.bf16.gmra.mxu1 %v4500_v49 }
 0x210   : > { %v4527_v9 = vpack.c.bf16 %v1001_v38, %v999_v34  ;;  %v1310_v0 = vadd.f32 %v1309_v16, %v4292_v29  ;;  %v1449_v13 = vpop.f32.mrf.mxu3  ;;  %1506 = vmatmul.bf16.gmra.mxu3 %v4438_v40 }
 0x211   : > { %5436 = vst [vmem:[#allocation28_spill] sm:$0xff] %v4541_v5  ;;  %v1450_v23 = vadd.f32 %v1449_v13, %v4292_v29 }
 0x212   : > { %2372 = vmatpush.bf16.msrb.mxu3 %v2222_v18  ;;  %v4546_v20 = vpack.c.bf16 %v1310_v0, %v1308_v7  ;;  %v4556_v18 = vld [vmem:[%s4227_s30 + $0xd8] sm:$0xff] }
 0x213   : > { %v4551_v33 = vpack.c.bf16 %v1450_v23, %v1448_v11  ;;  %1202 = vmatmul.bf16.gmra.mxu2 %v4562_v46 }
 0x214   : > { %v1158_v38 = vpop.f32.mrf.mxu2 }
 0x215   : > { %v1003_v14 = vpop.f32.mrf.mxu0  ;;  %5437 = vst [vmem:[#allocation29_spill] sm:$0xff] %v4551_v33  ;;  %v1159_v48 = vadd.f32 %v1158_v38, %v4257_v60 }
 0x216   : > { %2373 = vmatpush.bf16.msrb.mxu3 %v2220_v52  ;;  %v1004_v15 = vadd.f32 %v1003_v14, %v4257_v60 }
 0x217   : > { %v1312_v43 = vpop.f32.mrf.mxu1 }
 0x218   : > { %1042 = vmatmul.bf16.gmra.mxu0 %v4530_v59  ;;  %v1452_v12 = vpop.f32.mrf.mxu3  ;;  %v1313_v52 = vadd.f32 %v1312_v43, %v4292_v29 }
 0x219   : > { %v1453_v14 = vadd.f32 %v1452_v12, %v4292_v29  ;;  %v4590_v12 = vld [vmem:[%s4227_s30 + $0x1d8] sm:$0xff] }
 0x21a   : > { %2374 = vmatpush.bf16.msrb.mxu3 %v2218_v57 }
 0x21c   : > { %v1160_v56 = vpop.f32.mrf.mxu2 }
 0x21d   : > { %v1005_v19 = vpop.f32.mrf.mxu0  ;;  %v1161_v50 = vadd.f32 %v1160_v56, %v4257_v60 }
 0x21e   : > { %v1006_v26 = vadd.f32 %v1005_v19, %v4257_v60 }
 0x21f   : > { %v1314_v36 = vpop.f32.mrf.mxu1  ;;  %v4567_v54 = vpack.c.bf16 %v1161_v50, %v1159_v48  ;;  %1371 = vmatmul.bf16.gmra.mxu1 %v4530_v59 }
 0x220   : > { %v4553_v34 = vpack.c.bf16 %v1006_v26, %v1004_v15  ;;  %v1315_v30 = vadd.f32 %v1314_v36, %v4292_v29  ;;  %v1454_v57 = vpop.f32.mrf.mxu3  ;;  %1511 = vmatmul.bf16.gmra.mxu3 %v4458_v63  ;;  %v4582_v15 = vld [vmem:[%s4227_s30 + $0xe0] sm:$0xff] }
 0x221   : > { %5438 = vst [vmem:[#allocation30_spill] sm:$0xff] %v4567_v54  ;;  %v1455_v3 = vadd.f32 %v1454_v57, %v4292_v29 }
 0x222   : > { %v4572_v7 = vpack.c.bf16 %v1315_v30, %v1313_v52 }
 0x223   : > { %v4577_v0 = vpack.c.bf16 %v1455_v3, %v1453_v14  ;;  %1207 = vmatmul.bf16.gmra.mxu2 %v4590_v12 }
 0x224   : > { %v1163_v19 = vpop.f32.mrf.mxu2 }
 0x225   : > { %v1008_v40 = vpop.f32.mrf.mxu0  ;;  %5439 = vst [vmem:[#allocation31_spill] sm:$0xff] %v4577_v0  ;;  %v1164_v38 = vadd.f32 %v1163_v19, %v4257_v60 }
 0x226   : > { %v1009_v16 = vadd.f32 %v1008_v40, %v4257_v60 }
 0x227   : > { %v1317_v23 = vpop.f32.mrf.mxu1 }
 0x228   : > { %1047 = vmatmul.bf16.gmra.mxu0 %v4556_v18  ;;  %v1457_v26 = vpop.f32.mrf.mxu3  ;;  %v1318_v40 = vadd.f32 %v1317_v23, %v4292_v29 }
 0x229   : > { %v1458_v52 = vadd.f32 %v1457_v26, %v4292_v29 }
 0x22c   : > { %v1165_v43 = vpop.f32.mrf.mxu2 }
 0x22d   : > { %v1010_v61 = vpop.f32.mrf.mxu0  ;;  %v1166_v48 = vadd.f32 %v1165_v43, %v4257_v60 }
 0x22e   : > { %v1011_v11 = vadd.f32 %v1010_v61, %v4257_v60 }
 0x22f   : > { %v1319_v56 = vpop.f32.mrf.mxu1  ;;  %v4595_v50 = vpack.c.bf16 %v1166_v48, %v1164_v38  ;;  %v4616_v38 = vld [vmem:[%s4227_s30 + $0x1e0] sm:$0xff]  ;;  %1376 = vmatmul.bf16.gmra.mxu1 %v4556_v18 }
 0x230   : > { %v4579_v13 = vpack.c.bf16 %v1011_v11, %v1009_v16  ;;  %v1320_v37 = vadd.f32 %v1319_v56, %v4292_v29  ;;  %v1459_v36 = vpop.f32.mrf.mxu3  ;;  %1516 = vmatmul.bf16.gmra.mxu3 %v4483_v58  ;;  %v4608_v11 = vld [vmem:[%s4227_s30 + $0xe8] sm:$0xff] }
 0x231   : > { %5440 = vst [vmem:[#allocation32_spill] sm:$0xff] %v4595_v50  ;;  %v1460_v57 = vadd.f32 %v1459_v36, %v4292_v29 }
 0x232   : > { %v4602_v30 = vpack.c.bf16 %v1320_v37, %v1318_v40 }
 0x233   : > { %v4605_v61 = vpack.c.bf16 %v1460_v57, %v1458_v52  ;;  %1212 = vmatmul.bf16.gmra.mxu2 %v4616_v38 }
 0x234   : > { %v1168_v3 = vpop.f32.mrf.mxu2 }
 0x235   : > { %v4585_v63 = vpop.f32.mrf.mxu0  ;;  %5441 = vst [vmem:[#allocation33_spill] sm:$0xff] %v4605_v61  ;;  %v1169_v26 = vadd.f32 %v1168_v3, %v4257_v60  ;;  %v4809_v61 = vld [vmem:[%s4227_s30 + $0x128] sm:$0xff] }
 0x237   : > { %v1322_v16 = vpop.f32.mrf.mxu1 }
 0x238   : > { %1052 = vmatmul.bf16.gmra.mxu0 %v4582_v15  ;;  %v1462_v19 = vpop.f32.mrf.mxu3  ;;  %v1323_v43 = vadd.f32 %v1322_v16, %v4292_v29 }
 0x239   : > { %v1463_v56 = vadd.f32 %v1462_v19, %v4292_v29 }
 0x23c   : > { %v1170_v58 = vpop.f32.mrf.mxu2 }
 0x23d   : > { %v4600_v14 = vpop.f32.mrf.mxu0  ;;  %v1171_v40 = vadd.f32 %v1170_v58, %v4257_v60 }
 0x23f   : > { %v1324_v48 = vpop.f32.mrf.mxu1  ;;  %v4621_v52 = vpack.c.bf16 %v1171_v40, %v1169_v26  ;;  %v4634_v26 = vld [vmem:[%s4227_s30 + $0xf0] sm:$0xff]  ;;  %1381 = vmatmul.bf16.gmra.mxu1 %v4582_v15  ;;  %v1754_v15 = vunpack.c.l.bf16 %v4495_v27 }
 0x240   : > { %v1325_v45 = vadd.f32 %v1324_v48, %v4292_v29  ;;  %v1464_v37 = vpop.f32.mrf.mxu3  ;;  %1521 = vmatmul.bf16.gmra.mxu3 %v4508_v41 }
 0x241   : > { %5442 = vst [vmem:[#allocation34_spill] sm:$0xff] %v4621_v52  ;;  %v1465_v3 = vadd.f32 %v1464_v37, %v4292_v29 }
 0x242   : > { %v4626_v57 = vpack.c.bf16 %v1325_v45, %v1323_v43  ;;  %v4641_v43 = vld [vmem:[%s4227_s30 + $0x1e8] sm:$0xff] }
 0x243   : > { %v4629_v16 = vpack.c.bf16 %v1465_v3, %v1463_v56  ;;  %1217 = vmatmul.bf16.gmra.mxu2 %v4641_v43 }
 0x244   : > { %5443 = vst [vmem:[#allocation35_spill] sm:$0xff] %v4626_v57  ;;  %v4631_v58 = vpop.f32.mrf.mxu2 }
 0x245   : > { %v4611_v23 = vpop.f32.mrf.mxu0  ;;  %5444 = vst [vmem:[#allocation36_spill] sm:$0xff] %v4629_v16 }
 0x246   : > { %5445 = vst [vmem:[#allocation37_spill] sm:$0xff] %v4631_v58 }
 0x247   : > { %v1327_v19 = vpop.f32.mrf.mxu1 }
 0x248   : > { %1057 = vmatmul.bf16.gmra.mxu0 %v4608_v11  ;;  %v1467_v40 = vpop.f32.mrf.mxu3  ;;  %v1328_v45 = vadd.f32 %v1327_v19, %v4292_v29 }
 0x249   : > { %v1468_v37 = vadd.f32 %v1467_v40, %v4292_v29 }
 0x24c   : > { %v4638_v41 = vpop.f32.mrf.mxu2 }
 0x24d   : > { %v1020_v36 = vpop.f32.mrf.mxu0  ;;  %5446 = vst [vmem:[#allocation38_spill] sm:$0xff] %v4638_v41 }
 0x24f   : > { %v1329_v56 = vpop.f32.mrf.mxu1  ;;  %1386 = vmatmul.bf16.gmra.mxu1 %v4608_v11 }
 0x250   : > { %v1330_v3 = vadd.f32 %v1329_v56, %v4292_v29  ;;  %v1469_v57 = vpop.f32.mrf.mxu3  ;;  %1526 = vmatmul.bf16.gmra.mxu3 %v4536_v22 }
 0x251   : > { %v1470_v44 = vadd.f32 %v1469_v57, %v4292_v29 }
 0x252   : > { %v4648_v35 = vpack.c.bf16 %v1330_v3, %v1328_v45 }
 0x253   : > { %v4651_v55 = vpack.c.bf16 %v1470_v44, %v1468_v37  ;;  %v4665_v44 = vld [vmem:[%s4227_s30 + $0x1f0] sm:$0xff] }
 0x254   : > { %5447 = vst [vmem:[#allocation39_spill] sm:$0xff] %v4648_v35  ;;  %v4653_v31 = vpop.f32.mrf.mxu2  ;;  %1222 = vmatmul.bf16.gmra.mxu2 %v4665_v44 }
 0x255   : > { %v1023_v48 = vpop.f32.mrf.mxu0  ;;  %5448 = vst [vmem:[#allocation40_spill] sm:$0xff] %v4651_v55 }
 0x256   : > { %5449 = vst [vmem:[#allocation41_spill] sm:$0xff] %v4653_v31  ;;  %v1024_v32 = vadd.f32 %v1023_v48, %v4257_v60  ;;  %v1019_v48 = vadd.f32 %v4611_v23, %v4257_v60  ;;  %v4824_v31 = vld [vmem:[%s4227_s30 + $0x130] sm:$0xff] }
 0x257   : > { %v1332_v19 = vpop.f32.mrf.mxu1 }
 0x258   : > { %1062 = vmatmul.bf16.gmra.mxu0 %v4634_v26  ;;  %v1472_v40 = vpop.f32.mrf.mxu3  ;;  %v1333_v45 = vadd.f32 %v1332_v19, %v4292_v29 }
 0x259   : > { %v1473_v37 = vadd.f32 %v1472_v40, %v4292_v29 }
 0x25c   : > { %v4660_v22 = vpop.f32.mrf.mxu2 }
 0x25d   : > { %v1025_v49 = vpop.f32.mrf.mxu0  ;;  %5450 = vst [vmem:[#allocation42_spill] sm:$0xff] %v4660_v22 }
 0x25e   : > { %v1026_v3 = vadd.f32 %v1025_v49, %v4257_v60  ;;  %v1021_v49 = vadd.f32 %v1020_v36, %v4257_v60 }
 0x25f   : > { %v1334_v57 = vpop.f32.mrf.mxu1  ;;  %1391 = vmatmul.bf16.gmra.mxu1 %v4634_v26 }
 0x260   : > { %v1335_v35 = vadd.f32 %v1334_v57, %v4292_v29  ;;  %v1474_v54 = vpop.f32.mrf.mxu3  ;;  %1531 = vmatmul.bf16.gmra.mxu3 %v4562_v46  ;;  %v1606_v52 = vpack.c.bf16 %v1026_v3, %v1024_v32 }
 0x261   : > { %v1475_v19 = vadd.f32 %v1474_v54, %v4292_v29  ;;  %v1604_v54 = vpack.c.bf16 %v1021_v49, %v1019_v48  ;;  %v4697_v48 = vld [vmem:[%s4227_s30 + $0x1f8] sm:$0xff] }
 0x262   : > { %v4672_v50 = vpack.c.bf16 %v1335_v35, %v1333_v45  ;;  %v1016_v35 = vadd.f32 %v4600_v14, %v4257_v60  ;;  %v1778_v45 = vunpack.c.l.bf16 %v1606_v52 }
 0x263   : > { %v4678_v0 = vpack.c.bf16 %v1475_v19, %v1473_v37  ;;  %v4689_v37 = vld [vmem:[%s4227_s30 + $0x100] sm:$0xff]  ;;  %v1774_v14 = vunpack.c.l.bf16 %v1604_v54  ;;  %v1776_v49 = vunpack.c.h.bf16 %v1604_v54 }
 0x264   : > { %5451 = vst [vmem:[#allocation43_spill] sm:$0xff] %v4672_v50  ;;  %v4682_v46 = vpop.f32.mrf.mxu2  ;;  %v1780_v50 = vunpack.c.h.bf16 %v1606_v52  ;;  %1227 = vmatmul.bf16.gmra.mxu2 %v4697_v48 }
 0x265   : > { %v1028_v56 = vpop.f32.mrf.mxu0  ;;  %5452 = vst [vmem:[#allocation44_spill] sm:$0xff] %v4678_v0 }
 0x266   : > { %v1029_v40 = vadd.f32 %v1028_v56, %v4257_v60  ;;  %5453 = vst [vmem:[#allocation45_spill] sm:$0xff] %v4682_v46  ;;  %v1014_v56 = vadd.f32 %v4585_v63, %v4257_v60 }
 0x267   : > { %v1337_v3 = vpop.f32.mrf.mxu1 }
 0x268   : > { %1067 = vmatmul.bf16.gmra.mxu0 %v4656_v2  ;;  %v1602_v19 = vpack.c.bf16 %v1016_v35, %v1014_v56  ;;  %v1338_v63 = vadd.f32 %v1337_v3, %v4292_v29 }
 0x26c   : > { %v4693_v52 = vpop.f32.mrf.mxu2 }
 0x26d   : > { %v1030_v59 = vpop.f32.mrf.mxu0  ;;  %5454 = vst [vmem:[#allocation46_spill] sm:$0xff] %v4693_v52 }
 0x26e   : > { %v1031_v57 = vadd.f32 %v1030_v59, %v4257_v60  ;;  %v1477_v59 = vpop.f32.mrf.mxu3 }
 0x26f   : > { %v1478_v35 = vadd.f32 %v1477_v59, %v4292_v29 }
 0x270   : > { %v1608_v41 = vpack.c.bf16 %v1031_v57, %v1029_v40  ;;  %v1770_v40 = vunpack.c.l.bf16 %v1602_v19  ;;  %v1339_v57 = vpop.f32.mrf.mxu1  ;;  %1396 = vmatmul.bf16.gmra.mxu1 %v4656_v2 }
 0x271   : > { %v1340_v54 = vadd.f32 %v1339_v57, %v4292_v29 }
 0x272   : > { %v1782_v36 = vunpack.c.l.bf16 %v1608_v41  ;;  %v1784_v32 = vunpack.c.h.bf16 %v1608_v41 }
 0x274   : > { %3344 = vtanh.f32 %v1782_v36  ;;  %v1772_v36 = vunpack.c.h.bf16 %v1602_v19  ;;  %v1766_v19 = vunpack.c.l.bf16 %v4579_v13 }
 0x275   : > { %3346 = vtanh.f32 %v1784_v32  ;;  %v1033_v23 = vpop.f32.mrf.mxu0 }
 0x276   : > { %3348 = vtanh.f32 %v1778_v45  ;;  %v1479_v32 = vpop.f32.mrf.mxu3  ;;  %1536 = vmatmul.bf16.gmra.mxu3 %v4590_v12  ;;  %v1034_v59 = vadd.f32 %v1033_v23, %v4257_v60 }
 0x277   : > { %3350 = vtanh.f32 %v1780_v50  ;;  %v1480_v58 = vadd.f32 %v1479_v32, %v4292_v29 }
 0x278   : > { %1072 = vmatmul.bf16.gmra.mxu0 %v4689_v37  ;;  %3352 = vtanh.f32 %v1774_v14  ;;  %v4703_v14 = vpack.c.bf16 %v1340_v54, %v1338_v63  ;;  %v4714_v54 = vpop.f32.mrf.mxu2  ;;  %v1342_v23 = vpop.f32.mrf.mxu1 }
 0x279   : > { %3354 = vtanh.f32 %v1776_v49  ;;  %v4710_v57 = vpack.c.bf16 %v1480_v58, %v1478_v35  ;;  %5457 = vst [vmem:[#allocation49_spill] sm:$0xff] %v4714_v54  ;;  %v4841_v54 = vld [vmem:[%s4227_s30 + $0x138] sm:$0xff] }
 0x27a   : > { %v3345_v41 = vpop.eup %3344  ;;  %5455 = vst [vmem:[#allocation47_spill] sm:$0xff] %v4703_v14  ;;  %3356 = vtanh.f32 %v1770_v40  ;;  %v1762_v40 = vunpack.c.l.bf16 %v4553_v34 }
 0x27b   : > { %v3347_v18 = vpop.eup %3346  ;;  %3358 = vtanh.f32 %v1772_v36  ;;  %5456 = vst [vmem:[#allocation48_spill] sm:$0xff] %v4710_v57  ;;  %v4719_v36 = vld [vmem:[%s4227_s30 + $0x108] sm:$0xff] }
 0x27c   : > { %v3349_v50 = vpop.eup %3348  ;;  %v2248_v45 = vpack.c.bf16 %v3347_v18, %v3345_v41  ;;  %v1768_v41 = vunpack.c.h.bf16 %v4579_v13  ;;  %3360 = vtanh.f32 %v1766_v19  ;;  %v1760_v19 = vunpack.c.h.bf16 %v4527_v9 }
 0x27d   : > { %v3351_v3 = vpop.eup %3350  ;;  %v1035_v56 = vpop.f32.mrf.mxu0 }
 0x27e   : > { %v1036_v49 = vadd.f32 %v1035_v56, %v4257_v60  ;;  %2380 = vmatpush.bf16.msra.mxu2 %v2248_v45  ;;  %v3353_v12 = vpop.eup %3352  ;;  %v2246_v63 = vpack.c.bf16 %v3351_v3, %v3349_v50  ;;  %v1764_v45 = vunpack.c.h.bf16 %v4553_v34  ;;  %3362 = vtanh.f32 %v1768_v41  ;;  %v1482_v58 = vpop.f32.mrf.mxu3 }
 0x27f   : > { %v3355_v32 = vpop.eup %3354  ;;  %v1758_v3 = vunpack.c.l.bf16 %v4527_v9  ;;  %3364 = vtanh.f32 %v1762_v40  ;;  %v1483_v9 = vadd.f32 %v1482_v58, %v4292_v29 }
 0x280   : > { %v4712_v18 = vpack.c.bf16 %v1036_v49, %v1034_v59  ;;  %v3357_v13 = vpop.eup %3356  ;;  %v2244_v56 = vpack.c.bf16 %v3355_v32, %v3353_v12  ;;  %3366 = vtanh.f32 %v1764_v45  ;;  %v4725_v49 = vpop.f32.mrf.mxu2  ;;  %v1343_v12 = vadd.f32 %v1342_v23, %v4292_v29 }
 0x281   : > { %v3359_v35 = vpop.eup %3358  ;;  %5458 = vst [vmem:[#allocation50_spill] sm:$0xff] %v4725_v49  ;;  %3368 = vtanh.f32 %v1758_v3  ;;  %v1756_v32 = vunpack.c.h.bf16 %v4495_v27 }
 0x282   : > { %2381 = vmatpush.bf16.msra.mxu2 %v2246_v63  ;;  %v3361_v59 = vpop.eup %3360  ;;  %v2242_v34 = vpack.c.bf16 %v3359_v35, %v3357_v13  ;;  %v1344_v63 = vpop.f32.mrf.mxu1  ;;  %3370 = vtanh.f32 %v1760_v19  ;;  %1401 = vmatmul.bf16.gmra.mxu1 %v4689_v37 }
 0x283   : > { %v1345_v40 = vadd.f32 %v1344_v63, %v4292_v29  ;;  %3372 = vtanh.f32 %v1754_v15  ;;  %v4745_v15 = vld [vmem:[%s4227_s30 + $0x110] sm:$0xff] }
 0x284   : > { %v3363_v41 = vpop.eup %3362  ;;  %3374 = vtanh.f32 %v1756_v32 }
 0x285   : > { %v1038_v50 = vpop.f32.mrf.mxu0  ;;  %v3365_v45 = vpop.eup %3364  ;;  %v4733_v23 = vpack.c.bf16 %v1345_v40, %v1343_v12 }
 0x286   : > { %2382 = vmatpush.bf16.msra.mxu2 %v2244_v56  ;;  %v2240_v56 = vpack.c.bf16 %v3363_v41, %v3361_v59  ;;  %v1484_v13 = vpop.f32.mrf.mxu3  ;;  %1541 = vmatmul.bf16.gmra.mxu3 %v4616_v38  ;;  %v3367_v35 = vpop.eup %3366  ;;  %v1039_v27 = vadd.f32 %v1038_v50, %v4257_v60 }
 0x287   : > { %5459 = vst [vmem:[#allocation51_spill] sm:$0xff] %v4733_v23  ;;  %v1485_v3 = vadd.f32 %v1484_v13, %v4292_v29  ;;  %v3369_v59 = vpop.eup %3368  ;;  %v2238_v38 = vpack.c.bf16 %v3367_v35, %v3365_v45 }
 0x288   : > { %1077 = vmatmul.bf16.gmra.mxu0 %v4719_v36  ;;  %v4742_v41 = vpop.f32.mrf.mxu2  ;;  %v3371_v12 = vpop.eup %3370 }
 0x289   : > { %v4738_v58 = vpack.c.bf16 %v1485_v3, %v1483_v9  ;;  %v3373_v40 = vpop.eup %3372  ;;  %v2236_v13 = vpack.c.bf16 %v3371_v12, %v3369_v59 }
 0x28a   : > { %2383 = vmatpush.bf16.msra.mxu2 %v2242_v34  ;;  %v1347_v63 = vpop.f32.mrf.mxu1 }
 0x28b   : > { %5460 = vst [vmem:[#allocation52_spill] sm:$0xff] %v4738_v58  ;;  %v1348_v45 = vadd.f32 %v1347_v63, %v4292_v29 }
 0x28d   : > { %v1040_v14 = vpop.f32.mrf.mxu0 }
 0x28e   : > { %v1041_v19 = vadd.f32 %v1040_v14, %v4257_v60  ;;  %2384 = vmatpush.bf16.msra.mxu2 %v2240_v56  ;;  %v1487_v50 = vpop.f32.mrf.mxu3  ;;  %v3375_v14 = vpop.eup %3374 }
 0x28f   : > { %v2234_v9 = vpack.c.bf16 %v3375_v14, %v3373_v40  ;;  %v1488_v3 = vadd.f32 %v1487_v50, %v4292_v29 }
 0x290   : > { %v4740_v34 = vpack.c.bf16 %v1041_v19, %v1039_v27  ;;  %v4749_v56 = vpop.f32.mrf.mxu2 }
 0x292   : > { %2385 = vmatpush.bf16.msra.mxu2 %v2238_v38  ;;  %v1349_v35 = vpop.f32.mrf.mxu1  ;;  %1406 = vmatmul.bf16.gmra.mxu1 %v4719_v36 }
 0x293   : > { %v1350_v27 = vadd.f32 %v1349_v35, %v4292_v29 }
 0x295   : > { %v1043_v32 = vpop.f32.mrf.mxu0  ;;  %v4755_v59 = vpack.c.bf16 %v1350_v27, %v1348_v45 }
 0x296   : > { %2386 = vmatpush.bf16.msra.mxu2 %v2236_v13  ;;  %v1489_v19 = vpop.f32.mrf.mxu3  ;;  %1546 = vmatmul.bf16.gmra.mxu3 %v4641_v43  ;;  %v1044_v12 = vadd.f32 %v1043_v32, %v4257_v60 }
 0x297   : > { %5461 = vst [vmem:[#allocation53_spill] sm:$0xff] %v4755_v59  ;;  %v1490_v38 = vadd.f32 %v1489_v19, %v4292_v29 }
 0x298   : > { %1082 = vmatmul.bf16.gmra.mxu0 %v4745_v15  ;;  %v4764_v14 = vpop.f32.mrf.mxu2 }
 0x299   : > { %v4760_v63 = vpack.c.bf16 %v1490_v38, %v1488_v3 }
 0x29a   : > { %2387 = vmatpush.bf16.msra.mxu2 %v2234_v9  ;;  %v1352_v50 = vpop.f32.mrf.mxu1  ;;  %v4767_v9 = vld [vmem:[%s4227_s30 + $0x118] sm:$0xff] }
 0x29b   : > { %5462 = vst [vmem:[#allocation54_spill] sm:$0xff] %v4760_v63  ;;  %v1353_v32 = vadd.f32 %v1352_v50, %v4292_v29 }
 0x29d   : > { %v1045_v11 = vpop.f32.mrf.mxu0 }
 0x29e   : > { %v1046_v40 = vadd.f32 %v1045_v11, %v4257_v60  ;;  %v1492_v35 = vpop.f32.mrf.mxu3 }
 0x29f   : > { %v1493_v27 = vadd.f32 %v1492_v35, %v4292_v29 }
 0x2a0   : > { %v4762_v13 = vpack.c.bf16 %v1046_v40, %v1044_v12  ;;  %v4771_v45 = vpop.f32.mrf.mxu2 }
 0x2a2   : > { %v1354_v3 = vpop.f32.mrf.mxu1  ;;  %1411 = vmatmul.bf16.gmra.mxu1 %v4745_v15 }
 0x2a3   : > { %v1355_v19 = vadd.f32 %v1354_v3, %v4292_v29  ;;  %v4789_v3 = vld [vmem:[%s4227_s30 + $0x120] sm:$0xff] }
 0x2a5   : > { %v1048_v43 = vpop.f32.mrf.mxu0  ;;  %v4777_v12 = vpack.c.bf16 %v1355_v19, %v1353_v32 }
 0x2a6   : > { %v1494_v11 = vpop.f32.mrf.mxu3  ;;  %1551 = vmatmul.bf16.gmra.mxu3 %v4665_v44  ;;  %v1049_v40 = vadd.f32 %v1048_v43, %v4257_v60 }
 0x2a7   : > { %5463 = vst [vmem:[#allocation55_spill] sm:$0xff] %v4777_v12  ;;  %v1495_v26 = vadd.f32 %v1494_v11, %v4292_v29 }
 0x2a8   : > { %1087 = vmatmul.bf16.gmra.mxu0 %v4767_v9  ;;  %v4786_v23 = vpop.f32.mrf.mxu2 }
 0x2a9   : > { %v4782_v63 = vpack.c.bf16 %v1495_v26, %v1493_v27 }
 0x2aa   : > { %v1357_v35 = vpop.f32.mrf.mxu1 }
 0x2ab   : > { %5464 = vst [vmem:[#allocation56_spill] sm:$0xff] %v4782_v63  ;;  %v1358_v32 = vadd.f32 %v1357_v35, %v4292_v29 }
 0x2ad   : > { %v1050_v38 = vpop.f32.mrf.mxu0 }
 0x2ae   : > { %v1051_v58 = vadd.f32 %v1050_v38, %v4257_v60  ;;  %v1497_v59 = vpop.f32.mrf.mxu3 }
 0x2b0   : > { %v4784_v50 = vpack.c.bf16 %v1051_v58, %v1049_v40  ;;  %v4795_v43 = vpop.f32.mrf.mxu2  ;;  %v1498_v58 = vadd.f32 %v1497_v59, %v4292_v29 }
 0x2b2   : > { %v1359_v27 = vpop.f32.mrf.mxu1  ;;  %1416 = vmatmul.bf16.gmra.mxu1 %v4767_v9 }
 0x2b3   : > { %v1360_v19 = vadd.f32 %v1359_v27, %v4292_v29 }
 0x2b5   : > { %v4792_v44 = vpop.f32.mrf.mxu0  ;;  %v4801_v26 = vpack.c.bf16 %v1360_v19, %v1358_v32 }
 0x2b6   : > { %v1499_v11 = vpop.f32.mrf.mxu3  ;;  %1556 = vmatmul.bf16.gmra.mxu3 %v4697_v48 }
 0x2b7   : > { %5465 = vst [vmem:[#allocation57_spill] sm:$0xff] %v4801_v26  ;;  %v1500_v2 = vadd.f32 %v1499_v11, %v4292_v29 }
 0x2b8   : > { %1092 = vmatmul.bf16.gmra.mxu0 %v4789_v3  ;;  %v4806_v63 = vpop.f32.mrf.mxu2 }
 0x2b9   : > { %v4804_v40 = vpack.c.bf16 %v1500_v2, %v1498_v58 }
 0x2ba   : > { %v1362_v12 = vpop.f32.mrf.mxu1 }
 0x2bb   : > { %5466 = vst [vmem:[#allocation58_spill] sm:$0xff] %v4804_v40  ;;  %v1363_v48 = vadd.f32 %v1362_v12, %v4292_v29 }
 0x2bd   : > { %v1055_v38 = vpop.f32.mrf.mxu0 }
 0x2be   : > { %v1502_v35 = vpop.f32.mrf.mxu3  ;;  %v1056_v16 = vadd.f32 %v1055_v38, %v4257_v60 }
 0x2bf   : > { %v1503_v27 = vadd.f32 %v1502_v35, %v4292_v29 }
 0x2c0   : > { %v4815_v19 = vpop.f32.mrf.mxu2 }
 0x2c2   : > { %v1364_v32 = vpop.f32.mrf.mxu1  ;;  %1421 = vmatmul.bf16.gmra.mxu1 %v4789_v3 }
 0x2c3   : > { %v1365_v58 = vadd.f32 %v1364_v32, %v4292_v29 }
 0x2c5   : > { %v1058_v59 = vpop.f32.mrf.mxu0  ;;  %v4818_v40 = vpack.c.bf16 %v1365_v58, %v1363_v48 }
 0x2c6   : > { %v1504_v11 = vpop.f32.mrf.mxu3 }
 0x2c7   : > { %5467 = vst [vmem:[#allocation59_spill] sm:$0xff] %v4818_v40  ;;  %v1505_v26 = vadd.f32 %v1504_v11, %v4292_v29 }
 0x2c8   : > { %1097 = vmatmul.bf16.gmra.mxu0 %v4809_v61  ;;  %v4827_v35 = vpop.f32.mrf.mxu2 }
 0x2c9   : > { %v4821_v22 = vpack.c.bf16 %v1505_v26, %v1503_v27 }
 0x2ca   : > { %v1367_v37 = vpop.f32.mrf.mxu1 }
 0x2cb   : > { %5468 = vst [vmem:[#allocation60_spill] sm:$0xff] %v4821_v22  ;;  %v1368_v32 = vadd.f32 %v1367_v37, %v4292_v29 }
 0x2cd   : > { %v1060_v2 = vpop.f32.mrf.mxu0 }
 0x2ce   : > { %v1507_v52 = vpop.f32.mrf.mxu3  ;;  %v1061_v15 = vadd.f32 %v1060_v2, %v4257_v60  ;;  %v1054_v2 = vadd.f32 %v4792_v44, %v4257_v60 }
 0x2cf   : > { %v1508_v58 = vadd.f32 %v1507_v52, %v4292_v29 }
 0x2d0   : > { %v4836_v55 = vpop.f32.mrf.mxu2 }
 0x2d2   : > { %v1369_v48 = vpop.f32.mrf.mxu1  ;;  %1426 = vmatmul.bf16.gmra.mxu1 %v4809_v61  ;;  %v1862_v61 = vunpack.c.l.bf16 %v4425_v24 }
 0x2d3   : > { %v1370_v26 = vadd.f32 %v1369_v48, %v4292_v29 }
 0x2d5   : > { %v1063_v12 = vpop.f32.mrf.mxu0  ;;  %v4833_v22 = vpack.c.bf16 %v1370_v26, %v1368_v32 }
 0x2d6   : > { %v1509_v27 = vpop.f32.mrf.mxu3 }
 0x2d7   : > { %5469 = vst [vmem:[#allocation61_spill] sm:$0xff] %v4833_v22  ;;  %v1510_v46 = vadd.f32 %v1509_v27, %v4292_v29 }
 0x2d8   : > { %1102 = vmatmul.bf16.gmra.mxu0 %v4824_v31  ;;  %v4847_v37 = vpop.f32.mrf.mxu2 }
 0x2d9   : > { %v4838_v36 = vpack.c.bf16 %v1510_v46, %v1508_v58  ;;  %v1064_v58 = vadd.f32 %v1063_v12, %v4257_v60 }
 0x2da   : > { %v1372_v49 = vpop.f32.mrf.mxu1 }
 0x2db   : > { %5470 = vst [vmem:[#allocation62_spill] sm:$0xff] %v4838_v36  ;;  %v1373_v32 = vadd.f32 %v1372_v49, %v4292_v29  ;;  %v1059_v49 = vadd.f32 %v1058_v59, %v4257_v60 }
 0x2dd   : > { %v1065_v11 = vpop.f32.mrf.mxu0 }
 0x2de   : > { %v4843_v0 = vpop.f32.mrf.mxu3  ;;  %v1066_v48 = vadd.f32 %v1065_v11, %v4257_v60 }
 0x2df   : > { %5471 = vst [vmem:[#allocation63_spill] sm:$0xff] %v4843_v0 }
 0x2e0   : > { %v1622_v40 = vpack.c.bf16 %v1066_v48, %v1064_v58  ;;  %v4870_v58 = vld.sshfl [vmem:[#allocation1 + $0x8] sm:$0xff pattern:$0x73625140] }
 0x2e1   : > { %2375 = vmatmul.bf16.vlgmr.msrb.gmra.mxu3 %v4870_v58 }
 0x2e2   : > { %v1374_v26 = vpop.f32.mrf.mxu1  ;;  %v1810_v33 = vunpack.c.l.bf16 %v1622_v40  ;;  %1431 = vmatmul.bf16.gmra.mxu1 %v4824_v31 }
 0x2e3   : > { %v1375_v46 = vadd.f32 %v1374_v26, %v4292_v29  ;;  %v1620_v26 = vpack.c.bf16 %v1061_v15, %v1059_v49 }
 0x2e5   : > { %v1068_v52 = vpop.f32.mrf.mxu0  ;;  %v4855_v0 = vpack.c.bf16 %v1375_v46, %v1373_v32  ;;  %v1812_v32 = vunpack.c.h.bf16 %v1622_v40  ;;  %v4862_v46 = vpop.f32.mrf.mxu2  ;;  %v1806_v38 = vunpack.c.l.bf16 %v1620_v26  ;;  %v1808_v59 = vunpack.c.h.bf16 %v1620_v26 }
 0x2e6   : > { %v4853_v27 = vpop.f32.mrf.mxu3  ;;  %v1069_v22 = vadd.f32 %v1068_v52, %v4257_v60 }
 0x2e7   : > { %5472 = vst [vmem:[#allocation64_spill] sm:$0xff] %v4853_v27 }
 0x2e8   : > { %1107 = vmatmul.bf16.gmra.mxu0 %v4841_v54 }
 0x2ea   : > { %v1377_v27 = vpop.f32.mrf.mxu1 }
 0x2eb   : > { %v1378_v40 = vadd.f32 %v1377_v27, %v4292_v29 }
 0x2ed   : > { %v1070_v36 = vpop.f32.mrf.mxu0  ;;  %v4876_v27 = vpop.f32.mrf.mxu2 }
 0x2ee   : > { %v1071_v57 = vadd.f32 %v1070_v36, %v4257_v60  ;;  %v4866_v36 = vpop.f32.mrf.mxu3 }
 0x2ef   : > { %5473 = vst [vmem:[#allocation65_spill] sm:$0xff] %v4866_v36 }
 0x2f0   : > { %v1624_v11 = vpack.c.bf16 %v1071_v57, %v1069_v22  ;;  %v1618_v57 = vpack.c.bf16 %v1056_v16, %v1054_v2 }
 0x2f2   : > { %v1814_v12 = vunpack.c.l.bf16 %v1624_v11  ;;  %v1816_v5 = vunpack.c.h.bf16 %v1624_v11  ;;  %v1802_v48 = vunpack.c.l.bf16 %v1618_v57  ;;  %v1379_v42 = vpop.f32.mrf.mxu1  ;;  %v1804_v15 = vunpack.c.h.bf16 %v1618_v57  ;;  %1436 = vmatmul.bf16.gmra.mxu1 %v4841_v54 }
 0x2f3   : > { %v1380_v9 = vadd.f32 %v1379_v42, %v4292_v29  ;;  %v1800_v57 = vunpack.c.h.bf16 %v4784_v50  ;;  %v1201_v54 = vadd.f32 %v4771_v45, %v4257_v60 }
 0x2f4   : > { %3376 = vtanh.f32 %v1814_v12  ;;  %v1798_v12 = vunpack.c.l.bf16 %v4784_v50 }
 0x2f5   : > { %3378 = vtanh.f32 %v1816_v5  ;;  %v1073_v22 = vpop.f32.mrf.mxu0  ;;  %v4878_v26 = vpack.c.bf16 %v1380_v9, %v1378_v40 }
 0x2f6   : > { %3380 = vtanh.f32 %v1810_v33  ;;  %v4874_v33 = vpop.f32.mrf.mxu3 }
 0x2f7   : > { %3382 = vtanh.f32 %v1812_v32  ;;  %5474 = vst [vmem:[#allocation66_spill] sm:$0xff] %v4874_v33  ;;  %v1074_v32 = vadd.f32 %v1073_v22, %v4257_v60 }
 0x2f8   : > { %3384 = vtanh.f32 %v1806_v38 }
 0x2f9   : > { %3386 = vtanh.f32 %v1808_v59 }
 0x2fa   : > { %v3377_v52 = vpop.eup %3376  ;;  %3388 = vtanh.f32 %v1802_v48  ;;  %v4887_v40 = vpop.f32.mrf.mxu1  ;;  %v1796_v48 = vunpack.c.h.bf16 %v4762_v13 }
 0x2fb   : > { %v3379_v44 = vpop.eup %3378  ;;  %3390 = vtanh.f32 %v1804_v15 }
 0x2fc   : > { %v3381_v5 = vpop.eup %3380  ;;  %v2264_v16 = vpack.c.bf16 %v3379_v44, %v3377_v52  ;;  %v1794_v44 = vunpack.c.l.bf16 %v4762_v13  ;;  %3392 = vtanh.f32 %v1798_v12 }
 0x2fd   : > { %v3383_v49 = vpop.eup %3382  ;;  %v1075_v11 = vpop.f32.mrf.mxu0  ;;  %3394 = vtanh.f32 %v1800_v57  ;;  %v1786_v57 = vunpack.c.l.bf16 %v4712_v18 }
 0x2fe   : > { %v1076_v2 = vadd.f32 %v1075_v11, %v4257_v60  ;;  %2393 = vmatpush.bf16.msra.mxu3 %v2264_v16  ;;  %v3385_v38 = vpop.eup %3384  ;;  %v2262_v52 = vpack.c.bf16 %v3383_v49, %v3381_v5  ;;  %v4890_v16 = vpop.f32.mrf.mxu3  ;;  %v1790_v5 = vunpack.c.l.bf16 %v4740_v34  ;;  %3396 = vtanh.f32 %v1794_v44 }
 0x2ff   : > { %v3387_v42 = vpop.eup %3386  ;;  %v1792_v49 = vunpack.c.h.bf16 %v4740_v34  ;;  %3398 = vtanh.f32 %v1796_v48  ;;  %v4895_v11 = vpop.f32.mrf.mxu2  ;;  %v1880_v34 = vunpack.c.h.bf16 %v4515_v10 }
 0x300   : > { %v4884_v59 = vpack.c.bf16 %v1076_v2, %v1074_v32  ;;  %v3389_v22 = vpop.eup %3388  ;;  %v2260_v9 = vpack.c.bf16 %v3387_v42, %v3385_v38  ;;  %v1878_v2 = vunpack.c.l.bf16 %v4515_v10  ;;  %3400 = vtanh.f32 %v1790_v5 }
 0x301   : > { %v3391_v50 = vpop.eup %3390  ;;  %v1788_v38 = vunpack.c.h.bf16 %v4712_v18  ;;  %3402 = vtanh.f32 %v1792_v49  ;;  %v1874_v5 = vunpack.c.l.bf16 %v4485_v62  ;;  %v1876_v49 = vunpack.c.h.bf16 %v4485_v62 }
 0x302   : > { %2394 = vmatpush.bf16.msra.mxu3 %v2262_v52  ;;  %v3393_v12 = vpop.eup %3392  ;;  %v2258_v13 = vpack.c.bf16 %v3391_v50, %v3389_v22  ;;  %v4899_v3 = vpop.f32.mrf.mxu1  ;;  %3404 = vtanh.f32 %v1878_v2 }
 0x303   : > { %v3395_v32 = vpop.eup %3394  ;;  %3406 = vtanh.f32 %v1786_v57 }
 0x304   : > { %v3397_v52 = vpop.eup %3396  ;;  %v2256_v42 = vpack.c.bf16 %v3395_v32, %v3393_v12  ;;  %3408 = vtanh.f32 %v1788_v38 }
 0x305   : > { %v1078_v15 = vpop.f32.mrf.mxu0  ;;  %v3399_v48 = vpop.eup %3398  ;;  %3410 = vtanh.f32 %v1880_v34 }
 0x306   : > { %2395 = vmatpush.bf16.msra.mxu3 %v2260_v9  ;;  %v4903_v44 = vpop.f32.mrf.mxu3  ;;  %v1079_v9 = vadd.f32 %v1078_v15, %v4257_v60  ;;  %v3401_v18 = vpop.eup %3400  ;;  %v2254_v12 = vpack.c.bf16 %v3399_v48, %v3397_v52  ;;  %v1870_v15 = vunpack.c.l.bf16 %v4460_v1  ;;  %3412 = vtanh.f32 %v1874_v5 }
 0x307   : > { %v1228_v32 = vpop.f32.mrf.mxu2  ;;  %3414 = vtanh.f32 %v1876_v49  ;;  %v1866_v48 = vunpack.c.l.bf16 %v4442_v47 }
 0x308   : > { %3416 = vtanh.f32 %v1870_v15 }
 0x30a   : > { %2396 = vmatpush.bf16.msra.mxu3 %v2258_v13  ;;  %v3403_v13 = vpop.eup %3402  ;;  %v4911_v2 = vpop.f32.mrf.mxu1 }
 0x30b   : > { %v3405_v57 = vpop.eup %3404  ;;  %v2252_v38 = vpack.c.bf16 %v3403_v13, %v3401_v18  ;;  %v4920_v18 = vld.sshfl [vmem:[#allocation1 + $0x18] sm:$0xff pattern:$0x73625140] }
 0x30d   : > { %v1080_v22 = vpop.f32.mrf.mxu0 }
 0x30e   : > { %v1081_v50 = vadd.f32 %v1080_v22, %v4257_v60  ;;  %2397 = vmatpush.bf16.msra.mxu3 %v2256_v42  ;;  %v3407_v42 = vpop.eup %3406  ;;  %v1872_v22 = vunpack.c.h.bf16 %v4460_v1  ;;  %v4915_v33 = vpop.f32.mrf.mxu3 }
 0x30f   : > { %v3409_v62 = vpop.eup %3408  ;;  %v1230_v13 = vpop.f32.mrf.mxu2 }
 0x310   : > { %v4909_v10 = vpack.c.bf16 %v1081_v50, %v1079_v9  ;;  %v3411_v34 = vpop.eup %3410  ;;  %v1868_v9 = vunpack.c.h.bf16 %v4442_v47  ;;  %3418 = vtanh.f32 %v1872_v22  ;;  %v2250_v50 = vpack.c.bf16 %v3409_v62, %v3407_v42 }
 0x311   : > { %v3413_v5 = vpop.eup %3412  ;;  %3420 = vtanh.f32 %v1866_v48  ;;  %v1231_v48 = vadd.f32 %v1230_v13, %v4257_v60 }
 0x312   : > { %2398 = vmatpush.bf16.msra.mxu3 %v2254_v12  ;;  %v2296_v12 = vpack.c.bf16 %v3411_v34, %v3405_v57  ;;  %v3415_v1 = vpop.eup %3414  ;;  %v4922_v49 = vpop.f32.mrf.mxu1  ;;  %3422 = vtanh.f32 %v1868_v9 }
 0x313   : > { %v3417_v47 = vpop.eup %3416  ;;  %v2294_v22 = vpack.c.bf16 %v3415_v1, %v3413_v5  ;;  %3424 = vtanh.f32 %v1862_v61  ;;  %v1854_v61 = vunpack.c.l.bf16 %v4389_v51 }
 0x315   : > { %v1083_v52 = vpop.f32.mrf.mxu0 }
 0x316   : > { %2399 = vmatpush.bf16.msra.mxu3 %v2252_v38  ;;  %v1864_v38 = vunpack.c.h.bf16 %v4425_v24  ;;  %v4926_v15 = vpop.f32.mrf.mxu3  ;;  %v3419_v57 = vpop.eup %3418  ;;  %v1084_v62 = vadd.f32 %v1083_v52, %v4257_v60  ;;  %v1860_v24 = vunpack.c.h.bf16 %v4409_v4  ;;  %v1224_v52 = vadd.f32 %v4876_v27, %v4257_v60 }
 0x317   : > { %v3421_v5 = vpop.eup %3420  ;;  %v2292_v1 = vpack.c.bf16 %v3419_v57, %v3417_v47  ;;  %v1850_v27 = vunpack.c.l.bf16 %v4371_v28 }
 0x318   : > { %3426 = vtanh.f32 %v1864_v38  ;;  %v3423_v36 = vpop.eup %3422 }
 0x319   : > { %v3425_v47 = vpop.eup %3424  ;;  %v2290_v57 = vpack.c.bf16 %v3423_v36, %v3421_v5  ;;  %v1214_v36 = vadd.f32 %v4827_v35, %v4257_v60  ;;  %v1209_v35 = vadd.f32 %v4806_v63, %v4257_v60 }
 0x31a   : > { %2400 = vmatpush.bf16.msra.mxu3 %v2250_v50  ;;  %v1229_v50 = vadd.f32 %v1228_v32, %v4257_v60  ;;  %v1226_v32 = vadd.f32 %v4895_v11, %v4257_v60  ;;  %v4941_v13 = vpop.f32.mrf.mxu1 }
 0x31d   : > { %v1085_v42 = vpop.f32.mrf.mxu0  ;;  %2401 = vmatmul.bf16.vlgmr.msra.gmra.mxu3 %v4920_v18 }
 0x31e   : > { %2419 = vmatpush.bf16.msrb.mxu3 %v2296_v12  ;;  %v1086_v34 = vadd.f32 %v1085_v42, %v4257_v60  ;;  %v1858_v12 = vunpack.c.l.bf16 %v4409_v4  ;;  %v1688_v42 = vpack.c.bf16 %v1231_v48, %v1229_v50  ;;  %v1856_v4 = vunpack.c.h.bf16 %v4389_v51  ;;  %v4945_v38 = vpop.f32.mrf.mxu3  ;;  %v3427_v11 = vpop.eup %3426 }
 0x31f   : > { %v1686_v50 = vpack.c.bf16 %v1226_v32, %v1224_v52 }
 0x320   : > { %v4935_v9 = vpack.c.bf16 %v1086_v34, %v1084_v62  ;;  %3428 = vtanh.f32 %v1858_v12  ;;  %v1219_v62 = vadd.f32 %v4847_v37, %v4257_v60  ;;  %v1221_v34 = vadd.f32 %v4862_v46, %v4257_v60 }
 0x321   : > { %3430 = vtanh.f32 %v1860_v24  ;;  %v1942_v48 = vunpack.c.l.bf16 %v1688_v42  ;;  %v1944_v51 = vunpack.c.h.bf16 %v1688_v42  ;;  %v1852_v12 = vunpack.c.h.bf16 %v4371_v28  ;;  %v2332_v42 = vld [vmem:[#allocation8 + $0x8] sm:$0xff] }
 0x322   : > { %2420 = vmatpush.bf16.msrb.mxu3 %v2294_v22  ;;  %3432 = vtanh.f32 %v1854_v61  ;;  %v1216_v24 = vadd.f32 %v4836_v55, %v4257_v60  ;;  %v2288_v37 = vpack.c.bf16 %v3427_v11, %v3425_v47  ;;  %v1938_v46 = vunpack.c.l.bf16 %v1686_v50  ;;  %v4958_v52 = vpop.f32.mrf.mxu1  ;;  %2337 = vst [vmem:[#allocation1 + $0x20] ss:$4 sm:$0xff] %v2332_v42 }
 0x323   : > { %3434 = vtanh.f32 %v1856_v4  ;;  %v1940_v32 = vunpack.c.h.bf16 %v1686_v50  ;;  %v1211_v55 = vadd.f32 %v4815_v19, %v4257_v60 }
 0x324   : > { %3436 = vtanh.f32 %v1850_v27  ;;  %v1682_v4 = vpack.c.bf16 %v1216_v24, %v1214_v36 }
 0x325   : > { %v1088_v22 = vpop.f32.mrf.mxu0  ;;  %3438 = vtanh.f32 %v1942_v48  ;;  %v1680_v24 = vpack.c.bf16 %v1211_v55, %v1209_v35 }
 0x326   : > { %2421 = vmatpush.bf16.msrb.mxu3 %v2292_v1  ;;  %v3429_v31 = vpop.eup %3428  ;;  %v1684_v1 = vpack.c.bf16 %v1221_v34, %v1219_v62  ;;  %3440 = vtanh.f32 %v1944_v51  ;;  %v4960_v28 = vpop.f32.mrf.mxu3  ;;  %v1089_v62 = vadd.f32 %v1088_v22, %v4257_v60 }
 0x327   : > { %v3431_v5 = vpop.eup %3430  ;;  %3442 = vtanh.f32 %v1852_v12 }
 0x328   : > { %v3433_v61 = vpop.eup %3432  ;;  %v2286_v27 = vpack.c.bf16 %v3431_v5, %v3429_v31  ;;  %v1934_v11 = vunpack.c.l.bf16 %v1684_v1  ;;  %3444 = vtanh.f32 %v1938_v46  ;;  %v1936_v48 = vunpack.c.h.bf16 %v1684_v1 }
 0x329   : > { %3446 = vtanh.f32 %v1940_v32  ;;  %v1930_v31 = vunpack.c.l.bf16 %v1682_v4  ;;  %v1932_v5 = vunpack.c.h.bf16 %v1682_v4  ;;  %v1204_v1 = vadd.f32 %v4786_v23, %v4257_v60 }
 0x32a   : > { %2422 = vmatpush.bf16.msrb.mxu3 %v2290_v57  ;;  %v3435_v57 = vpop.eup %3434  ;;  %3448 = vtanh.f32 %v1934_v11  ;;  %v1206_v46 = vadd.f32 %v4795_v43, %v4257_v60  ;;  %v1928_v4 = vunpack.c.h.bf16 %v1680_v24  ;;  %v1199_v43 = vadd.f32 %v4764_v14, %v4257_v60 }
 0x32b   : > { %v3437_v50 = vpop.eup %3436  ;;  %v2284_v19 = vpack.c.bf16 %v3435_v57, %v3433_v61  ;;  %3450 = vtanh.f32 %v1936_v48  ;;  %v1196_v14 = vadd.f32 %v4749_v56, %v4257_v60 }
 0x32c   : > { %v3439_v51 = vpop.eup %3438  ;;  %3452 = vtanh.f32 %v1930_v31  ;;  %v1678_v57 = vpack.c.bf16 %v1206_v46, %v1204_v1 }
 0x32d   : > { %v1090_v47 = vpop.f32.mrf.mxu0  ;;  %v3441_v12 = vpop.eup %3440  ;;  %3454 = vtanh.f32 %v1932_v5 }
 0x32e   : > { %2423 = vmatpush.bf16.msrb.mxu3 %v2288_v37  ;;  %v1091_v34 = vadd.f32 %v1090_v47, %v4257_v60  ;;  %v3443_v36 = vpop.eup %3442  ;;  %v4970_v37 = vpop.f32.mrf.mxu1  ;;  %v2328_v32 = vpack.c.bf16 %v3441_v12, %v3439_v51  ;;  %v1926_v47 = vunpack.c.l.bf16 %v1680_v24  ;;  %v1676_v51 = vpack.c.bf16 %v1201_v54, %v1199_v43 }
 0x32f   : > { %v3445_v22 = vpop.eup %3444  ;;  %v2282_v35 = vpack.c.bf16 %v3443_v36, %v3437_v50  ;;  %v4979_v55 = vpop.f32.mrf.mxu3  ;;  %v1194_v50 = vadd.f32 %v4742_v41, %v4257_v60  ;;  %v1922_v12 = vunpack.c.l.bf16 %v1678_v57  ;;  %v1924_v36 = vunpack.c.h.bf16 %v1678_v57 }
 0x330   : > { %v4968_v63 = vpack.c.bf16 %v1091_v34, %v1089_v62  ;;  %v3447_v42 = vpop.eup %3446  ;;  %3456 = vtanh.f32 %v1926_v47  ;;  %v1918_v1 = vunpack.c.l.bf16 %v1676_v51  ;;  %v1753_v54 = vunpack.c.h.bf16 %v4602_v30 }
 0x331   : > { %v3449_v23 = vpop.eup %3448  ;;  %v2326_v11 = vpack.c.bf16 %v3447_v42, %v3445_v22  ;;  %3458 = vtanh.f32 %v1928_v4  ;;  %v1674_v22 = vpack.c.bf16 %v1196_v14, %v1194_v50  ;;  %v1751_v42 = vunpack.c.l.bf16 %v4602_v30 }
 0x332   : > { %2424 = vmatpush.bf16.msrb.mxu3 %v2286_v27  ;;  %v4981_v27 = vld.sshfl [vmem:[#allocation1 + $0x28] sm:$0xff pattern:$0x73625140]  ;;  %v3451_v62 = vpop.eup %3450  ;;  %3460 = vtanh.f32 %v1922_v12  ;;  %v1749_v14 = vunpack.c.h.bf16 %v4572_v7 }
 0x333   : > { %v3453_v48 = vpop.eup %3452  ;;  %v2324_v45 = vpack.c.bf16 %v3451_v62, %v3449_v23  ;;  %3462 = vtanh.f32 %v1924_v36  ;;  %v1916_v4 = vunpack.c.h.bf16 %v1674_v22  ;;  %v1743_v36 = vunpack.c.l.bf16 %v4546_v20 }
 0x334   : > { %3464 = vtanh.f32 %v1918_v1 }
 0x335   : > { %v4977_v61 = vpop.f32.mrf.mxu0 }
 0x336   : > { %2425 = vmatpush.bf16.msrb.mxu3 %v2284_v19  ;;  %v4988_v34 = vpop.f32.mrf.mxu1  ;;  %v3455_v19 = vpop.eup %3454 }
 0x337   : > { %v4996_v31 = vpop.f32.mrf.mxu3  ;;  %v3457_v5 = vpop.eup %3456  ;;  %v2322_v41 = vpack.c.bf16 %v3455_v19, %v3453_v48 }
 0x338   : > { %v3459_v46 = vpop.eup %3458 }
 0x339   : > { %v2320_v47 = vpack.c.bf16 %v3459_v46, %v3457_v5  ;;  %v3461_v43 = vpop.eup %3460 }
 0x33a   : > { %2426 = vmatpush.bf16.msrb.mxu3 %v2282_v35  ;;  %v1914_v35 = vunpack.c.l.bf16 %v1674_v22  ;;  %v3463_v57 = vpop.eup %3462 }
 0x33b   : > { %v3465_v48 = vpop.eup %3464 }
 0x33d   : > { %2427 = vmatmul.bf16.vlgmr.msrb.gmra.mxu3 %v4981_v27  ;;  %v4994_v24 = vpop.f32.mrf.mxu0 }
 0x33e   : > { %2445 = vmatpush.bf16.msra.mxu3 %v2328_v32  ;;  %v1920_v32 = vunpack.c.h.bf16 %v1676_v51  ;;  %v1402_v56 = vpop.f32.mrf.mxu1  ;;  %v2318_v51 = vpack.c.bf16 %v3463_v57, %v3461_v43  ;;  %v1723_v57 = vunpack.c.l.bf16 %v4429_v25 }
 0x33f   : > { %v1403_v62 = vadd.f32 %v1402_v56, %v4292_v29  ;;  %v5004_v50 = vpop.f32.mrf.mxu3  ;;  %v2338_v56 = vld.sshfl [vmem:[#allocation1] sm:$0xff pattern:$0x73625140] }
 0x340   : > { %3466 = vtanh.f32 %v1920_v32  ;;  %v1715_v32 = vunpack.c.l.bf16 %v4392_v53  ;;  %2362 = vmatmul.bf16.vlgmr.msrb.gmra.mxu2 %v2338_v56  ;;  %v1400_v56 = vadd.f32 %v4988_v34, %v4292_v29 }
 0x341   : > { %3468 = vtanh.f32 %v1751_v42 }
 0x342   : > { %2446 = vmatpush.bf16.msra.mxu3 %v2326_v11  ;;  %3470 = vtanh.f32 %v1914_v35  ;;  %v1747_v11 = vunpack.c.l.bf16 %v4572_v7  ;;  %v1719_v35 = vunpack.c.l.bf16 %v4412_v6 }
 0x343   : > { %3472 = vtanh.f32 %v1916_v4  ;;  %v1741_v4 = vunpack.c.h.bf16 %v4520_v39 }
 0x344   : > { %3474 = vtanh.f32 %v1753_v54 }
 0x345   : > { %v4999_v23 = vpop.f32.mrf.mxu0  ;;  %3476 = vtanh.f32 %v1747_v11 }
 0x346   : > { %2447 = vmatpush.bf16.msra.mxu3 %v2324_v45  ;;  %v1404_v12 = vpop.f32.mrf.mxu1  ;;  %v3467_v45 = vpop.eup %3466  ;;  %3478 = vtanh.f32 %v1749_v14  ;;  %v1725_v14 = vunpack.c.h.bf16 %v4429_v25  ;;  %v1731_v25 = vunpack.c.l.bf16 %v4465_v8 }
 0x347   : > { %v1405_v30 = vadd.f32 %v1404_v12, %v4292_v29  ;;  %v3469_v19 = vpop.eup %3468  ;;  %v2316_v7 = vpack.c.bf16 %v3467_v45, %v3465_v48  ;;  %3480 = vtanh.f32 %v1743_v36  ;;  %v1735_v12 = vunpack.c.l.bf16 %v4489_v17 }
 0x348   : > { %v3471_v1 = vpop.eup %3470  ;;  %v1737_v45 = vunpack.c.h.bf16 %v4489_v17 }
 0x349   : > { %v5011_v22 = vpack.c.bf16 %v1405_v30, %v1403_v62  ;;  %v3473_v46 = vpop.eup %3472  ;;  %v5019_v62 = vpop.f32.mrf.mxu3 }
 0x34a   : > { %2448 = vmatpush.bf16.msra.mxu3 %v2322_v41  ;;  %v1745_v41 = vunpack.c.h.bf16 %v4546_v20  ;;  %v3475_v42 = vpop.eup %3474  ;;  %v2314_v43 = vpack.c.bf16 %v3473_v46, %v3471_v1 }
 0x34b   : > { %5475 = vst [vmem:[#allocation67_spill] sm:$0xff] %v5011_v22  ;;  %v3477_v20 = vpop.eup %3476  ;;  %v2233_v11 = vpack.c.bf16 %v3475_v42, %v3469_v19  ;;  %v1727_v19 = vunpack.c.l.bf16 %v4446_v21  ;;  %v5482_v22 = vld [vmem:[#allocation48_spill] sm:$0xff] }
 0x34c   : > { %3482 = vtanh.f32 %v1745_v41  ;;  %v3479_v48 = vpop.eup %3478 }
 0x34d   : > { %v5009_v5 = vpop.f32.mrf.mxu0  ;;  %3484 = vtanh.f32 %v1715_v32  ;;  %v3481_v30 = vpop.eup %3480  ;;  %v2231_v36 = vpack.c.bf16 %v3479_v48, %v3477_v20  ;;  %v1398_v32 = vadd.f32 %v4970_v37, %v4292_v29 }
 0x34e   : > { %2449 = vmatpush.bf16.msra.mxu3 %v2320_v47  ;;  %v1739_v47 = vunpack.c.l.bf16 %v4520_v39  ;;  %v1407_v54 = vpop.f32.mrf.mxu1  ;;  %3486 = vtanh.f32 %v1719_v35 }
 0x34f   : > { %v1408_v46 = vadd.f32 %v1407_v54, %v4292_v29  ;;  %v5477_v54 = vld [vmem:[#allocation27_spill] sm:$0xff] }
 0x350   : > { %3488 = vtanh.f32 %v1739_v47  ;;  %v1729_v47 = vunpack.c.h.bf16 %v4446_v21  ;;  %v1851_v20 = vunpack.c.l.bf16 %v5477_v54  ;;  %v1853_v37 = vunpack.c.h.bf16 %v5477_v54 }
 0x351   : > { %3490 = vtanh.f32 %v1741_v4  ;;  %v5044_v34 = vpop.f32.mrf.mxu3 }
 0x352   : > { %2450 = vmatpush.bf16.msra.mxu3 %v2318_v51  ;;  %v2345_v51 = vld.sshfl [vmem:[#allocation1 + $0x38] sm:$0xff pattern:$0x73625140]  ;;  %3492 = vtanh.f32 %v1723_v57  ;;  %v3483_v1 = vpop.eup %3482 }
 0x353   : > { %3494 = vtanh.f32 %v1725_v14  ;;  %v5028_v41 = vpop.eup %3484  ;;  %v2229_v4 = vpack.c.bf16 %v3483_v1, %v3481_v30  ;;  %v5479_v14 = vld [vmem:[#allocation28_spill] sm:$0xff]  ;;  %v1625_v30 = vpack.c.bf16 %v1400_v56, %v1398_v32  ;;  %v5480_v1 = vld [vmem:[#allocation29_spill] sm:$0xff] }
 0x354   : > { %5476 = vst [vmem:[#allocation68_spill] sm:$0xff] %v5028_v41  ;;  %3496 = vtanh.f32 %v1735_v12  ;;  %v5032_v17 = vpop.eup %3486  ;;  %v1393_v12 = vadd.f32 %v4941_v13, %v4292_v29  ;;  %v1388_v13 = vadd.f32 %v4911_v2, %v4292_v29  ;;  %v1383_v2 = vadd.f32 %v4887_v40, %v4292_v29 }
 0x355   : > { %v5023_v39 = vpop.f32.mrf.mxu0  ;;  %3498 = vtanh.f32 %v1737_v45  ;;  %v1395_v45 = vadd.f32 %v4958_v52, %v4292_v29  ;;  %v1390_v52 = vadd.f32 %v4922_v49, %v4292_v29  ;;  %v1385_v49 = vadd.f32 %v4899_v3, %v4292_v29 }
 0x356   : > { %2451 = vmatpush.bf16.msra.mxu3 %v2316_v7  ;;  %v1733_v7 = vunpack.c.h.bf16 %v4465_v8  ;;  %v1409_v42 = vpop.f32.mrf.mxu1  ;;  %v3489_v35 = vpop.eup %3488  ;;  %3500 = vtanh.f32 %v1727_v19  ;;  %v2340_v19 = vld.sshfl [vmem:[#allocation1 + $0x10] sm:$0xff pattern:$0x73625140]  ;;  %v1799_v40 = vunpack.c.l.bf16 %v4878_v26  ;;  %v1801_v41 = vunpack.c.h.bf16 %v4878_v26 }
 0x357   : > { %v1410_v8 = vadd.f32 %v1409_v42, %v4292_v29  ;;  %3502 = vtanh.f32 %v1731_v25  ;;  %v1855_v25 = vunpack.c.l.bf16 %v5480_v1  ;;  %2388 = vmatmul.bf16.vlgmr.msra.gmra.mxu2 %v2340_v19  ;;  %v1623_v56 = vpack.c.bf16 %v1395_v45, %v1393_v12 }
 0x358   : > { %3504 = vtanh.f32 %v1733_v7 }
 0x359   : > { %v5046_v48 = vpack.c.bf16 %v1410_v8, %v1408_v46  ;;  %3506 = vtanh.f32 %v1729_v47  ;;  %v5481_v46 = vld [vmem:[#allocation36_spill] sm:$0xff]  ;;  %v1815_v47 = vunpack.c.l.bf16 %v1625_v30 }
 0x35a   : > { %2452 = vmatpush.bf16.msra.mxu3 %v2314_v43  ;;  %v3491_v43 = vpop.eup %3490  ;;  %3508 = vtanh.f32 %v1851_v20  ;;  %v1869_v19 = vunpack.c.h.bf16 %v5481_v46 }
 0x35b   : > { %v5041_v57 = vpop.eup %3492  ;;  %5478 = vst [vmem:[#allocation27_spill] sm:$0xff] %v5046_v48  ;;  %v2227_v7 = vpack.c.bf16 %v3491_v43, %v3489_v35  ;;  %3510 = vtanh.f32 %v1853_v37  ;;  %v1817_v43 = vunpack.c.h.bf16 %v1625_v30  ;;  %v1879_v48 = vunpack.c.l.bf16 %v5482_v22 }
 0x35c   : > { %v5048_v21 = vpop.eup %3494 }
 0x35d   : > { %2453 = vmatmul.bf16.vlgmr.msra.gmra.mxu3 %v2345_v51  ;;  %v1882_v51 = vunpack.c.l.bf16 %v5479_v14 }
 0x35e   : > { %2471 = vmatpush.bf16.msrb.mxu3 %v2233_v11  ;;  %v1105_v11 = vpop.f32.mrf.mxu0  ;;  %v1412_v54 = vpop.f32.mrf.mxu1 }
 0x35f   : > { %3512 = vtanh.f32 %v1882_v51  ;;  %v1621_v51 = vpack.c.bf16 %v1390_v52, %v1388_v13  ;;  %v1413_v52 = vadd.f32 %v1412_v54, %v4292_v29 }
 0x360   : > { %3514 = vtanh.f32 %v1855_v25  ;;  %v1811_v25 = vunpack.c.l.bf16 %v1623_v56 }
 0x361   : > { %v1807_v13 = vunpack.c.l.bf16 %v1621_v51 }
 0x362   : > { %2472 = vmatpush.bf16.msrb.mxu3 %v2231_v36  ;;  %v3497_v36 = vpop.eup %3496 }
 0x363   : > { %v3499_v42 = vpop.eup %3498 }
 0x364   : > { %v3501_v8 = vpop.eup %3500  ;;  %v2225_v20 = vpack.c.bf16 %v3499_v42, %v3497_v36  ;;  %v1813_v36 = vunpack.c.h.bf16 %v1623_v56  ;;  %v5071_v42 = vpop.f32.mrf.mxu3 }
 0x365   : > { %v3503_v32 = vpop.eup %3502 }
 0x366   : > { %2473 = vmatpush.bf16.msrb.mxu3 %v2229_v4  ;;  %v1867_v4 = vunpack.c.l.bf16 %v5481_v46  ;;  %v3505_v35 = vpop.eup %3504  ;;  %v1108_v12 = vpop.f32.mrf.mxu0 }
 0x367   : > { %v3507_v37 = vpop.eup %3506  ;;  %v1414_v56 = vpop.f32.mrf.mxu1 }
 0x368   : > { %3516 = vtanh.f32 %v1867_v4  ;;  %v5067_v45 = vpop.eup %3508  ;;  %v1619_v4 = vpack.c.bf16 %v1385_v49, %v1383_v2 }
 0x369   : > { %3518 = vtanh.f32 %v1815_v47  ;;  %v5069_v30 = vpop.eup %3510 }
 0x36a   : > { %2474 = vmatpush.bf16.msrb.mxu3 %v2227_v7  ;;  %3520 = vtanh.f32 %v1817_v43  ;;  %v2223_v7 = vpack.c.bf16 %v3505_v35, %v3503_v32  ;;  %v5073_v46 = vpop.eup %3512  ;;  %v1106_v32 = vadd.f32 %v1105_v11, %v4257_v60  ;;  %v1809_v35 = vunpack.c.h.bf16 %v1621_v51 }
 0x36b   : > { %3522 = vtanh.f32 %v1869_v19  ;;  %v5076_v3 = vpop.eup %3514  ;;  %v2221_v43 = vpack.c.bf16 %v3507_v37, %v3501_v8  ;;  %v1803_v54 = vunpack.c.l.bf16 %v1619_v4  ;;  %v1101_v8 = vadd.f32 %v5009_v5, %v4257_v60 }
 0x36c   : > { %3524 = vtanh.f32 %v1879_v48  ;;  %v1104_v48 = vadd.f32 %v5023_v39, %v4257_v60  ;;  %v1109_v51 = vadd.f32 %v1108_v12, %v4257_v60  ;;  %v1805_v39 = vunpack.c.h.bf16 %v1619_v4 }
 0x36d   : > { %3526 = vtanh.f32 %v1811_v25  ;;  %v1096_v12 = vadd.f32 %v4994_v24, %v4257_v60 }
 0x36e   : > { %2475 = vmatpush.bf16.msrb.mxu3 %v2225_v20  ;;  %v5079_v47 = vpop.eup %3516  ;;  %3528 = vtanh.f32 %v1813_v36  ;;  %v1415_v20 = vadd.f32 %v1414_v56, %v4292_v29  ;;  %v1110_v49 = vpop.f32.mrf.mxu0  ;;  %v1638_v37 = vpack.c.bf16 %v1106_v32, %v1104_v48  ;;  %v1094_v48 = vadd.f32 %v4977_v61, %v4257_v60 }
 0x36f   : > { %v3519_v19 = vpop.eup %3518  ;;  %3530 = vtanh.f32 %v1799_v40  ;;  %v1111_v26 = vadd.f32 %v1110_v49, %v4257_v60  ;;  %v5102_v32 = vpop.f32.mrf.mxu3 }
 0x370   : > { %v3521_v2 = vpop.eup %3520  ;;  %3532 = vtanh.f32 %v1807_v13  ;;  %v5086_v25 = vpack.c.bf16 %v1415_v20, %v1413_v52  ;;  %v1099_v13 = vadd.f32 %v4999_v23, %v4257_v60  ;;  %v1844_v23 = vunpack.c.h.bf16 %v1638_v37 }
 0x371   : > { %v5088_v11 = vpop.eup %3522  ;;  %3534 = vtanh.f32 %v1809_v35  ;;  %v1640_v52 = vpack.c.bf16 %v1111_v26, %v1109_v51  ;;  %v2265_v56 = vpack.c.bf16 %v3521_v2, %v3519_v19  ;;  %v1795_v19 = vunpack.c.l.bf16 %v4855_v0 }
 0x372   : > { %2476 = vmatpush.bf16.msrb.mxu3 %v2223_v7  ;;  %v5094_v36 = vpop.eup %3524  ;;  %v2219_v7 = vpack.c.bf16 %v5048_v21, %v5041_v57  ;;  %3536 = vtanh.f32 %v1801_v41  ;;  %v1636_v35 = vpack.c.bf16 %v1101_v8, %v1099_v13  ;;  %v1417_v41 = vpop.f32.mrf.mxu1  ;;  %v1634_v8 = vpack.c.bf16 %v1096_v12, %v1094_v48 }
 0x373   : > { %v3527_v40 = vpop.eup %3526  ;;  %3538 = vtanh.f32 %v1803_v54  ;;  %v1846_v57 = vunpack.c.l.bf16 %v1640_v52  ;;  %v1848_v21 = vunpack.c.h.bf16 %v1640_v52  ;;  %v1797_v54 = vunpack.c.h.bf16 %v4855_v0 }
 0x374   : > { %v3529_v5 = vpop.eup %3528  ;;  %3540 = vtanh.f32 %v1805_v39  ;;  %v1838_v51 = vunpack.c.l.bf16 %v1636_v35  ;;  %v5483_v39 = vld [vmem:[#allocation61_spill] sm:$0xff]  ;;  %v1834_v52 = vunpack.c.l.bf16 %v1634_v8  ;;  %v1836_v12 = vunpack.c.h.bf16 %v1634_v8 }
 0x375   : > { %v5104_v4 = vpop.eup %3530  ;;  %3542 = vtanh.f32 %v1846_v57  ;;  %v2263_v24 = vpack.c.bf16 %v3529_v5, %v3527_v40  ;;  %v1793_v40 = vunpack.c.h.bf16 %v5483_v39 }
 0x376   : > { %2477 = vmatpush.bf16.msrb.mxu3 %v2221_v43  ;;  %v1842_v43 = vunpack.c.l.bf16 %v1638_v37  ;;  %v3533_v20 = vpop.eup %3532  ;;  %3544 = vtanh.f32 %v1848_v21  ;;  %v1840_v37 = vunpack.c.h.bf16 %v1636_v35  ;;  %v5484_v21 = vld [vmem:[#allocation59_spill] sm:$0xff] }
 0x377   : > { %v3535_v2 = vpop.eup %3534  ;;  %v5114_v35 = vpop.f32.mrf.mxu3 }
 0x378   : > { %v3537_v49 = vpop.eup %3536  ;;  %3546 = vtanh.f32 %v1842_v43  ;;  %v2261_v61 = vpack.c.bf16 %v3535_v2, %v3533_v20  ;;  %v1787_v20 = vunpack.c.l.bf16 %v5484_v21 }
 0x379   : > { %v3539_v26 = vpop.eup %3538  ;;  %3548 = vtanh.f32 %v1844_v23 }
 0x37a   : > { %2478 = vmatpush.bf16.msrb.mxu3 %v2219_v7  ;;  %v1791_v7 = vunpack.c.l.bf16 %v5483_v39  ;;  %3550 = vtanh.f32 %v1795_v19  ;;  %v3541_v13 = vpop.eup %3540  ;;  %v1881_v39 = vunpack.c.h.bf16 %v5482_v22 }
 0x37b   : > { %3552 = vtanh.f32 %v1797_v54  ;;  %v3543_v0 = vpop.eup %3542  ;;  %v2259_v19 = vpack.c.bf16 %v3541_v13, %v3539_v26  ;;  %v1830_v54 = vunpack.c.l.bf16 %v4968_v63  ;;  %v5485_v13 = vld [vmem:[#allocation44_spill] sm:$0xff] }
 0x37c   : > { %3554 = vtanh.f32 %v1838_v51  ;;  %v3545_v5 = vpop.eup %3544  ;;  %v1832_v51 = vunpack.c.h.bf16 %v4968_v63  ;;  %v1826_v63 = vunpack.c.l.bf16 %v4935_v9 }
 0x37d   : > { %2479 = vmatmul.bf16.vlgmr.msrb.gmra.mxu3 %v4870_v58  ;;  %v1418_v58 = vadd.f32 %v1417_v41, %v4292_v29  ;;  %3556 = vtanh.f32 %v1840_v37  ;;  %v2280_v23 = vpack.c.bf16 %v3545_v5, %v3543_v0  ;;  %v1789_v41 = vunpack.c.h.bf16 %v5484_v21 }
 0x37e   : > { %2497 = vmatpush.bf16.msra.mxu3 %v2265_v56  ;;  %v1419_v56 = vpop.f32.mrf.mxu1  ;;  %v3547_v57 = vpop.eup %3546  ;;  %3558 = vtanh.f32 %v1791_v7  ;;  %v2257_v7 = vpack.c.bf16 %v3537_v49, %v5104_v4  ;;  %v1877_v49 = vunpack.c.h.bf16 %v5485_v13 }
 0x37f   : > { %v1420_v43 = vadd.f32 %v1419_v56, %v4292_v29  ;;  %v3549_v48 = vpop.eup %3548  ;;  %3560 = vtanh.f32 %v1793_v40  ;;  %2406 = vmatpush.bf16.msrb.mxu2 %v2280_v23  ;;  %v1875_v40 = vunpack.c.l.bf16 %v5485_v13 }
 0x380   : > { %v3551_v2 = vpop.eup %3550  ;;  %3562 = vtanh.f32 %v1834_v52  ;;  %v2278_v26 = vpack.c.bf16 %v3549_v48, %v3547_v57  ;;  %v5487_v52 = vld [vmem:[#allocation50_spill] sm:$0xff]  ;;  %v5134_v48 = vpop.f32.mrf.mxu3 }
 0x381   : > { %v3553_v8 = vpop.eup %3552  ;;  %3564 = vtanh.f32 %v1836_v12  ;;  %v1191_v56 = vadd.f32 %v5487_v52, %v4257_v60  ;;  %v1828_v12 = vunpack.c.h.bf16 %v4935_v9  ;;  %v5491_v52 = vld [vmem:[#allocation41_spill] sm:$0xff] }
 0x382   : > { %2498 = vmatpush.bf16.msra.mxu3 %v2263_v24  ;;  %v5119_v24 = vpack.c.bf16 %v1420_v43, %v1418_v58  ;;  %v3555_v37 = vpop.eup %3554  ;;  %3566 = vtanh.f32 %v1787_v20  ;;  %v5486_v58 = vld [vmem:[#allocation49_spill] sm:$0xff]  ;;  %v2255_v57 = vpack.c.bf16 %v3553_v8, %v3551_v2  ;;  %v5488_v20 = vld [vmem:[#allocation40_spill] sm:$0xff]  ;;  %v1824_v8 = vunpack.c.h.bf16 %v4909_v10 }
 0x383   : > { %v1189_v0 = vadd.f32 %v5486_v58, %v4257_v60  ;;  %3568 = vtanh.f32 %v1789_v41  ;;  %2407 = vmatpush.bf16.msrb.mxu2 %v2278_v26  ;;  %v1871_v23 = vunpack.c.l.bf16 %v5488_v20 }
 0x384   : > { %3570 = vtanh.f32 %v1830_v54  ;;  %v1822_v54 = vunpack.c.l.bf16 %v4909_v10 }
 0x385   : > { %3572 = vtanh.f32 %v1832_v51  ;;  %v5489_v51 = vld [vmem:[#allocation45_spill] sm:$0xff] }
 0x386   : > { %2499 = vmatpush.bf16.msra.mxu3 %v2261_v61  ;;  %v3557_v61 = vpop.eup %3556  ;;  %3574 = vtanh.f32 %v1881_v39  ;;  %v1184_v26 = vadd.f32 %v5489_v51, %v4257_v60 }
 0x387   : > { %v3559_v5 = vpop.eup %3558  ;;  %v2276_v43 = vpack.c.bf16 %v3557_v61, %v3555_v37  ;;  %3576 = vtanh.f32 %v1875_v40  ;;  %v5490_v37 = vld [vmem:[#allocation46_spill] sm:$0xff] }
 0x388   : > { %v3561_v22 = vpop.eup %3560  ;;  %3578 = vtanh.f32 %v1826_v63  ;;  %v1186_v2 = vadd.f32 %v5490_v37, %v4257_v60  ;;  %v1818_v63 = vunpack.c.l.bf16 %v4884_v59 }
 0x389   : > { %v3563_v4 = vpop.eup %3562  ;;  %2408 = vmatpush.bf16.msrb.mxu2 %v2276_v43  ;;  %3580 = vtanh.f32 %v1828_v12  ;;  %v2253_v13 = vpack.c.bf16 %v3561_v22, %v3559_v5  ;;  %v5492_v12 = vld [vmem:[#allocation42_spill] sm:$0xff] }
 0x38a   : > { %2500 = vmatpush.bf16.msra.mxu3 %v2259_v19  ;;  %v3565_v21 = vpop.eup %3564  ;;  %v1672_v19 = vpack.c.bf16 %v1191_v56, %v1189_v0  ;;  %3582 = vtanh.f32 %v1877_v49  ;;  %v1179_v56 = vadd.f32 %v5491_v52, %v4257_v60  ;;  %v1181_v43 = vadd.f32 %v5492_v12, %v4257_v60 }
 0x38b   : > { %v3567_v41 = vpop.eup %3566  ;;  %v2274_v61 = vpack.c.bf16 %v3565_v21, %v3563_v4  ;;  %3584 = vtanh.f32 %v1871_v23  ;;  %v1820_v4 = vunpack.c.h.bf16 %v4884_v59  ;;  %v5493_v23 = vld [vmem:[#allocation33_spill] sm:$0xff] }
 0x38c   : > { %v3569_v9 = vpop.eup %3568  ;;  %v1910_v58 = vunpack.c.l.bf16 %v1672_v19  ;;  %3586 = vtanh.f32 %v1822_v54  ;;  %v1912_v22 = vunpack.c.h.bf16 %v1672_v19  ;;  %v1863_v51 = vunpack.c.l.bf16 %v5493_v23  ;;  %v5495_v19 = vld [vmem:[#allocation38_spill] sm:$0xff] }
 0x38d   : > { %v3571_v39 = vpop.eup %3570  ;;  %2409 = vmatpush.bf16.msrb.mxu2 %v2274_v61  ;;  %3588 = vtanh.f32 %v1824_v8  ;;  %v2251_v21 = vpack.c.bf16 %v3569_v9, %v3567_v41  ;;  %v1865_v61 = vunpack.c.h.bf16 %v5493_v23  ;;  %v1668_v41 = vpack.c.bf16 %v1181_v43, %v1179_v56  ;;  %v1559_v8 = vpop.f32.mrf.mxu3 }
 0x38e   : > { %2501 = vmatpush.bf16.msra.mxu3 %v2257_v7  ;;  %v1873_v7 = vunpack.c.h.bf16 %v5488_v20  ;;  %v3573_v40 = vpop.eup %3572  ;;  %v1558_v56 = vadd.f32 %v5134_v48, %v4292_v29  ;;  %v1560_v43 = vadd.f32 %v1559_v8, %v4292_v29  ;;  %v1553_v48 = vadd.f32 %v5102_v32, %v4292_v29 }
 0x38f   : > { %v3575_v0 = vpop.eup %3574  ;;  %v2272_v49 = vpack.c.bf16 %v3573_v40, %v3571_v39  ;;  %v2291_v32 = vpack.c.bf16 %v5088_v11, %v5079_v47  ;;  %v1550_v8 = vadd.f32 %v5071_v42, %v4292_v29  ;;  %v5498_v11 = vld [vmem:[#allocation32_spill] sm:$0xff]  ;;  %v1543_v42 = vadd.f32 %v5004_v50, %v4292_v29 }
 0x390   : > { %v3577_v10 = vpop.eup %3576  ;;  %3590 = vtanh.f32 %v1873_v7  ;;  %v2297_v54 = vpack.c.bf16 %v3575_v0, %v5094_v36  ;;  %v1892_v50 = vunpack.c.h.bf16 %v5498_v11 }
 0x391   : > { %v3579_v5 = vpop.eup %3578  ;;  %3592 = vtanh.f32 %v1910_v58  ;;  %2410 = vmatpush.bf16.msrb.mxu2 %v2272_v49  ;;  %v5496_v58 = vld [vmem:[#allocation31_spill] sm:$0xff] }
 0x392   : > { %2502 = vmatpush.bf16.msra.mxu3 %v2255_v57  ;;  %v1670_v57 = vpack.c.bf16 %v1186_v2, %v1184_v26  ;;  %v3581_v20 = vpop.eup %3580  ;;  %3594 = vtanh.f32 %v1818_v63  ;;  %v1176_v2 = vadd.f32 %v5495_v19, %v4257_v60  ;;  %v1859_v0 = vunpack.c.l.bf16 %v5496_v58  ;;  %v5157_v63 = vpop.f32.mrf.mxu1 }
 0x393   : > { %v3583_v37 = vpop.eup %3582  ;;  %3596 = vtanh.f32 %v1820_v4  ;;  %v2270_v7 = vpack.c.bf16 %v3581_v20, %v3579_v5  ;;  %v1902_v5 = vunpack.c.l.bf16 %v1668_v41 }
 0x394   : > { %v3585_v59 = vpop.eup %3584  ;;  %v1906_v9 = vunpack.c.l.bf16 %v1670_v57  ;;  %v1908_v36 = vunpack.c.h.bf16 %v1670_v57  ;;  %3598 = vtanh.f32 %v1912_v22  ;;  %v2295_v52 = vpack.c.bf16 %v3583_v37, %v3577_v10 }
 0x395   : > { %v3587_v39 = vpop.eup %3586  ;;  %3600 = vtanh.f32 %v1863_v51  ;;  %2411 = vmatpush.bf16.msrb.mxu2 %v2270_v7  ;;  %v1904_v22 = vunpack.c.h.bf16 %v1668_v41  ;;  %v1555_v51 = vadd.f32 %v5114_v35, %v4292_v29  ;;  %v1548_v35 = vadd.f32 %v5044_v34, %v4292_v29  ;;  %v5176_v7 = vld.sshfl [vmem:[#allocation1 + $0x20] sm:$0xff pattern:$0x73625140] }
 0x396   : > { %2503 = vmatpush.bf16.msra.mxu3 %v2253_v13  ;;  %v5494_v13 = vld [vmem:[#allocation37_spill] sm:$0xff]  ;;  %v3589_v40 = vpop.eup %3588  ;;  %3602 = vtanh.f32 %v1865_v61 }
 0x397   : > { %v1174_v26 = vadd.f32 %v5494_v13, %v4257_v60  ;;  %v3591_v12 = vpop.eup %3590  ;;  %v1861_v60 = vunpack.c.h.bf16 %v5496_v58  ;;  %3604 = vtanh.f32 %v1906_v9  ;;  %v2268_v49 = vpack.c.bf16 %v3589_v40, %v3587_v39 }
 0x398   : > { %v3593_v57 = vpop.eup %3592  ;;  %3606 = vtanh.f32 %v1908_v36  ;;  %v2293_v20 = vpack.c.bf16 %v3591_v12, %v3585_v59  ;;  %v5497_v59 = vld [vmem:[#allocation34_spill] sm:$0xff]  ;;  %v1687_v39 = vpack.c.bf16 %v1555_v51, %v1553_v48  ;;  %v1540_v51 = vadd.f32 %v4996_v31, %v4292_v29 }
 0x399   : > { %v1666_v4 = vpack.c.bf16 %v1176_v2, %v1174_v26  ;;  %v3595_v10 = vpop.eup %3594  ;;  %3608 = vtanh.f32 %v1859_v0  ;;  %2412 = vmatpush.bf16.msrb.mxu2 %v2268_v49  ;;  %v1894_v2 = vunpack.c.l.bf16 %v5497_v59  ;;  %v1896_v34 = vunpack.c.h.bf16 %v5497_v59  ;;  %v5499_v49 = vld [vmem:[#allocation30_spill] sm:$0xff] }
 0x39a   : > { %2504 = vmatpush.bf16.msra.mxu3 %v2251_v21  ;;  %v1857_v21 = vunpack.c.h.bf16 %v5480_v1  ;;  %3610 = vtanh.f32 %v1861_v60  ;;  %v5178_v0 = vpop.f32.mrf.mxu1 }
 0x39b   : > { %v1898_v61 = vunpack.c.l.bf16 %v1666_v4  ;;  %3612 = vtanh.f32 %v1902_v5  ;;  %v1900_v26 = vunpack.c.h.bf16 %v1666_v4  ;;  %v1685_v4 = vpack.c.bf16 %v1550_v8, %v1548_v35 }
 0x39c   : > { %3614 = vtanh.f32 %v1904_v22  ;;  %v1939_v5 = vunpack.c.l.bf16 %v1687_v39  ;;  %v1941_v22 = vunpack.c.h.bf16 %v1687_v39 }
 0x39d   : > { %2505 = vmatmul.bf16.vlgmr.msra.gmra.mxu3 %v4920_v18  ;;  %v3597_v18 = vpop.eup %3596  ;;  %3616 = vtanh.f32 %v1857_v21 }
 0x39e   : > { %2523 = vmatpush.bf16.msrb.mxu3 %v2297_v54  ;;  %v3599_v23 = vpop.eup %3598  ;;  %v1689_v54 = vpack.c.bf16 %v1560_v43, %v1558_v56  ;;  %v2266_v1 = vpack.c.bf16 %v3597_v18, %v3595_v10  ;;  %3618 = vtanh.f32 %v1898_v61  ;;  %v1886_v18 = vunpack.c.l.bf16 %v5499_v49 }
 0x39f   : > { %v3601_v37 = vpop.eup %3600  ;;  %v2312_v41 = vpack.c.bf16 %v3599_v23, %v3593_v57  ;;  %3620 = vtanh.f32 %v1900_v26  ;;  %v1545_v57 = vadd.f32 %v5019_v62, %v4292_v29 }
 0x3a0   : > { %v3603_v13 = vpop.eup %3602  ;;  %2413 = vmatpush.bf16.msrb.mxu2 %v2266_v1  ;;  %v1943_v36 = vunpack.c.l.bf16 %v1689_v54  ;;  %v1945_v58 = vunpack.c.h.bf16 %v1689_v54  ;;  %3622 = vtanh.f32 %v1894_v2  ;;  %v1888_v1 = vunpack.c.h.bf16 %v5499_v49 }
 0x3a1   : > { %v3605_v19 = vpop.eup %3604  ;;  %v2289_v56 = vpack.c.bf16 %v3603_v13, %v3601_v37  ;;  %v1683_v54 = vpack.c.bf16 %v1545_v57, %v1543_v42  ;;  %v1935_v37 = vunpack.c.l.bf16 %v1685_v4  ;;  %v1937_v13 = vunpack.c.h.bf16 %v1685_v4  ;;  %v5500_v4 = vld [vmem:[#allocation26_spill] sm:$0xff] }
 0x3a2   : > { %2524 = vmatpush.bf16.msrb.mxu3 %v2295_v52  ;;  %v3607_v9 = vpop.eup %3606  ;;  %v1890_v52 = vunpack.c.l.bf16 %v5498_v11  ;;  %3624 = vtanh.f32 %v1943_v36  ;;  %v5196_v31 = vpop.f32.mrf.mxu1  ;;  %v1535_v36 = vadd.f32 %v4960_v28, %v4292_v29  ;;  %v2283_v11 = vpack.c.bf16 %v5069_v30, %v5067_v45 }
 0x3a3   : > { %v3609_v40 = vpop.eup %3608  ;;  %2414 = vmatmul.bf16.vlgmr.msrb.gmra.mxu2 %v5176_v7  ;;  %v2310_v60 = vpack.c.bf16 %v3607_v9, %v3605_v19  ;;  %3626 = vtanh.f32 %v1945_v58  ;;  %v1931_v9 = vunpack.c.l.bf16 %v1683_v54  ;;  %v1933_v8 = vunpack.c.h.bf16 %v1683_v54 }
 0x3a4   : > { %2432 = vmatpush.bf16.msra.mxu2 %v2312_v41  ;;  %v3611_v47 = vpop.eup %3610  ;;  %3628 = vtanh.f32 %v1896_v34  ;;  %v1721_v58 = vunpack.c.h.bf16 %v4412_v6  ;;  %v1528_v28 = vadd.f32 %v4915_v33, %v4292_v29  ;;  %v1530_v6 = vadd.f32 %v4926_v15, %v4292_v29 }
 0x3a5   : > { %v3613_v12 = vpop.eup %3612  ;;  %3630 = vtanh.f32 %v1890_v52  ;;  %v2287_v62 = vpack.c.bf16 %v3611_v47, %v3609_v40  ;;  %v1717_v45 = vunpack.c.h.bf16 %v4392_v53  ;;  %v1713_v33 = vunpack.c.h.bf16 %v5500_v4 }
 0x3a6   : > { %2525 = vmatpush.bf16.msrb.mxu3 %v2293_v20  ;;  %v3615_v43 = vpop.eup %3614  ;;  %v1538_v20 = vadd.f32 %v4979_v55, %v4292_v29  ;;  %3632 = vtanh.f32 %v1939_v5  ;;  %v1884_v55 = vunpack.c.h.bf16 %v5479_v14  ;;  %v1533_v14 = vadd.f32 %v4945_v38, %v4292_v29 }
 0x3a7   : > { %v3617_v10 = vpop.eup %3616  ;;  %v2308_v23 = vpack.c.bf16 %v3615_v43, %v3613_v12  ;;  %3634 = vtanh.f32 %v1941_v22  ;;  %v1711_v5 = vunpack.c.l.bf16 %v5500_v4  ;;  %v1523_v15 = vadd.f32 %v4890_v16, %v4292_v29 }
 0x3a8   : > { %2433 = vmatpush.bf16.msra.mxu2 %v2310_v60  ;;  %v3619_v21 = vpop.eup %3618  ;;  %3636 = vtanh.f32 %v1892_v50  ;;  %v2285_v2 = vpack.c.bf16 %v3617_v10, %v5076_v3  ;;  %v1679_v60 = vpack.c.bf16 %v1535_v36, %v1533_v14  ;;  %v1525_v53 = vadd.f32 %v4903_v44, %v4292_v29 }
 0x3a9   : > { %v3621_v48 = vpop.eup %3620  ;;  %3638 = vtanh.f32 %v1886_v18  ;;  %v1677_v18 = vpack.c.bf16 %v1530_v6, %v1528_v28 }
 0x3aa   : > { %2526 = vmatpush.bf16.msrb.mxu3 %v2291_v32  ;;  %v3623_v61 = vpop.eup %3622  ;;  %v2306_v59 = vpack.c.bf16 %v3621_v48, %v3619_v21  ;;  %v1681_v32 = vpack.c.bf16 %v1540_v51, %v1538_v20  ;;  %3640 = vtanh.f32 %v1935_v37  ;;  %v5215_v22 = vpop.f32.mrf.mxu1  ;;  %v1923_v50 = vunpack.c.l.bf16 %v1679_v60 }
 0x3ab   : > { %v3625_v26 = vpop.eup %3624  ;;  %3642 = vtanh.f32 %v1937_v13  ;;  %v1675_v37 = vpack.c.bf16 %v1525_v53, %v1523_v15  ;;  %v5507_v53 = vld [vmem:[#allocation57_spill] sm:$0xff] }
 0x3ac   : > { %2434 = vmatpush.bf16.msra.mxu2 %v2308_v23  ;;  %v3627_v19 = vpop.eup %3626  ;;  %3644 = vtanh.f32 %v1888_v1  ;;  %v1927_v34 = vunpack.c.l.bf16 %v1681_v32  ;;  %v1929_v42 = vunpack.c.h.bf16 %v1681_v32  ;;  %v5225_v32 = vld.sshfl [vmem:[#allocation1 + $0x30] sm:$0xff pattern:$0x73625140] }
 0x3ad   : > { %v3629_v41 = vpop.eup %3628  ;;  %v2329_v3 = vpack.c.bf16 %v3627_v19, %v3625_v26  ;;  %3646 = vtanh.f32 %v1884_v55  ;;  %v1921_v26 = vunpack.c.h.bf16 %v1677_v18  ;;  %v5502_v19 = vld [vmem:[#allocation24_spill] sm:$0xff] }
 0x3ae   : > { %2527 = vmatpush.bf16.msrb.mxu3 %v2289_v56  ;;  %v3631_v35 = vpop.eup %3630  ;;  %v2304_v47 = vpack.c.bf16 %v3629_v41, %v3623_v61  ;;  %3648 = vtanh.f32 %v1931_v9  ;;  %v1919_v61 = vunpack.c.l.bf16 %v1677_v18  ;;  %v1703_v55 = vunpack.c.l.bf16 %v5502_v19 }
 0x3af   : > { %v3633_v39 = vpop.eup %3632  ;;  %3650 = vtanh.f32 %v1933_v8  ;;  %v1705_v41 = vunpack.c.h.bf16 %v5502_v19  ;;  %v1783_v18 = vunpack.c.l.bf16 %v5507_v53 }
 0x3b0   : > { %2435 = vmatpush.bf16.msra.mxu2 %v2306_v59  ;;  %v3635_v40 = vpop.eup %3634  ;;  %3652 = vtanh.f32 %v1721_v58 }
 0x3b1   : > { %v3637_v52 = vpop.eup %3636  ;;  %v2327_v56 = vpack.c.bf16 %v3635_v40, %v3633_v39  ;;  %3654 = vtanh.f32 %v1927_v34 }
 0x3b2   : > { %2528 = vmatpush.bf16.msrb.mxu3 %v2287_v62  ;;  %v3639_v12 = vpop.eup %3638  ;;  %v2302_v30 = vpack.c.bf16 %v3637_v52, %v3631_v35  ;;  %3656 = vtanh.f32 %v1929_v42  ;;  %v5501_v62 = vld [vmem:[#allocation25_spill] sm:$0xff]  ;;  %v1915_v35 = vunpack.c.l.bf16 %v1675_v37  ;;  %v5227_v14 = vpop.f32.mrf.mxu1 }
 0x3b3   : > { %v3641_v38 = vpop.eup %3640  ;;  %3658 = vtanh.f32 %v1717_v45  ;;  %v1707_v48 = vunpack.c.l.bf16 %v5501_v62  ;;  %v1709_v51 = vunpack.c.h.bf16 %v5501_v62  ;;  %v5508_v62 = vld [vmem:[#allocation55_spill] sm:$0xff] }
 0x3b4   : > { %2436 = vmatpush.bf16.msra.mxu2 %v2304_v47  ;;  %v3643_v43 = vpop.eup %3642  ;;  %3660 = vtanh.f32 %v1711_v5  ;;  %v5504_v47 = vld [vmem:[#allocation23_spill] sm:$0xff] }
 0x3b5   : > { %v3645_v57 = vpop.eup %3644  ;;  %v2325_v21 = vpack.c.bf16 %v3643_v43, %v3641_v38  ;;  %3662 = vtanh.f32 %v1713_v33  ;;  %v1701_v34 = vunpack.c.h.bf16 %v5504_v47 }
 0x3b6   : > { %2529 = vmatpush.bf16.msrb.mxu3 %v2285_v2  ;;  %v3647_v10 = vpop.eup %3646  ;;  %v2300_v23 = vpack.c.bf16 %v3645_v57, %v3639_v12  ;;  %3664 = vtanh.f32 %v1923_v50 }
 0x3b7   : > { %v3649_v49 = vpop.eup %3648  ;;  %v2298_v1 = vpack.c.bf16 %v3647_v10, %v5073_v46  ;;  %v1917_v46 = vunpack.c.h.bf16 %v1675_v37  ;;  %v5506_v10 = vld [vmem:[#allocation21_spill] sm:$0xff] }
 0x3b8   : > { %2437 = vmatpush.bf16.msra.mxu2 %v2302_v30  ;;  %v3651_v20 = vpop.eup %3650  ;;  %v1691_v33 = vunpack.c.l.bf16 %v5506_v10 }
 0x3b9   : > { %v3653_v16 = vpop.eup %3652  ;;  %v2323_v44 = vpack.c.bf16 %v3651_v20, %v3649_v49  ;;  %v1693_v49 = vunpack.c.h.bf16 %v5506_v10  ;;  %v5513_v10 = vld [vmem:[#allocation39_spill] sm:$0xff] }
 0x3ba   : > { %2530 = vmatpush.bf16.msrb.mxu3 %v2283_v11  ;;  %v3655_v54 = vpop.eup %3654  ;;  %v2217_v59 = vpack.c.bf16 %v3653_v16, %v5032_v17  ;;  %v5503_v17 = vld [vmem:[#allocation68_spill] sm:$0xff]  ;;  %v1699_v11 = vunpack.c.l.bf16 %v5504_v47  ;;  %v5236_v15 = vpop.f32.mrf.mxu1 }
 0x3bb   : > { %v3657_v13 = vpop.eup %3656 }
 0x3bc   : > { %2438 = vmatpush.bf16.msra.mxu2 %v2300_v23  ;;  %v3659_v2 = vpop.eup %3658  ;;  %v2321_v8 = vpack.c.bf16 %v3657_v13, %v3655_v54  ;;  %v5509_v13 = vld [vmem:[#allocation53_spill] sm:$0xff] }
 0x3bd   : > { %2531 = vmatmul.bf16.vlgmr.msrb.gmra.mxu3 %v4981_v27  ;;  %v1925_v27 = vunpack.c.h.bf16 %v1679_v60  ;;  %v3661_v9 = vpop.eup %3660  ;;  %v5505_v60 = vld [vmem:[#allocation22_spill] sm:$0xff] }
 0x3be   : > { %2549 = vmatpush.bf16.msra.mxu3 %v2329_v3  ;;  %v3663_v39 = vpop.eup %3662  ;;  %v2215_v3 = vpack.c.bf16 %v3659_v2, %v5503_v17  ;;  %v1697_v45 = vunpack.c.h.bf16 %v5505_v60 }
 0x3bf   : > { %3666 = vtanh.f32 %v1925_v27  ;;  %v3665_v36 = vpop.eup %3664  ;;  %v2213_v42 = vpack.c.bf16 %v3663_v39, %v3661_v9  ;;  %v5510_v9 = vld [vmem:[#allocation51_spill] sm:$0xff] }
 0x3c0   : > { %3668 = vtanh.f32 %v1707_v48  ;;  %2439 = vmatpush.bf16.msra.mxu2 %v2298_v1  ;;  %v1779_v48 = vunpack.c.l.bf16 %v5508_v62 }
 0x3c1   : > { %3670 = vtanh.f32 %v1709_v51  ;;  %v1781_v51 = vunpack.c.h.bf16 %v5508_v62  ;;  %v5514_v62 = vld [vmem:[#allocation35_spill] sm:$0xff] }
 0x3c2   : > { %2550 = vmatpush.bf16.msra.mxu3 %v2327_v56  ;;  %3672 = vtanh.f32 %v1919_v61  ;;  %v1695_v56 = vunpack.c.l.bf16 %v5505_v60  ;;  %v3792_v61 = vld.sshfl [vmem:[#allocation1 + $0x38] sm:$0xff pattern:$0x73625140]  ;;  %v1437_v1 = vpop.f32.mrf.mxu1 }
 0x3c3   : > { %3674 = vtanh.f32 %v1921_v26  ;;  %2440 = vmatmul.bf16.vlgmr.msra.gmra.mxu2 %v5225_v32  ;;  %v1775_v26 = vunpack.c.l.bf16 %v5509_v13  ;;  %v2363_v17 = vpop.f32.mrf.mxu2 }
 0x3c4   : > { %2458 = vmatpush.bf16.msrb.mxu2 %v2217_v59  ;;  %3676 = vtanh.f32 %v1703_v55  ;;  %v1777_v55 = vunpack.c.h.bf16 %v5509_v13 }
 0x3c5   : > { %v3667_v40 = vpop.eup %3666  ;;  %3678 = vtanh.f32 %v1705_v41 }
 0x3c6   : > { %2551 = vmatpush.bf16.msra.mxu3 %v2325_v21  ;;  %v3669_v58 = vpop.eup %3668  ;;  %3680 = vtanh.f32 %v1915_v35  ;;  %v2319_v38 = vpack.c.bf16 %v3667_v40, %v3665_v36  ;;  %v1785_v21 = vunpack.c.h.bf16 %v5507_v53  ;;  %v1771_v35 = vunpack.c.l.bf16 %v5510_v9  ;;  %v2376_v40 = vpop.f32.mrf.mxu3 }
 0x3c7   : > { %v3671_v52 = vpop.eup %3670  ;;  %3682 = vtanh.f32 %v1917_v46  ;;  %v1761_v53 = vunpack.c.h.bf16 %v5513_v10 }
 0x3c8   : > { %2459 = vmatpush.bf16.msrb.mxu2 %v2215_v3  ;;  %v3673_v12 = vpop.eup %3672  ;;  %3684 = vtanh.f32 %v1699_v11  ;;  %v2211_v57 = vpack.c.bf16 %v3671_v52, %v3669_v58  ;;  %v5511_v58 = vld [vmem:[#allocation47_spill] sm:$0xff]  ;;  %v2377_v11 = vadd.f32 %v2376_v40, %v2363_v17 }
 0x3c9   : > { %v3675_v28 = vpop.eup %3674  ;;  %3686 = vtanh.f32 %v1701_v34  ;;  %v1767_v47 = vunpack.c.l.bf16 %v5511_v58  ;;  %v1769_v52 = vunpack.c.h.bf16 %v5511_v58 }
 0x3ca   : > { %2552 = vmatpush.bf16.msra.mxu3 %v2323_v44  ;;  %v3677_v6 = vpop.eup %3676  ;;  %v2317_v4 = vpack.c.bf16 %v3675_v28, %v3673_v12  ;;  %3688 = vtanh.f32 %v1695_v56 }
 0x3cb   : > { %v3679_v43 = vpop.eup %3678  ;;  %3690 = vtanh.f32 %v1697_v45 }
 0x3cc   : > { %2460 = vmatpush.bf16.msrb.mxu2 %v2213_v42  ;;  %v3681_v30 = vpop.eup %3680  ;;  %v2209_v20 = vpack.c.bf16 %v3679_v43, %v3677_v6  ;;  %3692 = vtanh.f32 %v1691_v33  ;;  %v1439_v42 = vpop.f32.mrf.mxu1  ;;  %v5512_v6 = vld [vmem:[#allocation43_spill] sm:$0xff]  ;;  %v1438_v43 = vadd.f32 %v1437_v1, %v4292_v29  ;;  %v1759_v33 = vunpack.c.l.bf16 %v5513_v10 }
 0x3cd   : > { %v3683_v5 = vpop.eup %3682  ;;  %3694 = vtanh.f32 %v1693_v49  ;;  %v1763_v60 = vunpack.c.l.bf16 %v5512_v6  ;;  %v1765_v56 = vunpack.c.h.bf16 %v5512_v6  ;;  %v1440_v45 = vadd.f32 %v1439_v42, %v4292_v29 }
 0x3ce   : > { %2553 = vmatpush.bf16.msra.mxu3 %v2321_v8  ;;  %v3685_v50 = vpop.eup %3684  ;;  %v2315_v27 = vpack.c.bf16 %v3683_v5, %v3681_v30  ;;  %3696 = vtanh.f32 %v1783_v18  ;;  %v1773_v8 = vunpack.c.h.bf16 %v5510_v9  ;;  %v2378_v49 = vpop.f32.mrf.mxu3  ;;  %v1433_v18 = vadd.f32 %v5227_v14, %v4292_v29 }
 0x3cf   : > { %v3687_v23 = vpop.eup %3686  ;;  %3698 = vtanh.f32 %v1785_v21  ;;  %v1641_v21 = vpack.c.bf16 %v1440_v45, %v1438_v43  ;;  %v1430_v14 = vadd.f32 %v5215_v22, %v4292_v29  ;;  %v1833_v6 = vunpack.c.h.bf16 %v5119_v24 }
 0x3d0   : > { %2461 = vmatpush.bf16.msrb.mxu2 %v2211_v57  ;;  %v3689_v16 = vpop.eup %3688  ;;  %v2207_v54 = vpack.c.bf16 %v3687_v23, %v3685_v50  ;;  %3700 = vtanh.f32 %v1779_v48  ;;  %v1435_v50 = vadd.f32 %v5236_v15, %v4292_v29  ;;  %v1755_v48 = vunpack.c.l.bf16 %v5514_v62 }
 0x3d1   : > { %v3691_v37 = vpop.eup %3690  ;;  %3702 = vtanh.f32 %v1781_v51  ;;  %v1428_v51 = vadd.f32 %v5196_v31, %v4292_v29  ;;  %v1425_v31 = vadd.f32 %v5178_v0, %v4292_v29  ;;  %v1827_v10 = vunpack.c.l.bf16 %v5086_v25 }
 0x3d2   : > { %2554 = vmatpush.bf16.msra.mxu3 %v2319_v38  ;;  %v3693_v44 = vpop.eup %3692  ;;  %v2205_v59 = vpack.c.bf16 %v3691_v37, %v3689_v16  ;;  %3704 = vtanh.f32 %v1775_v26  ;;  %v3793_v38 = vld.sshfl [vmem:[#allocation1] sm:$0xff pattern:$0x73625140]  ;;  %v1757_v16 = vunpack.c.h.bf16 %v5514_v62  ;;  %v1847_v37 = vunpack.c.l.bf16 %v1641_v21 }
 0x3d3   : > { %v3695_v19 = vpop.eup %3694  ;;  %3706 = vtanh.f32 %v1777_v55  ;;  %v1423_v55 = vadd.f32 %v5157_v63, %v4292_v29  ;;  %v1637_v22 = vpack.c.bf16 %v1430_v14, %v1428_v51 }
 0x3d4   : > { %2462 = vmatpush.bf16.msrb.mxu2 %v2209_v20  ;;  %v3697_v2 = vpop.eup %3696  ;;  %v2203_v39 = vpack.c.bf16 %v3695_v19, %v3693_v44  ;;  %3708 = vtanh.f32 %v1771_v35 }
 0x3d5   : > { %v3699_v41 = vpop.eup %3698  ;;  %3710 = vtanh.f32 %v1773_v8  ;;  %v1841_v17 = vunpack.c.h.bf16 %v1637_v22 }
 0x3d6   : > { %2555 = vmatpush.bf16.msra.mxu3 %v2317_v4  ;;  %v3701_v46 = vpop.eup %3700  ;;  %v2249_v36 = vpack.c.bf16 %v3699_v41, %v3697_v2  ;;  %3712 = vtanh.f32 %v1767_v47  ;;  %v2365_v4 = vpop.f32.mrf.mxu2 }
 0x3d7   : > { %v3703_v3 = vpop.eup %3702  ;;  %3714 = vtanh.f32 %v1769_v52  ;;  %v2402_v19 = vpop.f32.mrf.mxu3  ;;  %v5516_v4 = vld [vmem:[#allocation66_spill] sm:$0xff] }
 0x3d8   : > { %2463 = vmatpush.bf16.msrb.mxu2 %v2207_v54  ;;  %v3705_v34 = vpop.eup %3704  ;;  %v2247_v12 = vpack.c.bf16 %v3703_v3, %v3701_v46  ;;  %3716 = vtanh.f32 %v1763_v60  ;;  %v1639_v54 = vpack.c.bf16 %v1435_v50, %v1433_v18  ;;  %v1635_v46 = vpack.c.bf16 %v1425_v31, %v1423_v55  ;;  %v5517_v50 = vld [vmem:[#allocation27_spill] sm:$0xff] }
 0x3d9   : > { %v3707_v28 = vpop.eup %3706  ;;  %3718 = vtanh.f32 %v1765_v56  ;;  %v3794_v56 = vld.sshfl [vmem:[#allocation1 + $0x10] sm:$0xff pattern:$0x73625140] }
 0x3da   : > { %2556 = vmatpush.bf16.msra.mxu3 %v2315_v27  ;;  %v3709_v30 = vpop.eup %3708  ;;  %v2245_v57 = vpack.c.bf16 %v3707_v28, %v3705_v34  ;;  %3720 = vtanh.f32 %v1759_v33  ;;  %v1843_v2 = vunpack.c.l.bf16 %v1639_v54  ;;  %v1845_v35 = vunpack.c.h.bf16 %v1639_v54  ;;  %v5520_v54 = vld [vmem:[#allocation67_spill] sm:$0xff] }
 0x3db   : > { %v3711_v5 = vpop.eup %3710  ;;  %3722 = vtanh.f32 %v1761_v53  ;;  %v1837_v52 = vunpack.c.h.bf16 %v1635_v46  ;;  %v1831_v28 = vunpack.c.l.bf16 %v5119_v24  ;;  %v1829_v33 = vunpack.c.h.bf16 %v5086_v25 }
 0x3dc   : > { %2464 = vmatpush.bf16.msrb.mxu2 %v2205_v59  ;;  %v3713_v20 = vpop.eup %3712  ;;  %v2243_v27 = vpack.c.bf16 %v3711_v5, %v3709_v30  ;;  %3724 = vtanh.f32 %v1755_v48  ;;  %v5515_v30 = vld [vmem:[#allocation65_spill] sm:$0xff]  ;;  %v1520_v5 = vadd.f32 %v5516_v4, %v4292_v29  ;;  %v1825_v48 = vunpack.c.h.bf16 %v5517_v50  ;;  %v5525_v4 = vld [vmem:[#allocation54_spill] sm:$0xff] }
 0x3dd   : > { %2557 = vmatmul.bf16.vlgmr.msra.gmra.mxu3 %v3792_v61  ;;  %v3715_v23 = vpop.eup %3714  ;;  %v1849_v61 = vunpack.c.h.bf16 %v1641_v21  ;;  %3726 = vtanh.f32 %v1757_v16  ;;  %v1823_v21 = vunpack.c.l.bf16 %v5517_v50 }
 0x3de   : > { %v3717_v15 = vpop.eup %3716  ;;  %v2241_v44 = vpack.c.bf16 %v3715_v23, %v3713_v20  ;;  %v2389_v13 = vpop.f32.mrf.mxu2  ;;  %3728 = vtanh.f32 %v1847_v37  ;;  %v5518_v20 = vld [vmem:[#allocation63_spill] sm:$0xff]  ;;  %v5519_v23 = vld [vmem:[#allocation64_spill] sm:$0xff]  ;;  %v1819_v37 = vunpack.c.l.bf16 %v5520_v54 }
 0x3df   : > { %v3719_v26 = vpop.eup %3718  ;;  %v2390_v1 = vadd.f32 %v2389_v13, %v2377_v11  ;;  %3730 = vtanh.f32 %v1849_v61  ;;  %v2404_v58 = vpop.f32.mrf.mxu3  ;;  %v1835_v11 = vunpack.c.l.bf16 %v1635_v46  ;;  %v1515_v62 = vadd.f32 %v5519_v23, %v4292_v29 }
 0x3e0   : > { %2465 = vmatpush.bf16.msrb.mxu2 %v2203_v39  ;;  %v3721_v59 = vpop.eup %3720  ;;  %v2239_v8 = vpack.c.bf16 %v3719_v26, %v3717_v15  ;;  %3732 = vtanh.f32 %v1843_v2  ;;  %v1821_v61 = vunpack.c.h.bf16 %v5520_v54 }
 0x3e1   : > { %v5269_v41 = vadd.f32 %v2402_v19, %v2390_v1  ;;  %v3723_v9 = vpop.eup %3722  ;;  %3734 = vtanh.f32 %v1845_v35 }
 0x3e2   : > { %v3725_v39 = vpop.eup %3724  ;;  %v2237_v0 = vpack.c.bf16 %v3723_v9, %v3721_v59  ;;  %v5521_v9 = vld [vmem:[#allocation62_spill] sm:$0xff] }
 0x3e3   : > { %2466 = vmatmul.bf16.vlgmr.msrb.gmra.mxu2 %v3793_v38  ;;  %v3727_v63 = vpop.eup %3726  ;;  %v1903_v35 = vunpack.c.l.bf16 %v5521_v9 }
 0x3e4   : > { %2484 = vmatpush.bf16.msra.mxu2 %v2249_v36  ;;  %v1839_v36 = vunpack.c.l.bf16 %v1637_v22  ;;  %v3729_v40 = vpop.eup %3728  ;;  %v2235_v34 = vpack.c.bf16 %v3727_v63, %v3725_v39  ;;  %v1905_v39 = vunpack.c.h.bf16 %v5521_v9 }
 0x3e5   : > { %v3731_v47 = vpop.eup %3730 }
 0x3e6   : > { %v2391_v3 = vpop.f32.mrf.mxu2  ;;  %3736 = vtanh.f32 %v1839_v36  ;;  %v2281_v42 = vpack.c.bf16 %v3731_v47, %v3729_v40 }
 0x3e7   : > { %3738 = vtanh.f32 %v1841_v17 }
 0x3e8   : > { %2485 = vmatpush.bf16.msra.mxu2 %v2247_v12  ;;  %v3733_v12 = vpop.eup %3732  ;;  %3740 = vtanh.f32 %v1835_v11 }
 0x3e9   : > { %v3735_v38 = vpop.eup %3734  ;;  %3742 = vtanh.f32 %v1837_v52 }
 0x3ea   : > { %v2279_v43 = vpack.c.bf16 %v3735_v38, %v3733_v12  ;;  %3744 = vtanh.f32 %v1831_v28 }
 0x3eb   : > { %3746 = vtanh.f32 %v1833_v6 }
 0x3ec   : > { %2486 = vmatpush.bf16.msra.mxu2 %v2245_v57  ;;  %v3737_v60 = vpop.eup %3736  ;;  %v1518_v57 = vadd.f32 %v5515_v30, %v4292_v29  ;;  %3748 = vtanh.f32 %v1827_v10  ;;  %v1889_v10 = vunpack.c.h.bf16 %v5525_v4 }
 0x3ed   : > { %v3739_v45 = vpop.eup %3738  ;;  %3750 = vtanh.f32 %v1829_v33 }
 0x3ee   : > { %v3741_v24 = vpop.eup %3740  ;;  %v2277_v49 = vpack.c.bf16 %v3739_v45, %v3737_v60  ;;  %v1673_v18 = vpack.c.bf16 %v1520_v5, %v1518_v57  ;;  %3752 = vtanh.f32 %v1823_v21  ;;  %v5524_v60 = vld [vmem:[#allocation56_spill] sm:$0xff]  ;;  %v1887_v5 = vunpack.c.l.bf16 %v5525_v4 }
 0x3ef   : > { %v3743_v53 = vpop.eup %3742  ;;  %3754 = vtanh.f32 %v1825_v48 }
 0x3f0   : > { %2487 = vmatpush.bf16.msra.mxu2 %v2243_v27  ;;  %v1513_v27 = vadd.f32 %v5518_v20, %v4292_v29  ;;  %v3745_v16 = vpop.eup %3744  ;;  %v2275_v25 = vpack.c.bf16 %v3743_v53, %v3741_v24  ;;  %v1911_v14 = vunpack.c.l.bf16 %v1673_v18  ;;  %v1913_v13 = vunpack.c.h.bf16 %v1673_v18  ;;  %v5287_v29 = vpop.f32.mrf.mxu3 }
 0x3f1   : > { %v3747_v51 = vpop.eup %3746 }
 0x3f2   : > { %v1671_v15 = vpack.c.bf16 %v1515_v62, %v1513_v27  ;;  %v2273_v26 = vpack.c.bf16 %v3747_v51, %v3745_v16  ;;  %3756 = vtanh.f32 %v1911_v14 }
 0x3f3   : > { %3758 = vtanh.f32 %v1819_v37 }
 0x3f4   : > { %2488 = vmatpush.bf16.msra.mxu2 %v2241_v44  ;;  %v3749_v44 = vpop.eup %3748  ;;  %v1907_v19 = vunpack.c.l.bf16 %v1671_v15  ;;  %3760 = vtanh.f32 %v1821_v61  ;;  %v1909_v31 = vunpack.c.h.bf16 %v1671_v15 }
 0x3f5   : > { %v3751_v1 = vpop.eup %3750  ;;  %3762 = vtanh.f32 %v1913_v13 }
 0x3f6   : > { %v3753_v55 = vpop.eup %3752  ;;  %v2271_v59 = vpack.c.bf16 %v3751_v1, %v3749_v44  ;;  %3764 = vtanh.f32 %v1907_v19 }
 0x3f7   : > { %v3755_v22 = vpop.eup %3754  ;;  %3766 = vtanh.f32 %v1909_v31 }
 0x3f8   : > { %2489 = vmatpush.bf16.msra.mxu2 %v2239_v8  ;;  %v3757_v2 = vpop.eup %3756  ;;  %v2269_v46 = vpack.c.bf16 %v3755_v22, %v3753_v55  ;;  %v2430_v63 = vpop.f32.mrf.mxu3  ;;  %3768 = vtanh.f32 %v1903_v35 }
 0x3f9   : > { %v3759_v8 = vpop.eup %3758  ;;  %3770 = vtanh.f32 %v1905_v39 }
 0x3fa   : > { %v3761_v36 = vpop.eup %3760 }
 0x3fb   : > { %v3763_v17 = vpop.eup %3762  ;;  %v2267_v58 = vpack.c.bf16 %v3761_v36, %v3759_v8 }
 0x3fc   : > { %2490 = vmatpush.bf16.msra.mxu2 %v2237_v0  ;;  %v5522_v0 = vld [vmem:[#allocation60_spill] sm:$0xff]  ;;  %v3765_v47 = vpop.eup %3764  ;;  %v2313_v11 = vpack.c.bf16 %v3763_v17, %v3757_v2 }
 0x3fd   : > { %v1899_v3 = vunpack.c.l.bf16 %v5522_v0  ;;  %v1901_v40 = vunpack.c.h.bf16 %v5522_v0  ;;  %v3767_v52 = vpop.eup %3766 }
 0x3fe   : > { %v3769_v38 = vpop.eup %3768  ;;  %v2311_v28 = vpack.c.bf16 %v3767_v52, %v3765_v47 }
 0x3ff   : > { %3772 = vtanh.f32 %v1899_v3  ;;  %v3771_v6 = vpop.eup %3770 }
 0x400   : > { %2491 = vmatpush.bf16.msra.mxu2 %v2235_v34  ;;  %v5523_v34 = vld [vmem:[#allocation58_spill] sm:$0xff]  ;;  %3774 = vtanh.f32 %v1901_v40  ;;  %v2309_v30 = vpack.c.bf16 %v3771_v6, %v3769_v38  ;;  %v2454_v27 = vpop.f32.mrf.mxu3 }
 0x401   : > { %v1895_v12 = vunpack.c.l.bf16 %v5523_v34 }
 0x403   : > { %2492 = vmatmul.bf16.vlgmr.msra.gmra.mxu2 %v3794_v56  ;;  %v1891_v56 = vunpack.c.l.bf16 %v5524_v60  ;;  %3776 = vtanh.f32 %v1895_v12 }
 0x404   : > { %2510 = vmatpush.bf16.msrb.mxu2 %v2281_v42  ;;  %v1897_v42 = vunpack.c.h.bf16 %v5523_v34  ;;  %v2330_v34 = vld [vmem:[%s4244_s22] sm:$0xff] }
 0x405   : > { %v3773_v45 = vpop.eup %3772 }
 0x406   : > { %3778 = vtanh.f32 %v1897_v42  ;;  %v3775_v57 = vpop.eup %3774 }
 0x407   : > { %3780 = vtanh.f32 %v1891_v56  ;;  %v2307_v33 = vpack.c.bf16 %v3775_v57, %v3773_v45 }
 0x408   : > { %2511 = vmatpush.bf16.msrb.mxu2 %v2279_v43  ;;  %v1893_v43 = vunpack.c.h.bf16 %v5524_v60  ;;  %v2456_v15 = vpop.f32.mrf.mxu3 }
 0x40a   : > { %3782 = vtanh.f32 %v1893_v43 }
 0x40b   : > { %3784 = vtanh.f32 %v1887_v5 }
 0x40c   : > { %2512 = vmatpush.bf16.msrb.mxu2 %v2277_v49  ;;  %v5526_v49 = vld [vmem:[#allocation52_spill] sm:$0xff]  ;;  %3786 = vtanh.f32 %v1889_v10 }
 0x40d   : > { %v1883_v53 = vunpack.c.l.bf16 %v5526_v49  ;;  %v1885_v18 = vunpack.c.h.bf16 %v5526_v49 }
 0x40f   : > { %3788 = vtanh.f32 %v1883_v53 }
 0x410   : > { %2513 = vmatpush.bf16.msrb.mxu2 %v2275_v25  ;;  %3790 = vtanh.f32 %v1885_v18  ;;  %v2480_v13 = vpop.f32.mrf.mxu3 }
 0x414   : > { %2514 = vmatpush.bf16.msrb.mxu2 %v2273_v26 }
 0x418   : > { %2515 = vmatpush.bf16.msrb.mxu2 %v2271_v59 }
 0x41c   : > { %2516 = vmatpush.bf16.msrb.mxu2 %v2269_v46 }
 0x420   : > { %2517 = vmatpush.bf16.msrb.mxu2 %v2267_v58 }
 0x423   : > { %2518 = vmatmul.bf16.vlgmr.msrb.gmra.mxu2 %v5176_v7  ;;  %v3777_v7 = vpop.eup %3776 }
 0x424   : > { %2536 = vmatpush.bf16.msra.mxu2 %v2313_v11  ;;  %v3779_v24 = vpop.eup %3778 }
 0x425   : > { %v3781_v50 = vpop.eup %3780  ;;  %v2305_v21 = vpack.c.bf16 %v3779_v24, %v3777_v7 }
 0x426   : > { %v3783_v20 = vpop.eup %3782  ;;  %v2415_v23 = vpop.f32.mrf.mxu2 }
 0x427   : > { %v3785_v62 = vpop.eup %3784  ;;  %v2416_v48 = vadd.f32 %v2415_v23, %v5269_v41  ;;  %v2303_v16 = vpack.c.bf16 %v3783_v20, %v3781_v50  ;;  %v2482_v41 = vpop.f32.mrf.mxu3 }
 0x428   : > { %2537 = vmatpush.bf16.msra.mxu2 %v2311_v28  ;;  %v3787_v25 = vpop.eup %3786 }
 0x429   : > { %v2429_v51 = vadd.f32 %v5287_v29, %v2416_v48  ;;  %v3789_v14 = vpop.eup %3788  ;;  %v2301_v54 = vpack.c.bf16 %v3787_v25, %v3785_v62 }
 0x42a   : > { %v3791_v37 = vpop.eup %3790 }
 0x42b   : > { %v2299_v44 = vpack.c.bf16 %v3791_v37, %v3789_v14 }
 0x42c   : > { %2538 = vmatpush.bf16.msra.mxu2 %v2309_v30 }
 0x42e   : > { %v2417_v61 = vpop.f32.mrf.mxu2 }
 0x42f   : > { %v2506_v31 = vpop.f32.mrf.mxu3 }
 0x430   : > { %2539 = vmatpush.bf16.msra.mxu2 %v2307_v33 }
 0x434   : > { %2540 = vmatpush.bf16.msra.mxu2 %v2305_v21 }
 0x437   : > { %v2508_v22 = vpop.f32.mrf.mxu3 }
 0x438   : > { %2541 = vmatpush.bf16.msra.mxu2 %v2303_v16 }
 0x43c   : > { %2542 = vmatpush.bf16.msra.mxu2 %v2301_v54 }
 0x440   : > { %2543 = vmatpush.bf16.msra.mxu2 %v2299_v44  ;;  %v2532_v9 = vpop.f32.mrf.mxu3 }
 0x443   : > { %2544 = vmatmul.bf16.vlgmr.msra.gmra.mxu2 %v5225_v32 }
 0x446   : > { %v2441_v26 = vpop.f32.mrf.mxu2 }
 0x447   : > { %v2442_v1 = vadd.f32 %v2441_v26, %v2429_v51 }
 0x448   : > { %v2534_v46 = vpop.f32.mrf.mxu3 }
 0x449   : > { %v2455_v19 = vadd.f32 %v2454_v27, %v2442_v1 }
 0x44e   : > { %v2443_v55 = vpop.f32.mrf.mxu2 }
 0x460   : > { %v2558_v36 = vpop.f32.mrf.mxu3 }
 0x466   : > { %v2467_v59 = vpop.f32.mrf.mxu2 }
 0x467   : > { %v2481_v29 = vadd.f32 %v2480_v13, %v2467_v59 }
 0x468   : > { %v2560_v63 = vpop.f32.mrf.mxu3 }
 0x46e   : > { %v2469_v2 = vpop.f32.mrf.mxu2 }
 0x486   : > { %v2493_v35 = vpop.f32.mrf.mxu2 }
 0x487   : > { %v2494_v8 = vadd.f32 %v2493_v35, %v2481_v29 }
 0x489   : > { %v2507_v39 = vadd.f32 %v2506_v31, %v2494_v8 }
 0x48e   : > { %v2495_v32 = vpop.f32.mrf.mxu2 }
 0x4a6   : > { %v2519_v17 = vpop.f32.mrf.mxu2 }
 0x4a7   : > { %v2520_v3 = vadd.f32 %v2519_v17, %v2507_v39 }
 0x4a9   : > { %v2533_v40 = vadd.f32 %v2532_v9, %v2520_v3 }
 0x4ae   : > { %v2521_v0 = vpop.f32.mrf.mxu2 }
 0x4c6   : > { %v2545_v58 = vpop.f32.mrf.mxu2 }
 0x4c7   : > { %v2546_v47 = vadd.f32 %v2545_v58, %v2533_v40 }
 0x4c9   : > { %v2559_v11 = vadd.f32 %v2558_v36, %v2546_v47 }
 0x4cb   : > { %v2564_v52 = vrot.slane %v2559_v11, 4 }
 0x4cd   : > { %v2566_v12 = vsel %vm2565_vm0, %v2455_v19, %v2564_v52 }
 0x4ce   : > { %v2547_v42 = vpop.f32.mrf.mxu2  ;;  %v2568_v38 = vadd.f32 %v2566_v12, %v2330_v34 }
 0x4d0   : > { %2569 = vst [vmem:[%s4244_s22] sm:$0xff] %v2568_v38 }
 0x4d1   : > { %3942 = shalt.err (!%p3939_p7)
}
 0x4d2   : > { %3156 = dma.vmem_to_hbm [thread:$0]  (%p4150_p6), %s2585_s14, 128, %s2587_s1, %s2571_s8  }
 0x4d3 PF: > { %s5530_s4 = sld [smem:[#allocation15_spill]]  ;;  %p3183_p8 = scmp.ge.s32.totalorder %s4045_s25, 2 }
 0x4d5   : > { %p3173_p9 = pnand %p3183_p8, %p4156_p10 }
 0x4d7   : > { %p3174_p12 = pneg %p3173_p9 }
 0x4d9   : > { %s2598_s29 = sand.u32 1, %s5530_s4  }
 0x4da   : > { %s2599_s28 = scalar_lea.sflag [#allocation4], %s2598_s29 }
 0x4db   : > { %4000 = dma.done.wait (%p3174_p12), %s2599_s28, 128  }
 0x4dc   : > { %4002 = vsyncadd (%p3174_p12), %s2599_s28, 4294967168  ;;  %s22_s25 = sadd.s32 1, %s4045_s25   ;;  %s5532_s21 = sld [smem:[#allocation18_spill]] }
 0x4dd   : > { %p19_p13 = scmp.ge.s32.totalorder %s22_s25, 6   ;;  %s5533_s15 = smov %s4009_s16 }
 0x4de   : > { %s5534_s16 = smov %s4013_s17  ;;  %s5535_s17 = smov %s4212_s3 }
 0x4df   : > { %s5536_s18 = smov %s4021_s19  ;;  %s5537_s19 = smov %s4025_s20 }
 0x4e0   : > { %s5538_s20 = smov %s4215_s23  ;;  %s5539_s22 = smov %s4041_s24 }
 0x4e1   : > { %s5540_s23 = smov %s5543_s9  ;;  %s5541_s24 = smov %s5547_s11 }
 0x4e2   :  { %21 = sbr.rel (!%p19_p13) target bundleno = 16 (0x10), region = 98 }
 0x4e7   :  { %2605 = vsyncpa [#allocation3], 1 }
 0x4e8   :  { %2607 = vsyncpa [#allocation3 + $0x1], 1 }
 0x4e9   :  { %2608 = vsyncpa [#allocation6], 1 }
 0x4ea   :  { %2609 = vsyncpa [#allocation9], 1 }
 0x4eb   :  { %2610 = vsyncpa [#allocation4], 1 }
 0x4ec   :  { %2612 = vsyncpa [#allocation4 + $0x1], 1 }

</bundles_post_ra>
